<compile_context>
chip_gen: v7x
topology: tpu7x:2x2x1
jax: 0.10.0
libtpu: 0.0.40
codegen_flags: <defaults>
</compile_context>

<pallas_src>
import jax
import jax.numpy as jnp
from jax.experimental import pallas as pl
from jax.experimental.pallas import tpu as pltpu

DIM = 3            # implied by the forward slicing (x[:, 0::2] -> 2 cols, x[:, 1])
HID = 32           # hidden_dim of each FCNN
HID2 = 2 * HID     # fused t/s hidden width
NNET = 8           # t1, s1, t2, s2, t3, s3, t4, s4
NPAIR = 4          # (t1,s1), (t2,s2), (t3,s3), (t4,s4)


# ---------------------------------------------------------------------------
# Pallas kernel (feature-major: batch on the 128-lane axis)
# ---------------------------------------------------------------------------
def make_realnvp_kernel(hidden_dtype):
    """Build the kernel with the tanh/MXU chain in `hidden_dtype`.

    hidden_dtype = f32 on v5e (no bf16 VPU/EUP); bf16 on v6e/v7x for ~2x EUP
    throughput.  The coupling math is always f32.
    """

    def kernel(x_ref, w1_ref, b1_ref, w2_ref, b2_ref, w3_ref, b3_ref,
               w4_ref, b4_ref, out_ref):
        # x_ref: (3, TB) f32 ; out_ref: (4, TB) = [z0, z1, log_det, px]
        x0 = x_ref[0:1, :]
        x1 = x_ref[1:2, :]
        x2 = x_ref[2:3, :]

        # x2 is constant across all 4 couplings: hoist its half of the first
        # layer off the serial critical path.
        pre = [x2 * w1_ref[p][:, 1:2] + b1_ref[p] for p in range(NPAIR)]

        def fused_pair(p, a):
            # Fused t/s FCNN pair p:
            #   Linear(2,64) -> tanh -> blkdiag Linear(64,64) -> tanh
            #   -> blkdiag Linear(64,64) -> tanh -> Linear(64,2)
            # Feature-major: h = W @ h_prev + bias, h is (64, TB).
            # K=2 first layer stays on the VPU (outer-product form).
            h = a * w1_ref[p][:, 0:1] + pre[p]                      # (64, TB) f32
            h = jnp.tanh(h.astype(hidden_dtype))                    # hidden dtype
            h = jnp.dot(w2_ref[p], h,
                        preferred_element_type=jnp.float32) + b2_ref[p]
            h = jnp.tanh(h.astype(hidden_dtype))
            h = jnp.dot(w3_ref[p], h,
                        preferred_element_type=jnp.float32) + b3_ref[p]
            h = jnp.tanh(h.astype(hidden_dtype))
            ts = jnp.dot(w4_ref[p], h,
                         preferred_element_type=jnp.float32) + b4_ref[p]
            return ts[0:1, :], ts[1:2, :]                           # t, s (f32)

        # coupling 1: lower = [x0, x2], upper = x1
        t1, s1 = fused_pair(0, x0)
        u1 = t1 + x1 * jnp.exp(s1)
        # coupling 2: upper1 = [u1, x2], lower1 = x0
        t2, s2 = fused_pair(1, u1)
        l1 = t2 + x0 * jnp.exp(s2)
        # coupling 3: lower2 = [l1, x2], upper2 = u1
        t3, s3 = fused_pair(2, l1)
        u2 = t3 + u1 * jnp.exp(s3)
        # coupling 4: upper3 = [u2, x2], lower3 = l1
        t4, s4 = fused_pair(3, u2)
        l3 = t4 + l1 * jnp.exp(s4)

        # z = [l3, u2]; log_det = s1+s2+s3+s4 (each (1,TB))
        ld = s1 + s2 + s3 + s4
        c1 = 1.0 / (2.0 * 3.14159265)
        c2 = -(l3 * l3 + u2 * u2) * 0.5
        # px = exp(log(c1*exp(c2)) + ld) == c1 * exp(c2 + ld)
        px = c1 * jnp.exp(c2 + ld)

        # Direct row stores: live vregs -> VMEM, no (4,TB) concat.
        out_ref[0:1, :] = l3
        out_ref[1:2, :] = u2
        out_ref[2:3, :] = ld
        out_ref[3:4, :] = px

    return kernel


# ---------------------------------------------------------------------------
# Wrapper: transpose to feature-major, pad batch, launch, unpack slab
# ---------------------------------------------------------------------------
def realnvp_forward(x, fused_params, *, tile_b=512, hidden_dtype=jnp.float32):
    n = x.shape[0]
    n_pad = -(-n // tile_b) * tile_b

    xt = x.T.astype(jnp.float32)                  # (3, n) feature-major
    if n_pad != n:
        xt = jnp.pad(xt, ((0, 0), (0, n_pad - n)))

    w1, b1, w2, b2, w3, b3, w4, b4 = fused_params
    # MXU operands are pre-cast once here; first layer + biases stay f32.
    w2 = w2.astype(hidden_dtype)
    w3 = w3.astype(hidden_dtype)
    w4 = w4.astype(hidden_dtype)

    def pspec(a):
        # Constant block index across the grid -> block stays resident in
        # VMEM; Pallas does not re-DMA it on every grid step.
        return pl.BlockSpec(a.shape, lambda i, nd=a.ndim: (0,) * nd)

    out = pl.pallas_call(
        make_realnvp_kernel(hidden_dtype),
        out_shape=jax.ShapeDtypeStruct((4, n_pad), jnp.float32),
        grid=(n_pad // tile_b,),
        in_specs=[
            pl.BlockSpec((DIM, tile_b), lambda i: (0, i)),
            pspec(w1), pspec(b1), pspec(w2), pspec(b2),
            pspec(w3), pspec(b3), pspec(w4), pspec(b4),
        ],
        out_specs=pl.BlockSpec((4, tile_b), lambda i: (0, i)),
        compiler_params=pltpu.CompilerParams(
            dimension_semantics=("parallel",)),
    )(xt, w1, b1, w2, b2, w3, b3, w4, b4)

    out = out[:, :n]
    z = out[0:2, :].T            # (n, 2)
    log_det = out[2, :]          # (n,)
    px = out[3, :]               # (n,)
    return z, log_det, px


# ---------------------------------------------------------------------------
# Raw per-net parameters (PyTorch nn.Linear convention: weight (out, in))
# ---------------------------------------------------------------------------
def init_raw_params(key):
    ks = jax.random.split(key, 8)

    def unif(k, shape, fan_in):
        bound = 1.0 / (fan_in ** 0.5)
        return jax.random.uniform(k, shape, jnp.float32, -bound, bound)

    w1 = unif(ks[0], (NNET, HID, 2), 2)        # Linear(2, 32)
    b1 = unif(ks[1], (NNET, HID), 2)
    w2 = unif(ks[2], (NNET, HID, HID), HID)    # Linear(32, 32)
    b2 = unif(ks[3], (NNET, HID), HID)
    w3 = unif(ks[4], (NNET, HID, HID), HID)    # Linear(32, 32)
    b3 = unif(ks[5], (NNET, HID), HID)
    w4 = unif(ks[6], (NNET, 1, HID), HID)      # Linear(32, 1)
    b4 = unif(ks[7], (NNET, 1), HID)
    return w1, b1, w2, b2, w3, b3, w4, b4


# ---------------------------------------------------------------------------
# Build fused (t_i, s_i) pair parameters for the kernel
# ---------------------------------------------------------------------------
def build_fused_params(raw):
    w1, b1, w2, b2, w3, b3, w4, b4 = raw

    def pair_cat(a):
        return jnp.stack([jnp.concatenate([a[2 * p], a[2 * p + 1]], axis=0)
                          for p in range(NPAIR)])

    def block_diag(a):
        z = jnp.zeros((HID, HID), jnp.float32)
        mats = []
        for p in range(NPAIR):
            top = jnp.concatenate([a[2 * p], z], axis=1)
            bot = jnp.concatenate([z, a[2 * p + 1]], axis=1)
            mats.append(jnp.concatenate([top, bot], axis=0))
        return jnp.stack(mats)                       # (4, 64, 64)

    w1f = pair_cat(w1)                               # (4, 64, 2)
    b1f = pair_cat(b1)[..., None]                    # (4, 64, 1)
    w2f = block_diag(w2)                             # (4, 64, 64)
    b2f = pair_cat(b2)[..., None]                    # (4, 64, 1)
    w3f = block_diag(w3)                             # (4, 64, 64)
    b3f = pair_cat(b3)[..., None]                    # (4, 64, 1)

    z32 = jnp.zeros((1, HID), jnp.float32)
    w4f, b4f = [], []
    for p in range(NPAIR):
        row_t = jnp.concatenate([w4[2 * p], z32], axis=1)       # (1, 64)
        row_s = jnp.concatenate([z32, w4[2 * p + 1]], axis=1)   # (1, 64)
        w4f.append(jnp.concatenate([row_t, row_s], axis=0))     # (2, 64)
        b4f.append(jnp.stack([b4[2 * p], b4[2 * p + 1]], axis=0))  # (2, 1)
    w4f = jnp.stack(w4f)                             # (4, 2, 64)
    b4f = jnp.stack(b4f)                             # (4, 2, 1)
    return w1f, b1f, w2f, b2f, w3f, b3f, w4f, b4f


# ---------------------------------------------------------------------------
# Pure-JAX reference (mirrors the PyTorch forward exactly, batch-major)
# ---------------------------------------------------------------------------
def _fcnn_ref(inp, raw, i):
    w1, b1, w2, b2, w3, b3, w4, b4 = raw
    h = jnp.tanh(inp @ w1[i].T + b1[i])
    h = jnp.tanh(h @ w2[i].T + b2[i])
    h = jnp.tanh(h @ w3[i].T + b3[i])
    return h @ w4[i].T + b4[i]


def realnvp_ref(x, raw):
    x0, x1, x2 = x[:, 0:1], x[:, 1:2], x[:, 2:3]
    lower = jnp.concatenate([x0, x2], 1)
    t1 = _fcnn_ref(lower, raw, 0)
    s1 = _fcnn_ref(lower, raw, 1)
    u1 = t1 + x1 * jnp.exp(s1)
    up1 = jnp.concatenate([u1, x2], 1)
    t2 = _fcnn_ref(up1, raw, 2)
    s2 = _fcnn_ref(up1, raw, 3)
    l1 = t2 + x0 * jnp.exp(s2)
    low2 = jnp.concatenate([l1, x2], 1)
    t3 = _fcnn_ref(low2, raw, 4)
    s3 = _fcnn_ref(low2, raw, 5)
    u2 = t3 + u1 * jnp.exp(s3)
    up3 = jnp.concatenate([u2, x2], 1)
    t4 = _fcnn_ref(up3, raw, 6)
    s4 = _fcnn_ref(up3, raw, 7)
    l3 = t4 + l1 * jnp.exp(s4)
    z = jnp.concatenate([l3, u2], 1)
    ld = jnp.sum(s1 + s2 + s3 + s4, axis=1)
    c1 = 1.0 / (2.0 * 3.14159265)
    pz = c1 * jnp.exp(-jnp.sum(z * z, 1) / 2)
    px = jnp.exp(jnp.log(pz) + ld)
    return z, ld, px


# ---------------------------------------------------------------------------
# Chip gate for the bf16 hidden-chain path (v6e/v7x only; v5e has no bf16
# VPU/EUP, so it keeps the exact f32 path).
# ---------------------------------------------------------------------------
def _bf16_transcendentals_supported():
    try:
        kind = jax.devices()[0].device_kind.lower()
    except Exception:
        return False
    return any(tag in kind for tag in ("v6", "v7", "tpu7"))


if __name__ == "__main__":
    key = jax.random.PRNGKey(0)
    kx, kp = jax.random.split(key)

    batch = 1000                       # not a tile multiple -> exercises padding
    tile_b = 512                       # grid = 2 (even, keeps v7x megacore busy)
    x = jax.random.normal(kx, (batch, DIM), dtype=jnp.float32)

    raw = init_raw_params(kp)
    fused = build_fused_params(raw)
    z_r, ld_r, px_r = realnvp_ref(x, raw)

    # f32 path: exact parity with the reference on every chip generation.
    z, log_det, px = realnvp_forward(x, fused, tile_b=tile_b,
                                     hidden_dtype=jnp.float32)
    jax.block_until_ready((z, log_det, px))
    assert jnp.allclose(z, z_r, atol=1e-5, rtol=1e-4)
    assert jnp.allclose(log_det, ld_r, atol=1e-5, rtol=1e-4)
    assert jnp.allclose(px, px_r, atol=1e-5, rtol=1e-4)

    # bf16 hidden-chain path (v6e/v7x): ~2x EUP tanh throughput and half the
    # activation register footprint; verified with relaxed tolerance.
    if _bf16_transcendentals_supported():
        z_b, ld_b, px_b = realnvp_forward(x, fused, tile_b=tile_b,
                                          hidden_dtype=jnp.bfloat16)
        jax.block_until_ready((z_b, ld_b, px_b))
        assert jnp.allclose(z_b, z_r, atol=5e-2, rtol=1e-1)
        assert jnp.allclose(ld_b, ld_r, atol=5e-2, rtol=1e-1)
        assert jnp.allclose(px_b, px_r, atol=5e-2, rtol=1e-1)

    print("KERNEL_OK")
</pallas_src>

<mosaic_0001>
module attributes {stable_mosaic.version = 11 : i64} {
  func.func @kernel(%arg0: i32, %arg1: memref<3x512xf32, #tpu.memory_space<vmem>>, %arg2: memref<4x64x2xf32, #tpu.memory_space<vmem>>, %arg3: memref<4x64x1xf32, #tpu.memory_space<vmem>>, %arg4: memref<4x64x64xf32, #tpu.memory_space<vmem>>, %arg5: memref<4x64x1xf32, #tpu.memory_space<vmem>>, %arg6: memref<4x64x64xf32, #tpu.memory_space<vmem>>, %arg7: memref<4x64x1xf32, #tpu.memory_space<vmem>>, %arg8: memref<4x2x64xf32, #tpu.memory_space<vmem>>, %arg9: memref<4x2x1xf32, #tpu.memory_space<vmem>>, %arg10: memref<4x512xf32, #tpu.memory_space<vmem>>) attributes {dimension_semantics = [#tpu.dimension_semantics<parallel>], iteration_bounds = array<i64: 2>, scalar_prefetch = 0 : i64, scratch_operands = 0 : i64, tpu.core_type = #tpu.core_type<tc>, window_params = [{transform_indices = @transform_0, window_bounds = array<i64: 3, 512>}, {pipeline_mode = #tpu.pipeline_mode<synchronous>, transform_indices = @transform_1, window_bounds = array<i64: 4, 64, 2>}, {pipeline_mode = #tpu.pipeline_mode<synchronous>, transform_indices = @transform_2, window_bounds = array<i64: 4, 64, 1>}, {pipeline_mode = #tpu.pipeline_mode<synchronous>, transform_indices = @transform_3, window_bounds = array<i64: 4, 64, 64>}, {pipeline_mode = #tpu.pipeline_mode<synchronous>, transform_indices = @transform_4, window_bounds = array<i64: 4, 64, 1>}, {pipeline_mode = #tpu.pipeline_mode<synchronous>, transform_indices = @transform_5, window_bounds = array<i64: 4, 64, 64>}, {pipeline_mode = #tpu.pipeline_mode<synchronous>, transform_indices = @transform_6, window_bounds = array<i64: 4, 64, 1>}, {pipeline_mode = #tpu.pipeline_mode<synchronous>, transform_indices = @transform_7, window_bounds = array<i64: 4, 2, 64>}, {pipeline_mode = #tpu.pipeline_mode<synchronous>, transform_indices = @transform_8, window_bounds = array<i64: 4, 2, 1>}, {transform_indices = @transform_9, window_bounds = array<i64: 4, 512>}]} {
    %c0 = arith.constant 0 : index
    %c0_0 = arith.constant 0 : index
    %0 = vector.load %arg1[%c0, %c0_0] : memref<3x512xf32, #tpu.memory_space<vmem>>, vector<1x512xf32>
    %c1 = arith.constant 1 : index
    %c0_1 = arith.constant 0 : index
    %1 = vector.load %arg1[%c1, %c0_1] : memref<3x512xf32, #tpu.memory_space<vmem>>, vector<1x512xf32>
    %c2 = arith.constant 2 : index
    %c0_2 = arith.constant 0 : index
    %2 = vector.load %arg1[%c2, %c0_2] : memref<3x512xf32, #tpu.memory_space<vmem>>, vector<1x512xf32>
    %c0_3 = arith.constant 0 : index
    %c0_4 = arith.constant 0 : index
    %c0_5 = arith.constant 0 : index
    %3 = vector.load %arg2[%c0_3, %c0_4, %c0_5] : memref<4x64x2xf32, #tpu.memory_space<vmem>>, vector<1x64x2xf32>
    %4 = vector.shape_cast %3 : vector<1x64x2xf32> to vector<64x2xf32>
    %5 = vector.extract_strided_slice %4 {offsets = [0, 1], sizes = [64, 1], strides = [1, 1]} : vector<64x2xf32> to vector<64x1xf32>
    %6 = vector.broadcast %2 : vector<1x512xf32> to vector<64x512xf32>
    %7 = vector.broadcast %5 : vector<64x1xf32> to vector<64x512xf32>
    %8 = arith.mulf %6, %7 : vector<64x512xf32>
    %c0_6 = arith.constant 0 : index
    %c0_7 = arith.constant 0 : index
    %c0_8 = arith.constant 0 : index
    %9 = vector.load %arg3[%c0_6, %c0_7, %c0_8] : memref<4x64x1xf32, #tpu.memory_space<vmem>>, vector<1x64x1xf32>
    %10 = vector.shape_cast %9 : vector<1x64x1xf32> to vector<64x1xf32>
    %11 = vector.broadcast %10 : vector<64x1xf32> to vector<64x512xf32>
    %12 = arith.addf %8, %11 : vector<64x512xf32>
    %c1_9 = arith.constant 1 : index
    %c0_10 = arith.constant 0 : index
    %c0_11 = arith.constant 0 : index
    %13 = vector.load %arg2[%c1_9, %c0_10, %c0_11] : memref<4x64x2xf32, #tpu.memory_space<vmem>>, vector<1x64x2xf32>
    %14 = vector.shape_cast %13 : vector<1x64x2xf32> to vector<64x2xf32>
    %15 = vector.extract_strided_slice %14 {offsets = [0, 1], sizes = [64, 1], strides = [1, 1]} : vector<64x2xf32> to vector<64x1xf32>
    %16 = vector.broadcast %2 : vector<1x512xf32> to vector<64x512xf32>
    %17 = vector.broadcast %15 : vector<64x1xf32> to vector<64x512xf32>
    %18 = arith.mulf %16, %17 : vector<64x512xf32>
    %c1_12 = arith.constant 1 : index
    %c0_13 = arith.constant 0 : index
    %c0_14 = arith.constant 0 : index
    %19 = vector.load %arg3[%c1_12, %c0_13, %c0_14] : memref<4x64x1xf32, #tpu.memory_space<vmem>>, vector<1x64x1xf32>
    %20 = vector.shape_cast %19 : vector<1x64x1xf32> to vector<64x1xf32>
    %21 = vector.broadcast %20 : vector<64x1xf32> to vector<64x512xf32>
    %22 = arith.addf %18, %21 : vector<64x512xf32>
    %c2_15 = arith.constant 2 : index
    %c0_16 = arith.constant 0 : index
    %c0_17 = arith.constant 0 : index
    %23 = vector.load %arg2[%c2_15, %c0_16, %c0_17] : memref<4x64x2xf32, #tpu.memory_space<vmem>>, vector<1x64x2xf32>
    %24 = vector.shape_cast %23 : vector<1x64x2xf32> to vector<64x2xf32>
    %25 = vector.extract_strided_slice %24 {offsets = [0, 1], sizes = [64, 1], strides = [1, 1]} : vector<64x2xf32> to vector<64x1xf32>
    %26 = vector.broadcast %2 : vector<1x512xf32> to vector<64x512xf32>
    %27 = vector.broadcast %25 : vector<64x1xf32> to vector<64x512xf32>
    %28 = arith.mulf %26, %27 : vector<64x512xf32>
    %c2_18 = arith.constant 2 : index
    %c0_19 = arith.constant 0 : index
    %c0_20 = arith.constant 0 : index
    %29 = vector.load %arg3[%c2_18, %c0_19, %c0_20] : memref<4x64x1xf32, #tpu.memory_space<vmem>>, vector<1x64x1xf32>
    %30 = vector.shape_cast %29 : vector<1x64x1xf32> to vector<64x1xf32>
    %31 = vector.broadcast %30 : vector<64x1xf32> to vector<64x512xf32>
    %32 = arith.addf %28, %31 : vector<64x512xf32>
    %c3 = arith.constant 3 : index
    %c0_21 = arith.constant 0 : index
    %c0_22 = arith.constant 0 : index
    %33 = vector.load %arg2[%c3, %c0_21, %c0_22] : memref<4x64x2xf32, #tpu.memory_space<vmem>>, vector<1x64x2xf32>
    %34 = vector.shape_cast %33 : vector<1x64x2xf32> to vector<64x2xf32>
    %35 = vector.extract_strided_slice %34 {offsets = [0, 1], sizes = [64, 1], strides = [1, 1]} : vector<64x2xf32> to vector<64x1xf32>
    %36 = vector.broadcast %2 : vector<1x512xf32> to vector<64x512xf32>
    %37 = vector.broadcast %35 : vector<64x1xf32> to vector<64x512xf32>
    %38 = arith.mulf %36, %37 : vector<64x512xf32>
    %c3_23 = arith.constant 3 : index
    %c0_24 = arith.constant 0 : index
    %c0_25 = arith.constant 0 : index
    %39 = vector.load %arg3[%c3_23, %c0_24, %c0_25] : memref<4x64x1xf32, #tpu.memory_space<vmem>>, vector<1x64x1xf32>
    %40 = vector.shape_cast %39 : vector<1x64x1xf32> to vector<64x1xf32>
    %41 = vector.broadcast %40 : vector<64x1xf32> to vector<64x512xf32>
    %42 = arith.addf %38, %41 : vector<64x512xf32>
    %c0_26 = arith.constant 0 : index
    %c0_27 = arith.constant 0 : index
    %c0_28 = arith.constant 0 : index
    %43 = vector.load %arg2[%c0_26, %c0_27, %c0_28] : memref<4x64x2xf32, #tpu.memory_space<vmem>>, vector<1x64x2xf32>
    %44 = vector.shape_cast %43 : vector<1x64x2xf32> to vector<64x2xf32>
    %45 = vector.extract_strided_slice %44 {offsets = [0, 0], sizes = [64, 1], strides = [1, 1]} : vector<64x2xf32> to vector<64x1xf32>
    %46 = vector.broadcast %0 : vector<1x512xf32> to vector<64x512xf32>
    %47 = vector.broadcast %45 : vector<64x1xf32> to vector<64x512xf32>
    %48 = arith.mulf %46, %47 : vector<64x512xf32>
    %49 = arith.addf %48, %12 : vector<64x512xf32>
    %50 = math.tanh %49 : vector<64x512xf32>
    %c0_29 = arith.constant 0 : index
    %c0_30 = arith.constant 0 : index
    %c0_31 = arith.constant 0 : index
    %51 = vector.load %arg4[%c0_29, %c0_30, %c0_31] : memref<4x64x64xf32, #tpu.memory_space<vmem>>, vector<1x64x64xf32>
    %52 = vector.shape_cast %51 : vector<1x64x64xf32> to vector<64x64xf32>
    %cst = arith.constant dense<0.000000e+00> : vector<64x512xf32>
    %53 = tpu.matmul %52, %50, %cst {dimension_numbers = #tpu.dot_dimension_numbers<[1], [0], [0], [1], [0, 0, 1, 1], [], []>} : vector<64x64xf32>, vector<64x512xf32>, vector<64x512xf32> -> vector<64x512xf32>
    %c0_32 = arith.constant 0 : index
    %c0_33 = arith.constant 0 : index
    %c0_34 = arith.constant 0 : index
    %54 = vector.load %arg5[%c0_32, %c0_33, %c0_34] : memref<4x64x1xf32, #tpu.memory_space<vmem>>, vector<1x64x1xf32>
    %55 = vector.shape_cast %54 : vector<1x64x1xf32> to vector<64x1xf32>
    %56 = vector.broadcast %55 : vector<64x1xf32> to vector<64x512xf32>
    %57 = arith.addf %53, %56 : vector<64x512xf32>
    %58 = math.tanh %57 : vector<64x512xf32>
    %c0_35 = arith.constant 0 : index
    %c0_36 = arith.constant 0 : index
    %c0_37 = arith.constant 0 : index
    %59 = vector.load %arg6[%c0_35, %c0_36, %c0_37] : memref<4x64x64xf32, #tpu.memory_space<vmem>>, vector<1x64x64xf32>
    %60 = vector.shape_cast %59 : vector<1x64x64xf32> to vector<64x64xf32>
    %cst_38 = arith.constant dense<0.000000e+00> : vector<64x512xf32>
    %61 = tpu.matmul %60, %58, %cst_38 {dimension_numbers = #tpu.dot_dimension_numbers<[1], [0], [0], [1], [0, 0, 1, 1], [], []>} : vector<64x64xf32>, vector<64x512xf32>, vector<64x512xf32> -> vector<64x512xf32>
    %c0_39 = arith.constant 0 : index
    %c0_40 = arith.constant 0 : index
    %c0_41 = arith.constant 0 : index
    %62 = vector.load %arg7[%c0_39, %c0_40, %c0_41] : memref<4x64x1xf32, #tpu.memory_space<vmem>>, vector<1x64x1xf32>
    %63 = vector.shape_cast %62 : vector<1x64x1xf32> to vector<64x1xf32>
    %64 = vector.broadcast %63 : vector<64x1xf32> to vector<64x512xf32>
    %65 = arith.addf %61, %64 : vector<64x512xf32>
    %66 = math.tanh %65 : vector<64x512xf32>
    %c0_42 = arith.constant 0 : index
    %c0_43 = arith.constant 0 : index
    %c0_44 = arith.constant 0 : index
    %67 = vector.load %arg8[%c0_42, %c0_43, %c0_44] : memref<4x2x64xf32, #tpu.memory_space<vmem>>, vector<1x2x64xf32>
    %68 = vector.shape_cast %67 : vector<1x2x64xf32> to vector<2x64xf32>
    %cst_45 = arith.constant dense<0.000000e+00> : vector<2x512xf32>
    %69 = tpu.matmul %68, %66, %cst_45 {dimension_numbers = #tpu.dot_dimension_numbers<[1], [0], [0], [1], [0, 0, 1, 1], [], []>} : vector<2x64xf32>, vector<64x512xf32>, vector<2x512xf32> -> vector<2x512xf32>
    %c0_46 = arith.constant 0 : index
    %c0_47 = arith.constant 0 : index
    %c0_48 = arith.constant 0 : index
    %70 = vector.load %arg9[%c0_46, %c0_47, %c0_48] : memref<4x2x1xf32, #tpu.memory_space<vmem>>, vector<1x2x1xf32>
    %71 = vector.shape_cast %70 : vector<1x2x1xf32> to vector<2x1xf32>
    %72 = vector.broadcast %71 : vector<2x1xf32> to vector<2x512xf32>
    %73 = arith.addf %69, %72 : vector<2x512xf32>
    %74 = vector.extract_strided_slice %73 {offsets = [0, 0], sizes = [1, 512], strides = [1, 1]} : vector<2x512xf32> to vector<1x512xf32>
    %75 = vector.extract_strided_slice %73 {offsets = [1, 0], sizes = [1, 512], strides = [1, 1]} : vector<2x512xf32> to vector<1x512xf32>
    %76 = math.exp %75 : vector<1x512xf32>
    %77 = arith.mulf %1, %76 : vector<1x512xf32>
    %78 = arith.addf %74, %77 : vector<1x512xf32>
    %c1_49 = arith.constant 1 : index
    %c0_50 = arith.constant 0 : index
    %c0_51 = arith.constant 0 : index
    %79 = vector.load %arg2[%c1_49, %c0_50, %c0_51] : memref<4x64x2xf32, #tpu.memory_space<vmem>>, vector<1x64x2xf32>
    %80 = vector.shape_cast %79 : vector<1x64x2xf32> to vector<64x2xf32>
    %81 = vector.extract_strided_slice %80 {offsets = [0, 0], sizes = [64, 1], strides = [1, 1]} : vector<64x2xf32> to vector<64x1xf32>
    %82 = vector.broadcast %78 : vector<1x512xf32> to vector<64x512xf32>
    %83 = vector.broadcast %81 : vector<64x1xf32> to vector<64x512xf32>
    %84 = arith.mulf %82, %83 : vector<64x512xf32>
    %85 = arith.addf %84, %22 : vector<64x512xf32>
    %86 = math.tanh %85 : vector<64x512xf32>
    %c1_52 = arith.constant 1 : index
    %c0_53 = arith.constant 0 : index
    %c0_54 = arith.constant 0 : index
    %87 = vector.load %arg4[%c1_52, %c0_53, %c0_54] : memref<4x64x64xf32, #tpu.memory_space<vmem>>, vector<1x64x64xf32>
    %88 = vector.shape_cast %87 : vector<1x64x64xf32> to vector<64x64xf32>
    %cst_55 = arith.constant dense<0.000000e+00> : vector<64x512xf32>
    %89 = tpu.matmul %88, %86, %cst_55 {dimension_numbers = #tpu.dot_dimension_numbers<[1], [0], [0], [1], [0, 0, 1, 1], [], []>} : vector<64x64xf32>, vector<64x512xf32>, vector<64x512xf32> -> vector<64x512xf32>
    %c1_56 = arith.constant 1 : index
    %c0_57 = arith.constant 0 : index
    %c0_58 = arith.constant 0 : index
    %90 = vector.load %arg5[%c1_56, %c0_57, %c0_58] : memref<4x64x1xf32, #tpu.memory_space<vmem>>, vector<1x64x1xf32>
    %91 = vector.shape_cast %90 : vector<1x64x1xf32> to vector<64x1xf32>
    %92 = vector.broadcast %91 : vector<64x1xf32> to vector<64x512xf32>
    %93 = arith.addf %89, %92 : vector<64x512xf32>
    %94 = math.tanh %93 : vector<64x512xf32>
    %c1_59 = arith.constant 1 : index
    %c0_60 = arith.constant 0 : index
    %c0_61 = arith.constant 0 : index
    %95 = vector.load %arg6[%c1_59, %c0_60, %c0_61] : memref<4x64x64xf32, #tpu.memory_space<vmem>>, vector<1x64x64xf32>
    %96 = vector.shape_cast %95 : vector<1x64x64xf32> to vector<64x64xf32>
    %cst_62 = arith.constant dense<0.000000e+00> : vector<64x512xf32>
    %97 = tpu.matmul %96, %94, %cst_62 {dimension_numbers = #tpu.dot_dimension_numbers<[1], [0], [0], [1], [0, 0, 1, 1], [], []>} : vector<64x64xf32>, vector<64x512xf32>, vector<64x512xf32> -> vector<64x512xf32>
    %c1_63 = arith.constant 1 : index
    %c0_64 = arith.constant 0 : index
    %c0_65 = arith.constant 0 : index
    %98 = vector.load %arg7[%c1_63, %c0_64, %c0_65] : memref<4x64x1xf32, #tpu.memory_space<vmem>>, vector<1x64x1xf32>
    %99 = vector.shape_cast %98 : vector<1x64x1xf32> to vector<64x1xf32>
    %100 = vector.broadcast %99 : vector<64x1xf32> to vector<64x512xf32>
    %101 = arith.addf %97, %100 : vector<64x512xf32>
    %102 = math.tanh %101 : vector<64x512xf32>
    %c1_66 = arith.constant 1 : index
    %c0_67 = arith.constant 0 : index
    %c0_68 = arith.constant 0 : index
    %103 = vector.load %arg8[%c1_66, %c0_67, %c0_68] : memref<4x2x64xf32, #tpu.memory_space<vmem>>, vector<1x2x64xf32>
    %104 = vector.shape_cast %103 : vector<1x2x64xf32> to vector<2x64xf32>
    %cst_69 = arith.constant dense<0.000000e+00> : vector<2x512xf32>
    %105 = tpu.matmul %104, %102, %cst_69 {dimension_numbers = #tpu.dot_dimension_numbers<[1], [0], [0], [1], [0, 0, 1, 1], [], []>} : vector<2x64xf32>, vector<64x512xf32>, vector<2x512xf32> -> vector<2x512xf32>
    %c1_70 = arith.constant 1 : index
    %c0_71 = arith.constant 0 : index
    %c0_72 = arith.constant 0 : index
    %106 = vector.load %arg9[%c1_70, %c0_71, %c0_72] : memref<4x2x1xf32, #tpu.memory_space<vmem>>, vector<1x2x1xf32>
    %107 = vector.shape_cast %106 : vector<1x2x1xf32> to vector<2x1xf32>
    %108 = vector.broadcast %107 : vector<2x1xf32> to vector<2x512xf32>
    %109 = arith.addf %105, %108 : vector<2x512xf32>
    %110 = vector.extract_strided_slice %109 {offsets = [0, 0], sizes = [1, 512], strides = [1, 1]} : vector<2x512xf32> to vector<1x512xf32>
    %111 = vector.extract_strided_slice %109 {offsets = [1, 0], sizes = [1, 512], strides = [1, 1]} : vector<2x512xf32> to vector<1x512xf32>
    %112 = math.exp %111 : vector<1x512xf32>
    %113 = arith.mulf %0, %112 : vector<1x512xf32>
    %114 = arith.addf %110, %113 : vector<1x512xf32>
    %c2_73 = arith.constant 2 : index
    %c0_74 = arith.constant 0 : index
    %c0_75 = arith.constant 0 : index
    %115 = vector.load %arg2[%c2_73, %c0_74, %c0_75] : memref<4x64x2xf32, #tpu.memory_space<vmem>>, vector<1x64x2xf32>
    %116 = vector.shape_cast %115 : vector<1x64x2xf32> to vector<64x2xf32>
    %117 = vector.extract_strided_slice %116 {offsets = [0, 0], sizes = [64, 1], strides = [1, 1]} : vector<64x2xf32> to vector<64x1xf32>
    %118 = vector.broadcast %114 : vector<1x512xf32> to vector<64x512xf32>
    %119 = vector.broadcast %117 : vector<64x1xf32> to vector<64x512xf32>
    %120 = arith.mulf %118, %119 : vector<64x512xf32>
    %121 = arith.addf %120, %32 : vector<64x512xf32>
    %122 = math.tanh %121 : vector<64x512xf32>
    %c2_76 = arith.constant 2 : index
    %c0_77 = arith.constant 0 : index
    %c0_78 = arith.constant 0 : index
    %123 = vector.load %arg4[%c2_76, %c0_77, %c0_78] : memref<4x64x64xf32, #tpu.memory_space<vmem>>, vector<1x64x64xf32>
    %124 = vector.shape_cast %123 : vector<1x64x64xf32> to vector<64x64xf32>
    %cst_79 = arith.constant dense<0.000000e+00> : vector<64x512xf32>
    %125 = tpu.matmul %124, %122, %cst_79 {dimension_numbers = #tpu.dot_dimension_numbers<[1], [0], [0], [1], [0, 0, 1, 1], [], []>} : vector<64x64xf32>, vector<64x512xf32>, vector<64x512xf32> -> vector<64x512xf32>
    %c2_80 = arith.constant 2 : index
    %c0_81 = arith.constant 0 : index
    %c0_82 = arith.constant 0 : index
    %126 = vector.load %arg5[%c2_80, %c0_81, %c0_82] : memref<4x64x1xf32, #tpu.memory_space<vmem>>, vector<1x64x1xf32>
    %127 = vector.shape_cast %126 : vector<1x64x1xf32> to vector<64x1xf32>
    %128 = vector.broadcast %127 : vector<64x1xf32> to vector<64x512xf32>
    %129 = arith.addf %125, %128 : vector<64x512xf32>
    %130 = math.tanh %129 : vector<64x512xf32>
    %c2_83 = arith.constant 2 : index
    %c0_84 = arith.constant 0 : index
    %c0_85 = arith.constant 0 : index
    %131 = vector.load %arg6[%c2_83, %c0_84, %c0_85] : memref<4x64x64xf32, #tpu.memory_space<vmem>>, vector<1x64x64xf32>
    %132 = vector.shape_cast %131 : vector<1x64x64xf32> to vector<64x64xf32>
    %cst_86 = arith.constant dense<0.000000e+00> : vector<64x512xf32>
    %133 = tpu.matmul %132, %130, %cst_86 {dimension_numbers = #tpu.dot_dimension_numbers<[1], [0], [0], [1], [0, 0, 1, 1], [], []>} : vector<64x64xf32>, vector<64x512xf32>, vector<64x512xf32> -> vector<64x512xf32>
    %c2_87 = arith.constant 2 : index
    %c0_88 = arith.constant 0 : index
    %c0_89 = arith.constant 0 : index
    %134 = vector.load %arg7[%c2_87, %c0_88, %c0_89] : memref<4x64x1xf32, #tpu.memory_space<vmem>>, vector<1x64x1xf32>
    %135 = vector.shape_cast %134 : vector<1x64x1xf32> to vector<64x1xf32>
    %136 = vector.broadcast %135 : vector<64x1xf32> to vector<64x512xf32>
    %137 = arith.addf %133, %136 : vector<64x512xf32>
    %138 = math.tanh %137 : vector<64x512xf32>
    %c2_90 = arith.constant 2 : index
    %c0_91 = arith.constant 0 : index
    %c0_92 = arith.constant 0 : index
    %139 = vector.load %arg8[%c2_90, %c0_91, %c0_92] : memref<4x2x64xf32, #tpu.memory_space<vmem>>, vector<1x2x64xf32>
    %140 = vector.shape_cast %139 : vector<1x2x64xf32> to vector<2x64xf32>
    %cst_93 = arith.constant dense<0.000000e+00> : vector<2x512xf32>
    %141 = tpu.matmul %140, %138, %cst_93 {dimension_numbers = #tpu.dot_dimension_numbers<[1], [0], [0], [1], [0, 0, 1, 1], [], []>} : vector<2x64xf32>, vector<64x512xf32>, vector<2x512xf32> -> vector<2x512xf32>
    %c2_94 = arith.constant 2 : index
    %c0_95 = arith.constant 0 : index
    %c0_96 = arith.constant 0 : index
    %142 = vector.load %arg9[%c2_94, %c0_95, %c0_96] : memref<4x2x1xf32, #tpu.memory_space<vmem>>, vector<1x2x1xf32>
    %143 = vector.shape_cast %142 : vector<1x2x1xf32> to vector<2x1xf32>
    %144 = vector.broadcast %143 : vector<2x1xf32> to vector<2x512xf32>
    %145 = arith.addf %141, %144 : vector<2x512xf32>
    %146 = vector.extract_strided_slice %145 {offsets = [0, 0], sizes = [1, 512], strides = [1, 1]} : vector<2x512xf32> to vector<1x512xf32>
    %147 = vector.extract_strided_slice %145 {offsets = [1, 0], sizes = [1, 512], strides = [1, 1]} : vector<2x512xf32> to vector<1x512xf32>
    %148 = math.exp %147 : vector<1x512xf32>
    %149 = arith.mulf %78, %148 : vector<1x512xf32>
    %150 = arith.addf %146, %149 : vector<1x512xf32>
    %c3_97 = arith.constant 3 : index
    %c0_98 = arith.constant 0 : index
    %c0_99 = arith.constant 0 : index
    %151 = vector.load %arg2[%c3_97, %c0_98, %c0_99] : memref<4x64x2xf32, #tpu.memory_space<vmem>>, vector<1x64x2xf32>
    %152 = vector.shape_cast %151 : vector<1x64x2xf32> to vector<64x2xf32>
    %153 = vector.extract_strided_slice %152 {offsets = [0, 0], sizes = [64, 1], strides = [1, 1]} : vector<64x2xf32> to vector<64x1xf32>
    %154 = vector.broadcast %150 : vector<1x512xf32> to vector<64x512xf32>
    %155 = vector.broadcast %153 : vector<64x1xf32> to vector<64x512xf32>
    %156 = arith.mulf %154, %155 : vector<64x512xf32>
    %157 = arith.addf %156, %42 : vector<64x512xf32>
    %158 = math.tanh %157 : vector<64x512xf32>
    %c3_100 = arith.constant 3 : index
    %c0_101 = arith.constant 0 : index
    %c0_102 = arith.constant 0 : index
    %159 = vector.load %arg4[%c3_100, %c0_101, %c0_102] : memref<4x64x64xf32, #tpu.memory_space<vmem>>, vector<1x64x64xf32>
    %160 = vector.shape_cast %159 : vector<1x64x64xf32> to vector<64x64xf32>
    %cst_103 = arith.constant dense<0.000000e+00> : vector<64x512xf32>
    %161 = tpu.matmul %160, %158, %cst_103 {dimension_numbers = #tpu.dot_dimension_numbers<[1], [0], [0], [1], [0, 0, 1, 1], [], []>} : vector<64x64xf32>, vector<64x512xf32>, vector<64x512xf32> -> vector<64x512xf32>
    %c3_104 = arith.constant 3 : index
    %c0_105 = arith.constant 0 : index
    %c0_106 = arith.constant 0 : index
    %162 = vector.load %arg5[%c3_104, %c0_105, %c0_106] : memref<4x64x1xf32, #tpu.memory_space<vmem>>, vector<1x64x1xf32>
    %163 = vector.shape_cast %162 : vector<1x64x1xf32> to vector<64x1xf32>
    %164 = vector.broadcast %163 : vector<64x1xf32> to vector<64x512xf32>
    %165 = arith.addf %161, %164 : vector<64x512xf32>
    %166 = math.tanh %165 : vector<64x512xf32>
    %c3_107 = arith.constant 3 : index
    %c0_108 = arith.constant 0 : index
    %c0_109 = arith.constant 0 : index
    %167 = vector.load %arg6[%c3_107, %c0_108, %c0_109] : memref<4x64x64xf32, #tpu.memory_space<vmem>>, vector<1x64x64xf32>
    %168 = vector.shape_cast %167 : vector<1x64x64xf32> to vector<64x64xf32>
    %cst_110 = arith.constant dense<0.000000e+00> : vector<64x512xf32>
    %169 = tpu.matmul %168, %166, %cst_110 {dimension_numbers = #tpu.dot_dimension_numbers<[1], [0], [0], [1], [0, 0, 1, 1], [], []>} : vector<64x64xf32>, vector<64x512xf32>, vector<64x512xf32> -> vector<64x512xf32>
    %c3_111 = arith.constant 3 : index
    %c0_112 = arith.constant 0 : index
    %c0_113 = arith.constant 0 : index
    %170 = vector.load %arg7[%c3_111, %c0_112, %c0_113] : memref<4x64x1xf32, #tpu.memory_space<vmem>>, vector<1x64x1xf32>
    %171 = vector.shape_cast %170 : vector<1x64x1xf32> to vector<64x1xf32>
    %172 = vector.broadcast %171 : vector<64x1xf32> to vector<64x512xf32>
    %173 = arith.addf %169, %172 : vector<64x512xf32>
    %174 = math.tanh %173 : vector<64x512xf32>
    %c3_114 = arith.constant 3 : index
    %c0_115 = arith.constant 0 : index
    %c0_116 = arith.constant 0 : index
    %175 = vector.load %arg8[%c3_114, %c0_115, %c0_116] : memref<4x2x64xf32, #tpu.memory_space<vmem>>, vector<1x2x64xf32>
    %176 = vector.shape_cast %175 : vector<1x2x64xf32> to vector<2x64xf32>
    %cst_117 = arith.constant dense<0.000000e+00> : vector<2x512xf32>
    %177 = tpu.matmul %176, %174, %cst_117 {dimension_numbers = #tpu.dot_dimension_numbers<[1], [0], [0], [1], [0, 0, 1, 1], [], []>} : vector<2x64xf32>, vector<64x512xf32>, vector<2x512xf32> -> vector<2x512xf32>
    %c3_118 = arith.constant 3 : index
    %c0_119 = arith.constant 0 : index
    %c0_120 = arith.constant 0 : index
    %178 = vector.load %arg9[%c3_118, %c0_119, %c0_120] : memref<4x2x1xf32, #tpu.memory_space<vmem>>, vector<1x2x1xf32>
    %179 = vector.shape_cast %178 : vector<1x2x1xf32> to vector<2x1xf32>
    %180 = vector.broadcast %179 : vector<2x1xf32> to vector<2x512xf32>
    %181 = arith.addf %177, %180 : vector<2x512xf32>
    %182 = vector.extract_strided_slice %181 {offsets = [0, 0], sizes = [1, 512], strides = [1, 1]} : vector<2x512xf32> to vector<1x512xf32>
    %183 = vector.extract_strided_slice %181 {offsets = [1, 0], sizes = [1, 512], strides = [1, 1]} : vector<2x512xf32> to vector<1x512xf32>
    %184 = math.exp %183 : vector<1x512xf32>
    %185 = arith.mulf %114, %184 : vector<1x512xf32>
    %186 = arith.addf %182, %185 : vector<1x512xf32>
    %187 = arith.addf %75, %111 : vector<1x512xf32>
    %188 = arith.addf %187, %147 : vector<1x512xf32>
    %189 = arith.addf %188, %183 : vector<1x512xf32>
    %190 = arith.mulf %186, %186 : vector<1x512xf32>
    %191 = arith.mulf %150, %150 : vector<1x512xf32>
    %192 = arith.addf %190, %191 : vector<1x512xf32>
    %cst_121 = arith.constant 0.000000e+00 : f32
    %193 = vector.broadcast %cst_121 : f32 to vector<1x512xf32>
    %194 = arith.subf %193, %192 : vector<1x512xf32>
    %cst_122 = arith.constant 5.000000e-01 : f32
    %195 = vector.broadcast %cst_122 : f32 to vector<1x512xf32>
    %196 = arith.mulf %194, %195 : vector<1x512xf32>
    %197 = arith.addf %196, %189 : vector<1x512xf32>
    %198 = math.exp %197 : vector<1x512xf32>
    %cst_123 = arith.constant 0.159154937 : f32
    %199 = vector.broadcast %cst_123 : f32 to vector<1x512xf32>
    %200 = arith.mulf %199, %198 : vector<1x512xf32>
    %c0_124 = arith.constant 0 : index
    %c0_125 = arith.constant 0 : index
    %201 = vector.load %arg10[%c0_124, %c0_125] : memref<4x512xf32, #tpu.memory_space<vmem>>, vector<1x512xf32>
    tpu.vector_store %arg10[%c0_124, %c0_125], %186 {strides = array<i32>} : memref<4x512xf32, #tpu.memory_space<vmem>>, vector<1x512xf32>,
    %c1_126 = arith.constant 1 : index
    %c0_127 = arith.constant 0 : index
    %202 = vector.load %arg10[%c1_126, %c0_127] : memref<4x512xf32, #tpu.memory_space<vmem>>, vector<1x512xf32>
    tpu.vector_store %arg10[%c1_126, %c0_127], %150 {strides = array<i32>} : memref<4x512xf32, #tpu.memory_space<vmem>>, vector<1x512xf32>,
    %c2_128 = arith.constant 2 : index
    %c0_129 = arith.constant 0 : index
    %203 = vector.load %arg10[%c2_128, %c0_129] : memref<4x512xf32, #tpu.memory_space<vmem>>, vector<1x512xf32>
    tpu.vector_store %arg10[%c2_128, %c0_129], %189 {strides = array<i32>} : memref<4x512xf32, #tpu.memory_space<vmem>>, vector<1x512xf32>,
    %c3_130 = arith.constant 3 : index
    %c0_131 = arith.constant 0 : index
    %204 = vector.load %arg10[%c3_130, %c0_131] : memref<4x512xf32, #tpu.memory_space<vmem>>, vector<1x512xf32>
    tpu.vector_store %arg10[%c3_130, %c0_131], %200 {strides = array<i32>} : memref<4x512xf32, #tpu.memory_space<vmem>>, vector<1x512xf32>,
    return
  }
  func.func @transform_0(%arg0: i32) -> (i32, i32) {
    %c0_i32 = arith.constant 0 : i32
    %c0_i32_0 = arith.constant 0 : i32
    return %c0_i32, %arg0 : i32, i32
  }
  func.func @transform_1(%arg0: i32) -> (i32, i32, i32) {
    %c0_i32 = arith.constant 0 : i32
    %c0_i32_0 = arith.constant 0 : i32
    %c0_i32_1 = arith.constant 0 : i32
    %c0_i32_2 = arith.constant 0 : i32
    return %c0_i32, %c0_i32_0, %c0_i32_1 : i32, i32, i32
  }
  func.func @transform_2(%arg0: i32) -> (i32, i32, i32) {
    %c0_i32 = arith.constant 0 : i32
    %c0_i32_0 = arith.constant 0 : i32
    %c0_i32_1 = arith.constant 0 : i32
    %c0_i32_2 = arith.constant 0 : i32
    return %c0_i32, %c0_i32_0, %c0_i32_1 : i32, i32, i32
  }
  func.func @transform_3(%arg0: i32) -> (i32, i32, i32) {
    %c0_i32 = arith.constant 0 : i32
    %c0_i32_0 = arith.constant 0 : i32
    %c0_i32_1 = arith.constant 0 : i32
    %c0_i32_2 = arith.constant 0 : i32
    return %c0_i32, %c0_i32_0, %c0_i32_1 : i32, i32, i32
  }
  func.func @transform_4(%arg0: i32) -> (i32, i32, i32) {
    %c0_i32 = arith.constant 0 : i32
    %c0_i32_0 = arith.constant 0 : i32
    %c0_i32_1 = arith.constant 0 : i32
    %c0_i32_2 = arith.constant 0 : i32
    return %c0_i32, %c0_i32_0, %c0_i32_1 : i32, i32, i32
  }
  func.func @transform_5(%arg0: i32) -> (i32, i32, i32) {
    %c0_i32 = arith.constant 0 : i32
    %c0_i32_0 = arith.constant 0 : i32
    %c0_i32_1 = arith.constant 0 : i32
    %c0_i32_2 = arith.constant 0 : i32
    return %c0_i32, %c0_i32_0, %c0_i32_1 : i32, i32, i32
  }
  func.func @transform_6(%arg0: i32) -> (i32, i32, i32) {
    %c0_i32 = arith.constant 0 : i32
    %c0_i32_0 = arith.constant 0 : i32
    %c0_i32_1 = arith.constant 0 : i32
    %c0_i32_2 = arith.constant 0 : i32
    return %c0_i32, %c0_i32_0, %c0_i32_1 : i32, i32, i32
  }
  func.func @transform_7(%arg0: i32) -> (i32, i32, i32) {
    %c0_i32 = arith.constant 0 : i32
    %c0_i32_0 = arith.constant 0 : i32
    %c0_i32_1 = arith.constant 0 : i32
    %c0_i32_2 = arith.constant 0 : i32
    return %c0_i32, %c0_i32_0, %c0_i32_1 : i32, i32, i32
  }
  func.func @transform_8(%arg0: i32) -> (i32, i32, i32) {
    %c0_i32 = arith.constant 0 : i32
    %c0_i32_0 = arith.constant 0 : i32
    %c0_i32_1 = arith.constant 0 : i32
    %c0_i32_2 = arith.constant 0 : i32
    return %c0_i32, %c0_i32_0, %c0_i32_1 : i32, i32, i32
  }
  func.func @transform_9(%arg0: i32) -> (i32, i32) {
    %c0_i32 = arith.constant 0 : i32
    %c0_i32_0 = arith.constant 0 : i32
    return %c0_i32, %arg0 : i32, i32
  }
}

</mosaic_0001>

<bundles_post_ra>
// kernel: tpu_custom_call.1
= control target key start
LH: loop header
LB: loop body
LE: loop exit
PB: predicated region body
PF: predicated region fallthrough
CT: control target
= control target key end

     0   :  { %14 = vsyncpa [#allocation3], 0  ;;  %s9068_s0 = inlined_call_operand.vmem [shape: f32[3,1024], index: 0, kind: input, shape index: {}]   ;;  %s9069_s1 = inlined_call_operand.vmem [shape: f32[4,64,2], index: 1, kind: input, shape index: {}]   ;;  %s9070_s2 = inlined_call_operand.vmem [shape: f32[4,64,1], index: 2, kind: input, shape index: {}]   ;;  %s9071_s3 = inlined_call_operand.vmem [shape: f32[4,64,64], index: 3, kind: input, shape index: {}]   ;;  %s9072_s4 = inlined_call_operand.vmem [shape: f32[4,64,1], index: 4, kind: input, shape index: {}]   ;;  %s9073_s5 = inlined_call_operand.vmem [shape: f32[4,64,64], index: 5, kind: input, shape index: {}]   ;;  %s9074_s6 = inlined_call_operand.vmem [shape: f32[4,64,1], index: 6, kind: input, shape index: {}]   ;;  %s9075_s7 = inlined_call_operand.vmem [shape: f32[4,2,64], index: 7, kind: input, shape index: {}]   ;;  %s9076_s8 = inlined_call_operand.vmem [shape: f32[4,2,1], index: 8, kind: input, shape index: {}]   ;;  %s9077_s9 = inlined_call_operand.hbm [shape: f32[4,1024], index: 9, kind: output, shape index: {}]  }
   0x1   :  { %16 = vsyncpa [#allocation3 + $0x1], 0  ;;  %s7055_s30 = smov 0   ;;  %s7057_s10 = smov 0  }
   0x2   :  { %s7059_s11 = smov 0   ;;  %s7061_s12 = smov 0  }
   0x3 LB: > { %s7076_s13 = sadd.s32 4294967295, %s6998_s12   ;;  %s5357_s14 = sadd.s32 4294967294, %s6998_s12   ;;  %s6998_s12 = sphi %s7061_s12, %s9183_s12   ;;  %s6994_s11 = sphi %s7059_s11, %s9182_s11   ;;  %s6990_s10 = sphi %s7057_s10, %s9181_s10   ;;  %s6986_s30 = sphi %s7055_s30, %s9180_s30  }
   0x4   : > { %s7080_s15 = sadd.s32 1, %s6998_s12   ;;  %s223_s16 = sadd.s32 1, %s6994_s11 }
   0x5   : > { %s220_s17 = ssub.s32 %s6998_s12, %s7080_s15  ;;  %p233_p0 = scmp.ne.s32.totalorder %s6994_s11, %s6990_s10 }
   0x6   : > { %p221_p1 = scmp.eq.s32.totalorder %s220_s17, 0  ;;  %p234_p2 = scmp.eq.s32.totalorder %s7076_s13, 1 }
   0x7   : > { %p239_p3 = scmp.ne.s32.totalorder %s6990_s10, %s6986_s30  ;;  %p240_p4 = scmp.eq.s32.totalorder %s5357_s14, 1 }
   0x8   : > { %s7091_s18 = scalar_select %p221_p1, %s6994_s11, %s223_s16  }
   0x9   : > { %p7093_p5 = por %p234_p2, %p233_p0  ;;  %p7097_p6 = por %p240_p4, %p239_p3 }
   0xa   : > { %p5360_p7 = scmp.ge.s32.totalorder %s6998_s12, 1  ;;  %p291_p8 = scmp.lt.s32.totalorder %s6998_s12, 3 }
   0xc   : > { %p292_p9 = pnand %p5360_p7, %p291_p8 }
   0xe   : > { %295 = sbr.rel (%p292_p9) target bundleno = 3482 (0xd9a), region = 56 }
  0x15   : > { %v440_v0 = vld [vmem:[%s9070_s2] sm:$0xff]  ;;  %v9081_v2 = vmov 0   ;;  %v9079_v3 = vmov 1   ;;  %v441_v4 = vld [vmem:[%s9070_s2 + $0x8] sm:$0xff]  ;;  %v342_v6 = vld [vmem:[%s9069_s1 + $0x18] sm:$0xff]  ;;  %v9083_v32 = vmov 0.0   ;;  %v9078_v36 = vlaneseq }
  0x16   : > { %v339_v1 = vld [vmem:[%s9069_s1] sm:$0xff]  ;;  %6089 = vset.pattern.permute.xlu1 %v9081_v2  ;;  %6088 = vset.pattern.permute.xlu0 %v9079_v3  ;;  %v340_v5 = vld [vmem:[%s9069_s1 + $0x8] sm:$0xff]  ;;  %v341_v8 = vld [vmem:[%s9069_s1 + $0x10] sm:$0xff]  ;;  %s5362_s27 = sshll.u32 %s7076_s13, 2  ;;  %vm1211_vm0 = vcmask 523264   ;;  %s324_s25 = sand.u32 1, %s6990_s10  }
  0x17   : > { %450 = vperm.xlu1 %6089, %v440_v0   ;;  %370 = vperm.xlu0 %6088, %v339_v1   ;;  %v344_v7 = vld [vmem:[%s9069_s1 + $0x28] sm:$0xff]  ;;  %v346_v9 = vld [vmem:[%s9069_s1 + $0x38] sm:$0xff]  ;;  %v442_v10 = vld [vmem:[%s9070_s2 + $0x10] sm:$0xff]  ;;  %p328_p10 = scmp.lt.s32.totalorder %s5362_s27, 7  ;;  %v7219_v39 = vshrl.u32 %v9078_v36, 7  ;;  %s5361_s26 = sshll.u32 %s324_s25, 4 }
  0x18   : > { %v443_v11 = vld [vmem:[%s9070_s2 + $0x18] sm:$0xff]  ;;  %v343_v12 = vld [vmem:[%s9069_s1 + $0x20] sm:$0xff]  ;;  %v345_v13 = vld [vmem:[%s9069_s1 + $0x30] sm:$0xff]  ;;  %1300 = vmatprep.mubr.f32.mxu0 %v9083_v32  ;;  %1413 = vmatprep.mubr.f32.mxu1 %v9083_v32  ;;  %s5660_s21 = sshll.u32 %s7076_s13, 8 }
  0x19   : > { %v444_v14 = vld [vmem:[%s9070_s2 + $0x20] sm:$0xff]  ;;  %v1164_v15 = vld [vmem:[%s9072_s4 + $0x8] sm:$0xff]  ;;  %v1166_v17 = vld [vmem:[%s9072_s4 + $0x18] sm:$0xff]  ;;  %s9185_s27 = smov (!%p328_p10, %s5362_s27), 7  ;;  %v7227_v42 = vsub.s32 0, %v7219_v39  ;;  %v7230_v43 = vsub.s32 2, %v7219_v39  ;;  %s9021_s24 = scalar_lea.hbm %s9077_s9, %s5660_s21 }
  0x1a   : > { %v445_v16 = vld [vmem:[%s9070_s2 + $0x28] sm:$0xff]  ;;  %v1170_v19 = vld [vmem:[%s9072_s4 + $0x38] sm:$0xff]  ;;  %v446_v21 = vld [vmem:[%s9070_s2 + $0x30] sm:$0xff]  ;;  %s5363_s28 = sshll.u32 %s9185_s27, 2  ;;  %v7235_v48 = vsub.s32 1, %v7219_v39  ;;  %v7238_v49 = vsub.s32 3, %v7219_v39 }
  0x1b   : > { %455 = vperm.xlu1 %6089, %v441_v4   ;;  %375 = vperm.xlu0 %6088, %v340_v5   ;;  %v1168_v18 = vld [vmem:[%s9072_s4 + $0x28] sm:$0xff]  ;;  %v1505_v22 = vld [vmem:[%s9074_s6 + $0x18] sm:$0xff]  ;;  %v1163_v26 = vld [vmem:[%s9072_s4] sm:$0xff]  ;;  %s7224_s16 = scalar_lea.vmem %s9068_s0, %s5363_s28  ;;  %9116 = vst [vmem:[#allocation5_spill] sm:$0xff] %v7227_v42  ;;  %s8782_s27 = scalar_lea.vmem [#allocation2], %s5361_s26 }
  0x1c   : > { %v1503_v20 = vld [vmem:[%s9074_s6 + $0x8] sm:$0xff]  ;;  %v447_v23 = vld [vmem:[%s9070_s2 + $0x38] sm:$0xff]  ;;  %v1165_v27 = vld [vmem:[%s9072_s4 + $0x10] sm:$0xff]  ;;  %9117 = vst [vmem:[#allocation6_spill] sm:$0xff] %v7230_v43  ;;  %s5284_s26 = scalar_lea.sflag [#allocation3], %s324_s25  ;;  %s7004_s28 = smov [#allocation2]  }
  0x1d   : > { %v1507_v24 = vld [vmem:[%s9074_s6 + $0x28] sm:$0xff]  ;;  %v1509_v25 = vld [vmem:[%s9074_s6 + $0x38] sm:$0xff]  ;;  %v1167_v28 = vld [vmem:[%s9072_s4 + $0x20] sm:$0xff]  ;;  %9118 = vst [vmem:[#allocation7_spill] sm:$0xff] %v7235_v48  ;;  %s6940_s29 = sshll.u32 %s7004_s28, 4  ;;  %s6941_s29 = int_to_ptr.vmem [resolvable:$false] %s6940_s29 }
  0x1e   : > { %v1169_v29 = vld [vmem:[%s9072_s4 + $0x30] sm:$0xff]  ;;  %v1502_v30 = vld [vmem:[%s9074_s6] sm:$0xff]  ;;  %9119 = vst [vmem:[#allocation8_spill] sm:$0xff] %v7238_v49  ;;  %s6942_s14 = scalar_lea.vmem %s6941_s29, 512 }
  0x1f   : > { %1032 = vperm.xlu1 %6089, %v340_v5   ;;  %385 = vperm.xlu0 %6088, %v342_v6   ;;  %v1504_v31 = vld [vmem:[%s9074_s6 + $0x10] sm:$0xff]  ;;  %v1506_v33 = vld [vmem:[%s9074_s6 + $0x20] sm:$0xff] }
  0x20   : > { %v1508_v34 = vld [vmem:[%s9074_s6 + $0x30] sm:$0xff]  ;;  %v1833_v35 = vld [vmem:[%s9076_s8] sm:$0x3]  ;;  %v5365_v44 = vld [vmem:[%s7224_s16 + $0x2] ss:$4 sm:$0xf] }
  0x21   : > { %v334_v46 = vld [vmem:[%s7224_s16] ss:$4 sm:$0xf]  ;;  %v7241_v50 = vrot.slane %v5365_v44, %v7227_v42  ;;  %v7247_v52 = vrot.slane %v5365_v44, %v7230_v43  ;;  %v7255_v55 = vrot.slane %v5365_v44, %v7235_v48  ;;  %v7263_v60 = vrot.slane %v5365_v44, %v7238_v49 }
  0x22   : > { %v7244_v51 = vrot.slane %v334_v46, %v7227_v42  ;;  %v7250_v53 = vrot.slane %v334_v46, %v7230_v43  ;;  %v7259_v57 = vrot.slane %v334_v46, %v7235_v48  ;;  %v7267_v62 = vrot.slane %v334_v46, %v7238_v49 }
  0x23   : > { %6090 = vset.pattern.permute.xlu1 %v9079_v3  ;;  %395 = vperm.xlu0 %6088, %v344_v7  }
  0x24   : > { %380 = vperm.xlu1 %6090, %v341_v8  }
  0x27   : > { %405 = vperm.xlu0 %6088, %v346_v9  }
  0x28   : > { %6091 = vset.pattern.permute.xlu1 %v9081_v2 }
  0x29   : > { %460 = vperm.xlu1 %6091, %v442_v10  }
  0x2b   : > { %6095 = vset.pattern.permute.xlu0 %v9081_v2 }
  0x2c   : > { %1028 = vperm.xlu0 %6095, %v339_v1  }
  0x2d   : > { %465 = vperm.xlu1 %6091, %v443_v11  }
  0x30   : > { %1036 = vperm.xlu0 %6095, %v341_v8  }
  0x31   : > { %1040 = vperm.xlu1 %6091, %v342_v6  }
  0x34   : > { %1044 = vperm.xlu0 %6095, %v343_v12  }
  0x35   : > { %6092 = vset.pattern.permute.xlu1 %v9079_v3 }
  0x36   : > { %390 = vperm.xlu1 %6092, %v343_v12  }
  0x38   : > { %1052 = vperm.xlu0 %6095, %v345_v13  }
  0x3a   : > { %6093 = vset.pattern.permute.xlu1 %v9081_v2 }
  0x3b   : > { %470 = vperm.xlu1 %6093, %v444_v14  }
  0x3c   : > { %1178 = vperm.xlu0 %6095, %v1164_v15  }
  0x3f   : > { %475 = vperm.xlu1 %6093, %v445_v16  }
  0x40   : > { %1188 = vperm.xlu0 %6095, %v1166_v17  }
  0x43   : > { %1048 = vperm.xlu1 %6093, %v344_v7  }
  0x44   : > { %1198 = vperm.xlu0 %6095, %v1168_v18  }
  0x47   : > { %6094 = vset.pattern.permute.xlu1 %v9079_v3 }
  0x48   : > { %400 = vperm.xlu1 %6094, %v345_v13   ;;  %1208 = vperm.xlu0 %6095, %v1170_v19  }
  0x4c   : > { %6096 = vset.pattern.permute.xlu1 %v9081_v2  ;;  %1517 = vperm.xlu0 %6095, %v1503_v20  }
  0x4d   : > { %480 = vperm.xlu1 %6096, %v446_v21  }
  0x50   : > { %1527 = vperm.xlu0 %6095, %v1505_v22  }
  0x51   : > { %485 = vperm.xlu1 %6096, %v447_v23  }
  0x54   : > { %1537 = vperm.xlu0 %6095, %v1507_v24  }
  0x55   : > { %1056 = vperm.xlu1 %6096, %v346_v9  }
  0x58   : > { %1547 = vperm.xlu0 %6095, %v1509_v25  }
  0x59   : > { %1173 = vperm.xlu1 %6096, %v1163_v26  }
  0x5c   : > { %6097 = vset.pattern.permute.xlu0 %v9079_v3 }
  0x5d   : > { %1183 = vperm.xlu1 %6096, %v1165_v27  }
  0x61   : > { %1193 = vperm.xlu1 %6096, %v1167_v28  }
  0x65   : > { %1203 = vperm.xlu1 %6096, %v1169_v29  }
  0x69   : > { %1512 = vperm.xlu1 %6096, %v1502_v30  }
  0x6d   : > { %1522 = vperm.xlu1 %6096, %v1504_v31  }
  0x71   : > { %1532 = vperm.xlu1 %6096, %v1506_v33  }
  0x75   : > { %1542 = vperm.xlu1 %6096, %v1508_v34  }
  0x79   : > { %1836 = vperm.xlu1 %6096, %v1833_v35  }
  0x7d   : > { %6098 = vset.pattern.permute.xlu1 %v9079_v3 }
  0x96   : > { %v7216_v37 = vpop.permute.xlu1 %450  ;;  %v371_v38 = vpop.permute.xlu0 %370 }
  0x97   : > { %v408_v0 = vmul.f32 %v371_v38, %v7241_v50  ;;  %v410_v5 = vmul.f32 %v371_v38, %v7247_v52  ;;  %v409_v14 = vmul.f32 %v371_v38, %v7255_v55  ;;  %v411_v15 = vmul.f32 %v371_v38, %v7263_v60 }
  0x99   : > { %v488_v16 = vadd.f32 %v7216_v37, %v408_v0  ;;  %v490_v18 = vadd.f32 %v7216_v37, %v410_v5 }
  0x9a   : > { %v456_v40 = vpop.permute.xlu1 %455  ;;  %v376_v41 = vpop.permute.xlu0 %375 }
  0x9b   : > { %v412_v56 = vmul.f32 %v376_v41, %v7241_v50  ;;  %v414_v59 = vmul.f32 %v376_v41, %v7247_v52  ;;  %v413_v61 = vmul.f32 %v376_v41, %v7255_v55  ;;  %v415_v6 = vmul.f32 %v376_v41, %v7263_v60 }
  0x9d   : > { %v492_v7 = vadd.f32 %v456_v40, %v412_v56  ;;  %v494_v9 = vadd.f32 %v456_v40, %v414_v59  ;;  %v493_v11 = vadd.f32 %v456_v40, %v413_v61  ;;  %v495_v19 = vadd.f32 %v456_v40, %v415_v6 }
  0x9e   : > { %v1033_v45 = vpop.permute.xlu1 %1032  ;;  %v386_v47 = vpop.permute.xlu0 %385 }
  0x9f   : > { %v1063_v63 = vmul.f32 %v1033_v45, %v7244_v51  ;;  %v1065_v1 = vmul.f32 %v1033_v45, %v7250_v53  ;;  %v1064_v8 = vmul.f32 %v1033_v45, %v7259_v57  ;;  %v1066_v12 = vmul.f32 %v1033_v45, %v7267_v62 }
  0xa0   : > { %v420_v21 = vmul.f32 %v386_v47, %v7241_v50  ;;  %v421_v23 = vmul.f32 %v386_v47, %v7255_v55  ;;  %v422_v24 = vmul.f32 %v386_v47, %v7247_v52  ;;  %v423_v31 = vmul.f32 %v386_v47, %v7263_v60 }
  0xa1   : > { %v1095_v13 = vadd.f32 %v1063_v63, %v492_v7  ;;  %v1097_v17 = vadd.f32 %v1065_v1, %v494_v9  ;;  %v1096_v20 = vadd.f32 %v1064_v8, %v493_v11  ;;  %v1098_v28 = vadd.f32 %v1066_v12, %v495_v19 }
  0xa2   : > { %v7252_v54 = vpop.permute.xlu0 %395 }
  0xa3   : > { %v381_v58 = vpop.permute.xlu1 %380  ;;  %6127 = vtanh.f32 %v1095_v13 }
  0xa4   : > { %v416_v29 = vmul.f32 %v381_v58, %v7241_v50  ;;  %v417_v30 = vmul.f32 %v381_v58, %v7255_v55  ;;  %6129 = vtanh.f32 %v1097_v17  ;;  %v418_v33 = vmul.f32 %v381_v58, %v7247_v52 }
  0xa5   : > { %v419_v34 = vmul.f32 %v381_v58, %v7263_v60  ;;  %6131 = vtanh.f32 %v1096_v20 }
  0xa6   : > { %v7272_v4 = vpop.permute.xlu0 %405  ;;  %6133 = vtanh.f32 %v1098_v28 }
  0xa8   : > { %v461_v10 = vpop.permute.xlu1 %460 }
  0xa9   : > { %v496_v35 = vadd.f32 %v461_v10, %v416_v29  ;;  %v497_v38 = vadd.f32 %v461_v10, %v417_v30  ;;  %v498_v61 = vadd.f32 %v461_v10, %v418_v33  ;;  %v499_v58 = vadd.f32 %v461_v10, %v419_v34 }
  0xab   : > { %v1029_v22 = vpop.permute.xlu0 %1028 }
  0xac   : > { %v1059_v25 = vmul.f32 %v1029_v22, %v7244_v51  ;;  %v1061_v26 = vmul.f32 %v1029_v22, %v7250_v53  ;;  %v466_v27 = vpop.permute.xlu1 %465  ;;  %v1060_v9 = vmul.f32 %v1029_v22, %v7259_v57  ;;  %v1062_v13 = vmul.f32 %v1029_v22, %v7267_v62 }
  0xad   : > { %v500_v6 = vadd.f32 %v466_v27, %v420_v21  ;;  %v501_v11 = vadd.f32 %v466_v27, %v421_v23  ;;  %v7303_v21 = vpop.eup %6127  ;;  %v502_v22 = vadd.f32 %v466_v27, %v422_v24 }
  0xae   : > { %v1091_v40 = vadd.f32 %v1059_v25, %v488_v16  ;;  %v1093_v44 = vadd.f32 %v1061_v26, %v490_v18  ;;  %v503_v16 = vadd.f32 %v466_v27, %v423_v31  ;;  %v489_v18 = vadd.f32 %v7216_v37, %v409_v14  ;;  %v7306_v23 = vpop.eup %6129 }
  0xaf   : > { %v1037_v41 = vpop.permute.xlu0 %1036  ;;  %v491_v25 = vadd.f32 %v7216_v37, %v411_v15  ;;  %v7308_v29 = vpop.eup %6131 }
  0xb0   : > { %v1067_v45 = vmul.f32 %v1037_v41, %v7244_v51  ;;  %v1068_v46 = vmul.f32 %v1037_v41, %v7259_v57  ;;  %v1069_v56 = vmul.f32 %v1037_v41, %v7250_v53  ;;  %v1041_v59 = vpop.permute.xlu1 %1040  ;;  %v1070_v47 = vmul.f32 %v1037_v41, %v7267_v62  ;;  %v7311_v34 = vpop.eup %6133 }
  0xb1   : > { %v1071_v63 = vmul.f32 %v1041_v59, %v7244_v51  ;;  %v1072_v5 = vmul.f32 %v1041_v59, %v7259_v57  ;;  %6135 = vtanh.f32 %v1091_v40  ;;  %v1074_v8 = vmul.f32 %v1041_v59, %v7267_v62 }
  0xb2   : > { %v1099_v0 = vadd.f32 %v1067_v45, %v496_v35  ;;  %v1100_v1 = vadd.f32 %v1068_v46, %v497_v38  ;;  %v1101_v7 = vadd.f32 %v1069_v56, %v498_v61  ;;  %6137 = vtanh.f32 %v1093_v44 }
  0xb3   : > { %v1102_v12 = vadd.f32 %v1070_v47, %v499_v58  ;;  %v1103_v17 = vadd.f32 %v1071_v63, %v500_v6  ;;  %v1073_v19 = vmul.f32 %v1041_v59, %v7250_v53  ;;  %v1104_v20 = vadd.f32 %v1072_v5, %v501_v11  ;;  %v1045_v37 = vpop.permute.xlu0 %1044 }
  0xb4   : > { %6139 = vtanh.f32 %v1099_v0  ;;  %v1106_v26 = vadd.f32 %v1074_v8, %v503_v16  ;;  %v1092_v28 = vadd.f32 %v1060_v9, %v489_v18  ;;  %v1094_v30 = vadd.f32 %v1062_v13, %v491_v25 }
  0xb5   : > { %v391_v10 = vpop.permute.xlu1 %390  ;;  %6141 = vtanh.f32 %v1100_v1  ;;  %v1105_v14 = vadd.f32 %v1073_v19, %v502_v22  ;;  %v1075_v35 = vmul.f32 %v1045_v37, %v7244_v51  ;;  %v1076_v40 = vmul.f32 %v1045_v37, %v7259_v57 }
  0xb6   : > { %6143 = vtanh.f32 %v1101_v7  ;;  %v424_v31 = vmul.f32 %v391_v10, %v7241_v50  ;;  %v425_v15 = vmul.f32 %v391_v10, %v7255_v55  ;;  %v426_v24 = vmul.f32 %v391_v10, %v7247_v52 }
  0xb7   : > { %6145 = vtanh.f32 %v1102_v12  ;;  %v1077_v45 = vmul.f32 %v1045_v37, %v7250_v53  ;;  %v427_v61 = vmul.f32 %v391_v10, %v7263_v60  ;;  %v428_v63 = vmul.f32 %v7252_v54, %v7241_v50 }
  0xb8   : > { %6147 = vtanh.f32 %v1103_v17  ;;  %v429_v58 = vmul.f32 %v7252_v54, %v7255_v55  ;;  %v430_v0 = vmul.f32 %v7252_v54, %v7247_v52  ;;  %v431_v6 = vmul.f32 %v7252_v54, %v7263_v60 }
  0xb9   : > { %6149 = vtanh.f32 %v1104_v20  ;;  %v1078_v7 = vmul.f32 %v1045_v37, %v7267_v62 }
  0xba   : > { %v471_v33 = vpop.permute.xlu1 %470  ;;  %6151 = vtanh.f32 %v1106_v26 }
  0xbb   : > { %v504_v27 = vadd.f32 %v471_v33, %v424_v31  ;;  %6153 = vtanh.f32 %v1092_v28  ;;  %v6136_v38 = vpop.eup %6135  ;;  %v505_v41 = vadd.f32 %v471_v33, %v425_v15  ;;  %v506_v46 = vadd.f32 %v471_v33, %v426_v24 }
  0xbc   : > { %6155 = vtanh.f32 %v1094_v30  ;;  %v6138_v44 = vpop.eup %6137  ;;  %v507_v8 = vadd.f32 %v471_v33, %v427_v61  ;;  %v5663_v37 = vpack.c.bf16 %v7303_v21, %v6136_v38  ;;  %v1053_v38 = vpop.permute.xlu0 %1052 }
  0xbd   : > { %6157 = vtanh.f32 %v1105_v14  ;;  %v1107_v1 = vadd.f32 %v1075_v35, %v504_v27  ;;  %v1108_v9 = vadd.f32 %v1076_v40, %v505_v41  ;;  %v1109_v12 = vadd.f32 %v1077_v45, %v506_v46 }
  0xbe   : > { %v476_v56 = vpop.permute.xlu1 %475  ;;  %v7318_v59 = vpop.eup %6139  ;;  %v5679_v15 = vpack.c.bf16 %v7306_v23, %v6138_v44  ;;  %v1110_v27 = vadd.f32 %v1078_v7, %v507_v8 }
  0xbf   : > { %v6142_v47 = vpop.eup %6141  ;;  %v508_v13 = vadd.f32 %v476_v56, %v428_v63  ;;  %v509_v16 = vadd.f32 %v476_v56, %v429_v58  ;;  %v510_v17 = vadd.f32 %v476_v56, %v430_v0  ;;  %6159 = vtanh.f32 %v1107_v1 }
  0xc0   : > { %v6144_v5 = vpop.eup %6143  ;;  %v511_v28 = vadd.f32 %v476_v56, %v431_v6  ;;  %6161 = vtanh.f32 %v1108_v9 }
  0xc1   : > { %v6146_v11 = vpop.eup %6145  ;;  %6163 = vtanh.f32 %v1109_v12 }
  0xc2   : > { %v1049_v10 = vpop.permute.xlu1 %1048  ;;  %v6148_v18 = vpop.eup %6147 }
  0xc3   : > { %v1079_v19 = vmul.f32 %v1049_v10, %v7244_v51  ;;  %v1080_v20 = vmul.f32 %v1049_v10, %v7259_v57  ;;  %v1081_v25 = vmul.f32 %v1049_v10, %v7250_v53  ;;  %v1082_v26 = vmul.f32 %v1049_v10, %v7267_v62  ;;  %v6150_v54 = vpop.eup %6149 }
  0xc4   : > { %v6152_v22 = vpop.eup %6151  ;;  %v5665_v41 = vpack.c.bf16 %v6150_v54, %v6142_v47  ;;  %v5667_v21 = vpack.c.bf16 %v6148_v18, %v7318_v59  ;;  %v1083_v47 = vmul.f32 %v1053_v38, %v7244_v51  ;;  %v1085_v10 = vmul.f32 %v1053_v38, %v7250_v53 }
  0xc5   : > { %v1111_v30 = vadd.f32 %v1079_v19, %v508_v13  ;;  %v1112_v14 = vadd.f32 %v1080_v20, %v509_v16  ;;  %v1113_v31 = vadd.f32 %v1081_v25, %v510_v17  ;;  %v6154_v33 = vpop.eup %6153  ;;  %v1114_v35 = vadd.f32 %v1082_v26, %v511_v28 }
  0xc6   : > { %v6156_v24 = vpop.eup %6155  ;;  %v5661_v40 = vpack.c.bf16 %v7308_v29, %v6154_v33  ;;  %v5681_v61 = vpack.c.bf16 %v6152_v22, %v6146_v11  ;;  %v1084_v11 = vmul.f32 %v1053_v38, %v7259_v57  ;;  %v436_v16 = vmul.f32 %v7272_v4, %v7241_v50 }
  0xc7   : > { %6165 = vtanh.f32 %v1111_v30  ;;  %v401_v45 = vpop.permute.xlu1 %400  ;;  %v6158_v46 = vpop.eup %6157  ;;  %v5677_v56 = vpack.c.bf16 %v7311_v34, %v6156_v24  ;;  %v437_v17 = vmul.f32 %v7272_v4, %v7255_v55  ;;  %v1086_v18 = vmul.f32 %v1053_v38, %v7267_v62 }
  0xc8   : > { %6167 = vtanh.f32 %v1112_v14  ;;  %5662 = vmatprep.subr.bf16.mxu0 %v5661_v40  ;;  %v5683_v23 = vpack.c.bf16 %v6158_v46, %v6144_v5  ;;  %v432_v29 = vmul.f32 %v401_v45, %v7241_v50  ;;  %v433_v44 = vmul.f32 %v401_v45, %v7255_v55 }
  0xc9   : > { %6169 = vtanh.f32 %v1113_v31  ;;  %5678 = vmatprep.subr.bf16.mxu1 %v5677_v56  ;;  %5664 = vmatpush1.bf16.msra.mxu0 %v5663_v37  ;;  %v434_v63 = vmul.f32 %v401_v45, %v7247_v52  ;;  %v435_v58 = vmul.f32 %v401_v45, %v7263_v60  ;;  %v6160_v1 = vpop.eup %6159  ;;  %v438_v20 = vmul.f32 %v7272_v4, %v7247_v52 }
  0xca   : > { %6171 = vtanh.f32 %v1114_v35  ;;  %5680 = vmatpush1.bf16.msra.mxu1 %v5679_v15  ;;  %5666 = vmatprep.subr.bf16.mxu0 %v5665_v41  ;;  %v6162_v6 = vpop.eup %6161  ;;  %v439_v25 = vmul.f32 %v7272_v4, %v7263_v60 }
  0xcb   : > { %6173 = vtanh.f32 %v1110_v27  ;;  %5682 = vmatprep.subr.bf16.mxu1 %v5681_v61  ;;  %v6164_v9 = vpop.eup %6163 }
  0xcc   : > { %v481_v34 = vpop.permute.xlu1 %480 }
  0xcd   : > { %v512_v0 = vadd.f32 %v481_v34, %v432_v29  ;;  %5668 = vmatpush1.bf16.msra.mxu0 %v5667_v21  ;;  %v513_v59 = vadd.f32 %v481_v34, %v433_v44  ;;  %v514_v5 = vadd.f32 %v481_v34, %v434_v63  ;;  %v515_v7 = vadd.f32 %v481_v34, %v435_v58 }
  0xce   : > { %5684 = vmatpush1.bf16.msra.mxu1 %v5683_v23 }
  0xcf   : > { %v1115_v8 = vadd.f32 %v1083_v47, %v512_v0  ;;  %v1116_v26 = vadd.f32 %v1084_v11, %v513_v59  ;;  %v1117_v22 = vadd.f32 %v1085_v10, %v514_v5  ;;  %v1118_v30 = vadd.f32 %v1086_v18, %v515_v7  ;;  %v1155_v59 = vld [vmem:[%s9071_s3] sm:$0xff]  ;;  %v1157_v5 = vld [vmem:[%s9071_s3 + $0x10] sm:$0xff]  ;;  %v1158_v7 = vld [vmem:[%s9071_s3 + $0x18] sm:$0xff] }
  0xd0   : > { %v486_v12 = vpop.permute.xlu1 %485  ;;  %v1161_v11 = vld [vmem:[%s9071_s3 + $0x30] sm:$0xff] }
  0xd1   : > { %v6166_v13 = vpop.eup %6165  ;;  %6175 = vtanh.f32 %v1115_v8  ;;  %v516_v33 = vadd.f32 %v486_v12, %v436_v16  ;;  %v517_v37 = vadd.f32 %v486_v12, %v437_v17  ;;  %v518_v15 = vadd.f32 %v486_v12, %v438_v20  ;;  %v1159_v8 = vld [vmem:[%s9071_s3 + $0x20] sm:$0xff] }
  0xd2   : > { %v6168_v19 = vpop.eup %6167  ;;  %v5671_v54 = vpack.c.bf16 %v6166_v13, %v6160_v1  ;;  %6177 = vtanh.f32 %v1116_v26  ;;  %v519_v46 = vadd.f32 %v486_v12, %v439_v25  ;;  %v1162_v12 = vld [vmem:[%s9071_s3 + $0x38] sm:$0xff]  ;;  %v1179_v26 = vpop.permute.xlu0 %1178 }
  0xd3   : > { %v6170_v28 = vpop.eup %6169  ;;  %v5669_v14 = vpack.c.bf16 %v6168_v19, %v6162_v6  ;;  %6179 = vtanh.f32 %v1117_v22  ;;  %v1156_v6 = vld [vmem:[%s9071_s3 + $0x8] sm:$0xff] }
  0xd4   : > { %v6172_v31 = vpop.eup %6171  ;;  %v1057_v35 = vpop.permute.xlu1 %1056  ;;  %v5687_v24 = vpack.c.bf16 %v6170_v28, %v6164_v9  ;;  %6181 = vtanh.f32 %v1118_v30  ;;  %v1160_v9 = vld [vmem:[%s9071_s3 + $0x28] sm:$0xff] }
  0xd5   : > { %v6174_v27 = vpop.eup %6173  ;;  %v1087_v40 = vmul.f32 %v1057_v35, %v7244_v51  ;;  %v1088_v41 = vmul.f32 %v1057_v35, %v7259_v57  ;;  %v1089_v4 = vmul.f32 %v1057_v35, %v7250_v53  ;;  %v1090_v45 = vmul.f32 %v1057_v35, %v7267_v62  ;;  %5670 = vmatprep.subr.bf16.mxu0 %v5669_v14 }
  0xd6   : > { %v5685_v56 = vpack.c.bf16 %v6172_v31, %v6174_v27  ;;  %5672 = vmatpush1.bf16.msra.mxu0 %v5671_v54 }
  0xd7   : > { %v1119_v61 = vadd.f32 %v1087_v40, %v516_v33  ;;  %v1120_v21 = vadd.f32 %v1088_v41, %v517_v37  ;;  %v1121_v23 = vadd.f32 %v1089_v4, %v518_v15  ;;  %v1122_v29 = vadd.f32 %v1090_v45, %v519_v46 }
  0xd8   : > { %5686 = vmatprep.subr.bf16.mxu1 %v5685_v56  ;;  %v1174_v13 = vpop.permute.xlu1 %1173  ;;  %v1189_v56 = vpop.permute.xlu0 %1188 }
  0xd9   : > { %6183 = vtanh.f32 %v1119_v61  ;;  %5688 = vmatpush1.bf16.msra.mxu1 %v5687_v24 }
  0xda   : > { %6185 = vtanh.f32 %v1120_v21 }
  0xdb   : > { %6187 = vtanh.f32 %v1121_v23  ;;  %v6176_v51 = vpop.eup %6175 }
  0xdc   : > { %6189 = vtanh.f32 %v1122_v29  ;;  %v6178_v53 = vpop.eup %6177  ;;  %v1184_v15 = vpop.permute.xlu1 %1183 }
  0xdd   : > { %v6180_v57 = vpop.eup %6179 }
  0xde   : > { %v6182_v62 = vpop.eup %6181 }
  0xe3   : > { %v6184_v38 = vpop.eup %6183 }
  0xe4   : > { %v6186_v44 = vpop.eup %6185  ;;  %v5675_v34 = vpack.c.bf16 %v6184_v38, %v6176_v51 }
  0xe5   : > { %v6188_v47 = vpop.eup %6187  ;;  %v5673_v63 = vpack.c.bf16 %v6186_v44, %v6178_v53 }
  0xe6   : > { %v6190_v58 = vpop.eup %6189  ;;  %v5691_v0 = vpack.c.bf16 %v6188_v47, %v6180_v57 }
  0xe7   : > { %5674 = vmatprep.subr.bf16.mxu0 %v5673_v63  ;;  %v5689_v1 = vpack.c.bf16 %v6190_v58, %v6182_v62  ;;  %v1194_v63 = vpop.permute.xlu1 %1193 }
  0xe8   : > { %5676 = vmatpush1.bf16.msra.mxu0 %v5675_v34 }
  0xe9   : > { %5690 = vmatprep.subr.bf16.mxu1 %v5689_v1 }
  0xea   : > { %5692 = vmatpush1.bf16.msra.mxu1 %v5691_v0 }
  0xeb   : > { %5414 = vmatmul.mubr.msk.f32.vlgmr.msra.gmra.mrb[0].mxu0 %vm1211_vm0, %v1155_v59 }
  0xec   : > { %1306 = vmatprep.mubr.f32.mxu0 %v9083_v32 }
  0xed   : > { %5422 = vmatmul.mubr.msk.f32.vlgmr.msra.gmra.mrb[0].mxu1 %vm1211_vm0, %v1155_v59 }
  0xee   : > { %1419 = vmatprep.mubr.f32.mxu1 %v9083_v32 }
  0xef   : > { %5415 = vmatmul.mubr.msk.f32.gmra.mrb[2].mxu0 %vm1211_vm0, %v1156_v6 }
  0xf0   : > { %1312 = vmatprep.mubr.f32.mxu0 %v9083_v32 }
  0xf1   : > { %5423 = vmatmul.mubr.msk.f32.gmra.mrb[2].mxu1 %vm1211_vm0, %v1156_v6 }
  0xf2   : > { %1425 = vmatprep.mubr.f32.mxu1 %v9083_v32 }
  0xf3   : > { %5416 = vmatmul.mubr.msk.f32.gmra.mrb[4].mxu0 %vm1211_vm0, %v1157_v5 }
  0xf4   : > { %1318 = vmatprep.mubr.f32.mxu0 %v9083_v32 }
  0xf5   : > { %5424 = vmatmul.mubr.msk.f32.gmra.mrb[4].mxu1 %vm1211_vm0, %v1157_v5 }
  0xf6   : > { %1431 = vmatprep.mubr.f32.mxu1 %v9083_v32 }
  0xf7   : > { %5417 = vmatmul.mubr.msk.f32.gmra.mrb[6].mxu0 %vm1211_vm0, %v1158_v7 }
  0xf8   : > { %1324 = vmatprep.mubr.f32.mxu0 %v9083_v32 }
  0xf9   : > { %5425 = vmatmul.mubr.msk.f32.gmra.mrb[6].mxu1 %vm1211_vm0, %v1158_v7 }
  0xfa   : > { %1437 = vmatprep.mubr.f32.mxu1 %v9083_v32 }
  0xfb   : > { %5418 = vmatmul.mubr.msk.f32.gmra.mrb[8].mxu0 %vm1211_vm0, %v1159_v8 }
  0xfc   : > { %1330 = vmatprep.mubr.f32.mxu0 %v9083_v32 }
  0xfd   : > { %5426 = vmatmul.mubr.msk.f32.gmra.mrb[8].mxu1 %vm1211_vm0, %v1159_v8 }
  0xfe   : > { %1443 = vmatprep.mubr.f32.mxu1 %v9083_v32 }
  0xff   : > { %5419 = vmatmul.mubr.msk.f32.gmra.mrb[10].mxu0 %vm1211_vm0, %v1160_v9 }
 0x100   : > { %1336 = vmatprep.mubr.f32.mxu0 %v9083_v32 }
 0x101   : > { %5427 = vmatmul.mubr.msk.f32.gmra.mrb[10].mxu1 %vm1211_vm0, %v1160_v9 }
 0x102   : > { %1449 = vmatprep.mubr.f32.mxu1 %v9083_v32 }
 0x103   : > { %5420 = vmatmul.mubr.msk.f32.gmra.mrb[12].mxu0 %vm1211_vm0, %v1161_v11 }
 0x104   : > { %1342 = vmatprep.mubr.f32.mxu0 %v9083_v32 }
 0x105   : > { %5428 = vmatmul.mubr.msk.f32.gmra.mrb[12].mxu1 %vm1211_vm0, %v1161_v11 }
 0x106   : > { %1455 = vmatprep.mubr.f32.mxu1 %v9083_v32 }
 0x107   : > { %5421 = vmatmul.mubr.msk.f32.gmra.mrb[14].mxu0 %vm1211_vm0, %v1162_v12 }
 0x108   : > { %1638 = vmatprep.mubr.f32.mxu0 %v9083_v32 }
 0x109   : > { %5429 = vmatmul.mubr.msk.f32.gmra.mrb[14].mxu1 %vm1211_vm0, %v1162_v12 }
 0x10a   : > { %1751 = vmatprep.mubr.f32.mxu1 %v9083_v32 }
 0x1be   : > { %v1302_v16 = vpop.f32.mrb[0].mxu0 }
 0x1bf   : > { %v1303_v17 = vadd.f32 %v1302_v16, %v1174_v13  ;;  %v1304_v10 = vpop.f32.mrb[1].mxu0 }
 0x1c0   : > { %v1415_v18 = vpop.f32.mrb[0].mxu1  ;;  %v1305_v19 = vadd.f32 %v1304_v10, %v1174_v13  ;;  %v1199_v10 = vpop.permute.xlu0 %1198 }
 0x1c1   : > { %6191 = vtanh.f32 %v1303_v17  ;;  %v1416_v20 = vadd.f32 %v1415_v18, %v1174_v13  ;;  %v1417_v25 = vpop.f32.mrb[1].mxu1 }
 0x1c2   : > { %6193 = vtanh.f32 %v1305_v19  ;;  %v1418_v54 = vadd.f32 %v1417_v25, %v1174_v13  ;;  %v1308_v28 = vpop.f32.mrb[2].mxu0 }
 0x1c3   : > { %6195 = vtanh.f32 %v1416_v20  ;;  %v1309_v22 = vadd.f32 %v1308_v28, %v1179_v26  ;;  %v1310_v30 = vpop.f32.mrb[3].mxu0 }
 0x1c4   : > { %6197 = vtanh.f32 %v1418_v54  ;;  %v1421_v14 = vpop.f32.mrb[2].mxu1  ;;  %v1311_v31 = vadd.f32 %v1310_v30, %v1179_v26 }
 0x1c5   : > { %6199 = vtanh.f32 %v1309_v22  ;;  %v1422_v33 = vadd.f32 %v1421_v14, %v1179_v26  ;;  %v1423_v37 = vpop.f32.mrb[3].mxu1 }
 0x1c6   : > { %6201 = vtanh.f32 %v1311_v31  ;;  %v1424_v35 = vadd.f32 %v1423_v37, %v1179_v26  ;;  %v1314_v24 = vpop.f32.mrb[4].mxu0 }
 0x1c7   : > { %6203 = vtanh.f32 %v1422_v33  ;;  %v1315_v27 = vadd.f32 %v1314_v24, %v1184_v15  ;;  %v1316_v40 = vpop.f32.mrb[5].mxu0 }
 0x1c8   : > { %6205 = vtanh.f32 %v1424_v35  ;;  %v1427_v41 = vpop.f32.mrb[4].mxu1  ;;  %v1317_v4 = vadd.f32 %v1316_v40, %v1184_v15  ;;  %v1204_v35 = vpop.permute.xlu1 %1203 }
 0x1c9   : > { %6207 = vtanh.f32 %v1315_v27  ;;  %v1428_v45 = vadd.f32 %v1427_v41, %v1184_v15  ;;  %v1429_v46 = vpop.f32.mrb[5].mxu1 }
 0x1ca   : > { %6209 = vtanh.f32 %v1317_v4  ;;  %v1430_v61 = vadd.f32 %v1429_v46, %v1184_v15  ;;  %v1320_v21 = vpop.f32.mrb[6].mxu0 }
 0x1cb   : > { %v6192_v23 = vpop.eup %6191  ;;  %6211 = vtanh.f32 %v1428_v45  ;;  %v1321_v29 = vadd.f32 %v1320_v21, %v1189_v56  ;;  %v1322_v51 = vpop.f32.mrb[7].mxu0 }
 0x1cc   : > { %v6194_v53 = vpop.eup %6193  ;;  %6213 = vtanh.f32 %v1430_v61  ;;  %v1433_v57 = vpop.f32.mrb[6].mxu1  ;;  %v1323_v62 = vadd.f32 %v1322_v51, %v1189_v56 }
 0x1cd   : > { %v6196_v38 = vpop.eup %6195  ;;  %6215 = vtanh.f32 %v1321_v29  ;;  %v1434_v44 = vadd.f32 %v1433_v57, %v1189_v56  ;;  %v1435_v34 = vpop.f32.mrb[7].mxu1 }
 0x1ce   : > { %v6198_v47 = vpop.eup %6197  ;;  %6217 = vtanh.f32 %v1323_v62  ;;  %v1436_v58 = vadd.f32 %v1435_v34, %v1189_v56  ;;  %v1326_v0 = vpop.f32.mrb[8].mxu0 }
 0x1cf   : > { %v6200_v1 = vpop.eup %6199  ;;  %6219 = vtanh.f32 %v1434_v44  ;;  %v1327_v59 = vadd.f32 %v1326_v0, %v1194_v63  ;;  %v1328_v6 = vpop.f32.mrb[9].mxu0 }
 0x1d0   : > { %v6202_v5 = vpop.eup %6201  ;;  %6221 = vtanh.f32 %v1436_v58  ;;  %v1439_v7 = vpop.f32.mrb[8].mxu1  ;;  %v1329_v8 = vadd.f32 %v1328_v6, %v1194_v63  ;;  %v5695_v9 = vpack.c.bf16 %v6200_v1, %v6192_v23 }
 0x1d1   : > { %v6204_v11 = vpop.eup %6203  ;;  %6223 = vtanh.f32 %v1327_v59  ;;  %v1440_v12 = vadd.f32 %v1439_v7, %v1194_v63  ;;  %v1441_v13 = vpop.f32.mrb[9].mxu1  ;;  %v5693_v16 = vpack.c.bf16 %v6202_v5, %v6194_v53 }
 0x1d2   : > { %v6206_v17 = vpop.eup %6205  ;;  %6225 = vtanh.f32 %v1329_v8  ;;  %v1442_v18 = vadd.f32 %v1441_v13, %v1194_v63  ;;  %v1332_v19 = vpop.f32.mrb[10].mxu0  ;;  %v5711_v20 = vpack.c.bf16 %v6204_v11, %v6196_v38 }
 0x1d3   : > { %v6208_v25 = vpop.eup %6207  ;;  %6227 = vtanh.f32 %v1440_v12  ;;  %v1333_v26 = vadd.f32 %v1332_v19, %v1199_v10  ;;  %v1334_v54 = vpop.f32.mrb[11].mxu0  ;;  %5694 = vmatprep.subr.bf16.mxu0 %v5693_v16  ;;  %v5709_v28 = vpack.c.bf16 %v6206_v17, %v6198_v47 }
 0x1d4   : > { %v6210_v22 = vpop.eup %6209  ;;  %6229 = vtanh.f32 %v1442_v18  ;;  %v1445_v30 = vpop.f32.mrb[10].mxu1  ;;  %v1335_v14 = vadd.f32 %v1334_v54, %v1199_v10  ;;  %5696 = vmatpush1.bf16.msra.mxu0 %v5695_v9 }
 0x1d5   : > { %v6212_v31 = vpop.eup %6211  ;;  %6231 = vtanh.f32 %v1333_v26  ;;  %v1446_v33 = vadd.f32 %v1445_v30, %v1199_v10  ;;  %v1447_v37 = vpop.f32.mrb[11].mxu1  ;;  %5710 = vmatprep.subr.bf16.mxu1 %v5709_v28 }
 0x1d6   : > { %v6214_v15 = vpop.eup %6213  ;;  %6233 = vtanh.f32 %v1335_v14  ;;  %v1448_v24 = vadd.f32 %v1447_v37, %v1199_v10  ;;  %5712 = vmatpush1.bf16.msra.mxu1 %v5711_v20  ;;  %v1338_v27 = vpop.f32.mrb[12].mxu0 }
 0x1d7   : > { %v6216_v40 = vpop.eup %6215  ;;  %6235 = vtanh.f32 %v1446_v33  ;;  %v1339_v41 = vadd.f32 %v1338_v27, %v1204_v35  ;;  %v1340_v4 = vpop.f32.mrb[13].mxu0  ;;  %v1496_v27 = vld [vmem:[%s9073_s5 + $0x10] sm:$0xff] }
 0x1d8   : > { %v6218_v45 = vpop.eup %6217  ;;  %6237 = vtanh.f32 %v1448_v24  ;;  %v1451_v46 = vpop.f32.mrb[12].mxu1  ;;  %v1341_v56 = vadd.f32 %v1340_v4, %v1204_v35  ;;  %v5699_v61 = vpack.c.bf16 %v6216_v40, %v6208_v25  ;;  %v1495_v24 = vld [vmem:[%s9073_s5 + $0x8] sm:$0xff]  ;;  %v1497_v40 = vld [vmem:[%s9073_s5 + $0x18] sm:$0xff] }
 0x1d9   : > { %v6220_v21 = vpop.eup %6219  ;;  %6239 = vtanh.f32 %v1339_v41  ;;  %v1452_v23 = vadd.f32 %v1451_v46, %v1204_v35  ;;  %v1453_v29 = vpop.f32.mrb[13].mxu1  ;;  %v5697_v51 = vpack.c.bf16 %v6218_v45, %v6210_v22  ;;  %v1498_v41 = vld [vmem:[%s9073_s5 + $0x20] sm:$0xff]  ;;  %v1499_v4 = vld [vmem:[%s9073_s5 + $0x28] sm:$0xff]  ;;  %v1500_v45 = vld [vmem:[%s9073_s5 + $0x30] sm:$0xff] }
 0x1da   : > { %v6222_v53 = vpop.eup %6221  ;;  %v1209_v57 = vpop.permute.xlu0 %1208  ;;  %6241 = vtanh.f32 %v1341_v56  ;;  %v1454_v62 = vadd.f32 %v1453_v29, %v1204_v35  ;;  %v5715_v44 = vpack.c.bf16 %v6220_v21, %v6212_v31  ;;  %v1494_v35 = vld [vmem:[%s9073_s5] sm:$0xff]  ;;  %v1501_v46 = vld [vmem:[%s9073_s5 + $0x38] sm:$0xff]  ;;  %v5367_v56 = vld [vmem:[%s9069_s1 + $0x48] sm:$0xff] }
 0x1db   : > { %v1344_v38 = vpop.f32.mrb[14].mxu0  ;;  %v6224_v34 = vpop.eup %6223  ;;  %6243 = vtanh.f32 %v1452_v23  ;;  %5698 = vmatprep.subr.bf16.mxu0 %v5697_v51  ;;  %v5713_v58 = vpack.c.bf16 %v6222_v53, %v6214_v15  ;;  %536 = vperm.xlu1 %6098, %v5367_v56   ;;  %v5374_v21 = vld [vmem:[%s9070_s2 + $0x40] sm:$0xff]  ;;  %v5368_v23 = vld [vmem:[%s9069_s1 + $0x50] sm:$0xff]  ;;  %v5375_v53 = vld [vmem:[%s9070_s2 + $0x48] sm:$0xff] }
 0x1dc   : > { %v1345_v47 = vadd.f32 %v1344_v38, %v1209_v57  ;;  %v1346_v63 = vpop.f32.mrb[15].mxu0  ;;  %v6226_v0 = vpop.eup %6225  ;;  %6245 = vtanh.f32 %v1454_v62  ;;  %5700 = vmatpush1.bf16.msra.mxu0 %v5699_v61  ;;  %v5366_v61 = vld [vmem:[%s9069_s1 + $0x40] sm:$0xff]  ;;  %v5372_v51 = vld [vmem:[%s9069_s1 + $0x70] sm:$0xff]  ;;  %v5377_v62 = vld [vmem:[%s9070_s2 + $0x58] sm:$0xff] }
 0x1dd   : > { %v1457_v1 = vpop.f32.mrb[14].mxu1  ;;  %v1347_v59 = vadd.f32 %v1346_v63, %v1209_v57  ;;  %v6228_v6 = vpop.eup %6227  ;;  %5714 = vmatprep.subr.bf16.mxu1 %v5713_v58  ;;  %531 = vperm.xlu0 %6097, %v5366_v61   ;;  %v5370_v29 = vld [vmem:[%s9069_s1 + $0x60] sm:$0xff]  ;;  %v5376_v38 = vld [vmem:[%s9070_s2 + $0x50] sm:$0xff]  ;;  %v5371_v63 = vld [vmem:[%s9069_s1 + $0x68] sm:$0xff] }
 0x1de   : > { %6247 = vtanh.f32 %v1345_v47  ;;  %v1458_v5 = vadd.f32 %v1457_v1, %v1209_v57  ;;  %v1459_v7 = vpop.f32.mrb[15].mxu1  ;;  %v6230_v8 = vpop.eup %6229  ;;  %5716 = vmatpush1.bf16.msra.mxu1 %v5715_v44  ;;  %v5379_v44 = vld [vmem:[%s9070_s2 + $0x68] sm:$0xff]  ;;  %v5456_v47 = vld [vmem:[%s9072_s4 + $0x40] sm:$0xff]  ;;  %v5458_v58 = vld [vmem:[%s9072_s4 + $0x50] sm:$0xff] }
 0x1df   : > { %6249 = vtanh.f32 %v1347_v59  ;;  %v1460_v9 = vadd.f32 %v1459_v7, %v1209_v57  ;;  %v6232_v11 = vpop.eup %6231  ;;  %6099 = vset.pattern.permute.xlu1 %v9081_v2  ;;  %v5369_v57 = vld [vmem:[%s9069_s1 + $0x58] sm:$0xff]  ;;  %v5460_v1 = vld [vmem:[%s9072_s4 + $0x60] sm:$0xff]  ;;  %v5462_v59 = vld [vmem:[%s9072_s4 + $0x70] sm:$0xff] }
 0x1e0   : > { %6251 = vtanh.f32 %v1458_v5  ;;  %v6234_v12 = vpop.eup %6233  ;;  %v5703_v13 = vpack.c.bf16 %v6232_v11, %v6224_v34  ;;  %612 = vperm.xlu1 %6099, %v5374_v21   ;;  %v5381_v34 = vld [vmem:[%s9070_s2 + $0x78] sm:$0xff]  ;;  %v5490_v5 = vld [vmem:[%s9074_s6 + $0x50] sm:$0xff] }
 0x1e1   : > { %6253 = vtanh.f32 %v1460_v9  ;;  %v6236_v16 = vpop.eup %6235  ;;  %v5701_v17 = vpack.c.bf16 %v6234_v12, %v6226_v0  ;;  %541 = vperm.xlu0 %6097, %v5368_v23   ;;  %v5378_v0 = vld [vmem:[%s9070_s2 + $0x60] sm:$0xff]  ;;  %v5373_v7 = vld [vmem:[%s9069_s1 + $0x78] sm:$0xff]  ;;  %v5380_v9 = vld [vmem:[%s9070_s2 + $0x70] sm:$0xff] }
 0x1e2   : > { %v6238_v10 = vpop.eup %6237  ;;  %v5719_v18 = vpack.c.bf16 %v6236_v16, %v6228_v6  ;;  %v5488_v6 = vld [vmem:[%s9074_s6 + $0x40] sm:$0xff]  ;;  %v5494_v11 = vld [vmem:[%s9074_s6 + $0x70] sm:$0xff]  ;;  %v5459_v16 = vld [vmem:[%s9072_s4 + $0x58] sm:$0xff] }
 0x1e3   : > { %v6240_v19 = vpop.eup %6239  ;;  %5702 = vmatprep.subr.bf16.mxu0 %v5701_v17  ;;  %v5717_v20 = vpack.c.bf16 %v6238_v10, %v6230_v8  ;;  %v5492_v8 = vld [vmem:[%s9074_s6 + $0x60] sm:$0xff]  ;;  %v1513_v17 = vpop.permute.xlu1 %1512 }
 0x1e4   : > { %v6242_v25 = vpop.eup %6241  ;;  %5704 = vmatpush1.bf16.msra.mxu0 %v5703_v13  ;;  %2064 = vperm.xlu1 %6099, %v5366_v61   ;;  %v5513_v12 = vld [vmem:[%s9076_s8 + $0x2] sm:$0x3]  ;;  %v5457_v13 = vld [vmem:[%s9072_s4 + $0x48] sm:$0xff] }
 0x1e5   : > { %v6244_v26 = vpop.eup %6243  ;;  %5718 = vmatprep.subr.bf16.mxu1 %v5717_v20  ;;  %551 = vperm.xlu0 %6097, %v5370_v29  }
 0x1e6   : > { %v6246_v54 = vpop.eup %6245  ;;  %5720 = vmatpush1.bf16.msra.mxu1 %v5719_v18  ;;  %v5461_v18 = vld [vmem:[%s9072_s4 + $0x68] sm:$0xff] }
 0x1e8   : > { %v6248_v28 = vpop.eup %6247  ;;  %2068 = vperm.xlu1 %6099, %v5367_v56  }
 0x1e9   : > { %v6250_v22 = vpop.eup %6249  ;;  %v5707_v30 = vpack.c.bf16 %v6248_v28, %v6240_v19  ;;  %561 = vperm.xlu0 %6097, %v5372_v51  }
 0x1ea   : > { %v6252_v14 = vpop.eup %6251  ;;  %v5705_v31 = vpack.c.bf16 %v6250_v22, %v6242_v25  ;;  %v1518_v22 = vpop.permute.xlu0 %1517 }
 0x1eb   : > { %v6254_v33 = vpop.eup %6253  ;;  %v5723_v37 = vpack.c.bf16 %v6252_v14, %v6244_v26 }
 0x1ec   : > { %5706 = vmatprep.subr.bf16.mxu0 %v5705_v31  ;;  %v5721_v15 = vpack.c.bf16 %v6254_v33, %v6246_v54  ;;  %6100 = vset.pattern.permute.xlu1 %v9079_v3  ;;  %v5463_v31 = vld [vmem:[%s9072_s4 + $0x78] sm:$0xff] }
 0x1ed   : > { %5708 = vmatpush1.bf16.msra.mxu0 %v5707_v30  ;;  %6104 = vset.pattern.permute.xlu0 %v9081_v2 }
 0x1ee   : > { %5722 = vmatprep.subr.bf16.mxu1 %v5721_v15  ;;  %617 = vperm.xlu0 %6104, %v5375_v53  }
 0x1ef   : > { %5724 = vmatpush1.bf16.msra.mxu1 %v5723_v37  ;;  %546 = vperm.xlu1 %6100, %v5369_v57  }
 0x1f0   : > { %5430 = vmatmul.mubr.msk.f32.vlgmr.msra.gmra.mrb[16].mxu0 %vm1211_vm0, %v1494_v35 }
 0x1f1   : > { %1644 = vmatprep.mubr.f32.mxu0 %v9083_v32 }
 0x1f2   : > { %5438 = vmatmul.mubr.msk.f32.vlgmr.msra.gmra.mrb[16].mxu1 %vm1211_vm0, %v1494_v35  ;;  %627 = vperm.xlu0 %6104, %v5377_v62   ;;  %v5491_v62 = vld [vmem:[%s9074_s6 + $0x58] sm:$0xff] }
 0x1f3   : > { %1757 = vmatprep.mubr.f32.mxu1 %v9083_v32  ;;  %6101 = vset.pattern.permute.xlu1 %v9081_v2 }
 0x1f4   : > { %5431 = vmatmul.mubr.msk.f32.gmra.mrb[18].mxu0 %vm1211_vm0, %v1495_v24  ;;  %622 = vperm.xlu1 %6101, %v5376_v38  }
 0x1f5   : > { %1650 = vmatprep.mubr.f32.mxu0 %v9083_v32 }
 0x1f6   : > { %5439 = vmatmul.mubr.msk.f32.gmra.mrb[18].mxu1 %vm1211_vm0, %v1495_v24  ;;  %637 = vperm.xlu0 %6104, %v5379_v44  }
 0x1f7   : > { %1763 = vmatprep.mubr.f32.mxu1 %v9083_v32 }
 0x1f8   : > { %5432 = vmatmul.mubr.msk.f32.gmra.mrb[20].mxu0 %vm1211_vm0, %v1496_v27  ;;  %2072 = vperm.xlu1 %6101, %v5368_v23  }
 0x1f9   : > { %1656 = vmatprep.mubr.f32.mxu0 %v9083_v32 }
 0x1fa   : > { %5440 = vmatmul.mubr.msk.f32.gmra.mrb[20].mxu1 %vm1211_vm0, %v1496_v27  ;;  %647 = vperm.xlu0 %6104, %v5381_v34  }
 0x1fb   : > { %1769 = vmatprep.mubr.f32.mxu1 %v9083_v32 }
 0x1fc   : > { %5433 = vmatmul.mubr.msk.f32.gmra.mrb[22].mxu0 %vm1211_vm0, %v1497_v40  ;;  %2076 = vperm.xlu1 %6101, %v5369_v57  }
 0x1fd   : > { %1662 = vmatprep.mubr.f32.mxu0 %v9083_v32 }
 0x1fe   : > { %5441 = vmatmul.mubr.msk.f32.gmra.mrb[22].mxu1 %vm1211_vm0, %v1497_v40  ;;  %2211 = vperm.xlu0 %6104, %v5456_v47   ;;  %v1523_v40 = vpop.permute.xlu1 %1522 }
 0x1ff   : > { %1775 = vmatprep.mubr.f32.mxu1 %v9083_v32 }
 0x200   : > { %5434 = vmatmul.mubr.msk.f32.gmra.mrb[24].mxu0 %vm1211_vm0, %v1498_v41  ;;  %6102 = vset.pattern.permute.xlu1 %v9079_v3 }
 0x201   : > { %1668 = vmatprep.mubr.f32.mxu0 %v9083_v32  ;;  %556 = vperm.xlu1 %6102, %v5371_v63  }
 0x202   : > { %5442 = vmatmul.mubr.msk.f32.gmra.mrb[24].mxu1 %vm1211_vm0, %v1498_v41  ;;  %2221 = vperm.xlu0 %6104, %v5458_v58  }
 0x203   : > { %1781 = vmatprep.mubr.f32.mxu1 %v9083_v32 }
 0x204   : > { %5435 = vmatmul.mubr.msk.f32.gmra.mrb[26].mxu0 %vm1211_vm0, %v1499_v4 }
 0x205   : > { %1674 = vmatprep.mubr.f32.mxu0 %v9083_v32  ;;  %6103 = vset.pattern.permute.xlu1 %v9081_v2 }
 0x206   : > { %5443 = vmatmul.mubr.msk.f32.gmra.mrb[26].mxu1 %vm1211_vm0, %v1499_v4  ;;  %632 = vperm.xlu1 %6103, %v5378_v0  }
 0x207   : > { %1787 = vmatprep.mubr.f32.mxu1 %v9083_v32  ;;  %2231 = vperm.xlu0 %6104, %v5460_v1  }
 0x208   : > { %5436 = vmatmul.mubr.msk.f32.gmra.mrb[28].mxu0 %vm1211_vm0, %v1500_v45 }
 0x209   : > { %1680 = vmatprep.mubr.f32.mxu0 %v9083_v32 }
 0x20a   : > { %5444 = vmatmul.mubr.msk.f32.gmra.mrb[28].mxu1 %vm1211_vm0, %v1500_v45  ;;  %2080 = vperm.xlu1 %6103, %v5370_v29   ;;  %v5489_v45 = vld [vmem:[%s9074_s6 + $0x48] sm:$0xff] }
 0x20b   : > { %1793 = vmatprep.mubr.f32.mxu1 %v9083_v32  ;;  %2241 = vperm.xlu0 %6104, %v5462_v59  }
 0x20c   : > { %5437 = vmatmul.mubr.msk.f32.gmra.mrb[30].mxu0 %vm1211_vm0, %v1501_v46 }
 0x20d   : > { %1906 = vmatprep.mubr.f32.mxu0 %v9083_v32 }
 0x20e   : > { %5445 = vmatmul.mubr.msk.f32.gmra.mrb[30].mxu1 %vm1211_vm0, %v1501_v46  ;;  %2084 = vperm.xlu1 %6103, %v5371_v63  }
 0x20f   : > { %1977 = vmatprep.mubr.f32.mxu1 %v9083_v32  ;;  %2551 = vperm.xlu0 %6104, %v5488_v6  }
 0x212   : > { %6105 = vset.pattern.permute.xlu1 %v9079_v3 }
 0x213   : > { %2561 = vperm.xlu0 %6104, %v5490_v5   ;;  %566 = vperm.xlu1 %6105, %v5373_v7   ;;  %v1533_v5 = vpop.permute.xlu1 %1532 }
 0x217   : > { %2571 = vperm.xlu0 %6104, %v5492_v8   ;;  %6106 = vset.pattern.permute.xlu1 %v9081_v2 }
 0x218   : > { %642 = vperm.xlu1 %6106, %v5380_v9   ;;  %v5493_v9 = vld [vmem:[%s9074_s6 + $0x68] sm:$0xff] }
 0x21b   : > { %2581 = vperm.xlu0 %6104, %v5494_v11  }
 0x21c   : > { %2088 = vperm.xlu1 %6106, %v5372_v51   ;;  %v1528_v51 = vpop.permute.xlu0 %1527 }
 0x21f   : > { %2877 = vperm.xlu0 %6104, %v5513_v12  }
 0x220   : > { %2092 = vperm.xlu1 %6106, %v5373_v7  }
 0x223   : > { %6108 = vset.pattern.permute.xlu0 %v9079_v3 }
 0x224   : > { %2216 = vperm.xlu1 %6106, %v5457_v13  }
 0x228   : > { %2226 = vperm.xlu1 %6106, %v5459_v16  }
 0x22c   : > { %2236 = vperm.xlu1 %6106, %v5461_v18  }
 0x230   : > { %2246 = vperm.xlu1 %6106, %v5463_v31   ;;  %v5495_v31 = vld [vmem:[%s9074_s6 + $0x78] sm:$0xff] }
 0x234   : > { %2556 = vperm.xlu1 %6106, %v5489_v45  }
 0x238   : > { %2566 = vperm.xlu1 %6106, %v5491_v62  }
 0x23c   : > { %2576 = vperm.xlu1 %6106, %v5493_v9  }
 0x240   : > { %2586 = vperm.xlu1 %6106, %v5495_v31  }
 0x244   : > { %6107 = vset.pattern.permute.xlu1 %v9079_v3 }
 0x2c3   : > { %v1640_v10 = vpop.f32.mrb[16].mxu0 }
 0x2c4   : > { %v1641_v19 = vadd.f32 %v1640_v10, %v1513_v17  ;;  %v1642_v20 = vpop.f32.mrb[17].mxu0 }
 0x2c5   : > { %v1753_v25 = vpop.f32.mrb[16].mxu1  ;;  %v1643_v26 = vadd.f32 %v1642_v20, %v1513_v17 }
 0x2c6   : > { %6255 = vtanh.f32 %v1641_v19  ;;  %v1754_v54 = vadd.f32 %v1753_v25, %v1513_v17  ;;  %v1755_v28 = vpop.f32.mrb[17].mxu1 }
 0x2c7   : > { %6257 = vtanh.f32 %v1643_v26  ;;  %v1756_v30 = vadd.f32 %v1755_v28, %v1513_v17  ;;  %v1646_v14 = vpop.f32.mrb[18].mxu0  ;;  %v1538_v28 = vpop.permute.xlu0 %1537 }
 0x2c8   : > { %6259 = vtanh.f32 %v1754_v54  ;;  %v1647_v33 = vadd.f32 %v1646_v14, %v1518_v22  ;;  %v1648_v37 = vpop.f32.mrb[19].mxu0 }
 0x2c9   : > { %6261 = vtanh.f32 %v1756_v30  ;;  %v1759_v15 = vpop.f32.mrb[18].mxu1  ;;  %v1649_v35 = vadd.f32 %v1648_v37, %v1518_v22 }
 0x2ca   : > { %6263 = vtanh.f32 %v1647_v33  ;;  %v1760_v24 = vadd.f32 %v1759_v15, %v1518_v22  ;;  %v1761_v27 = vpop.f32.mrb[19].mxu1 }
 0x2cb   : > { %6265 = vtanh.f32 %v1649_v35  ;;  %v1762_v41 = vadd.f32 %v1761_v27, %v1518_v22  ;;  %v1652_v4 = vpop.f32.mrb[20].mxu0 }
 0x2cc   : > { %6267 = vtanh.f32 %v1760_v24  ;;  %v1653_v46 = vadd.f32 %v1652_v4, %v1523_v40  ;;  %v1654_v56 = vpop.f32.mrb[21].mxu0 }
 0x2cd   : > { %6269 = vtanh.f32 %v1762_v41  ;;  %v1765_v61 = vpop.f32.mrb[20].mxu1  ;;  %v1655_v21 = vadd.f32 %v1654_v56, %v1523_v40  ;;  %v1543_v56 = vpop.permute.xlu1 %1542 }
 0x2ce   : > { %6271 = vtanh.f32 %v1653_v46  ;;  %v1766_v23 = vadd.f32 %v1765_v61, %v1523_v40  ;;  %v1767_v29 = vpop.f32.mrb[21].mxu1 }
 0x2cf   : > { %6273 = vtanh.f32 %v1655_v21  ;;  %v1768_v53 = vadd.f32 %v1767_v29, %v1523_v40  ;;  %v1658_v57 = vpop.f32.mrb[22].mxu0 }
 0x2d0   : > { %v6256_v38 = vpop.eup %6255  ;;  %6275 = vtanh.f32 %v1766_v23  ;;  %v1659_v44 = vadd.f32 %v1658_v57, %v1528_v51  ;;  %v1660_v34 = vpop.f32.mrb[23].mxu0 }
 0x2d1   : > { %v6258_v47 = vpop.eup %6257  ;;  %6277 = vtanh.f32 %v1768_v53  ;;  %v1771_v63 = vpop.f32.mrb[22].mxu1  ;;  %v1661_v58 = vadd.f32 %v1660_v34, %v1528_v51 }
 0x2d2   : > { %v6260_v0 = vpop.eup %6259  ;;  %6279 = vtanh.f32 %v1659_v44  ;;  %v1772_v1 = vadd.f32 %v1771_v63, %v1528_v51  ;;  %v1773_v59 = vpop.f32.mrb[23].mxu1 }
 0x2d3   : > { %v6262_v6 = vpop.eup %6261  ;;  %6281 = vtanh.f32 %v1661_v58  ;;  %v1774_v7 = vadd.f32 %v1773_v59, %v1528_v51  ;;  %v1664_v8 = vpop.f32.mrb[24].mxu0 }
 0x2d4   : > { %v6264_v11 = vpop.eup %6263  ;;  %6283 = vtanh.f32 %v1772_v1  ;;  %v1665_v12 = vadd.f32 %v1664_v8, %v1533_v5  ;;  %v1666_v13 = vpop.f32.mrb[25].mxu0 }
 0x2d5   : > { %v6266_v16 = vpop.eup %6265  ;;  %6285 = vtanh.f32 %v1774_v7  ;;  %v1777_v17 = vpop.f32.mrb[24].mxu1  ;;  %v1667_v10 = vadd.f32 %v1666_v13, %v1533_v5  ;;  %v5727_v18 = vpack.c.bf16 %v6264_v11, %v6256_v38 }
 0x2d6   : > { %v6268_v19 = vpop.eup %6267  ;;  %6287 = vtanh.f32 %v1665_v12  ;;  %v1778_v20 = vadd.f32 %v1777_v17, %v1533_v5  ;;  %v1779_v25 = vpop.f32.mrb[25].mxu1  ;;  %v5725_v26 = vpack.c.bf16 %v6266_v16, %v6258_v47 }
 0x2d7   : > { %v6270_v54 = vpop.eup %6269  ;;  %6289 = vtanh.f32 %v1667_v10  ;;  %v1780_v22 = vadd.f32 %v1779_v25, %v1533_v5  ;;  %v1670_v30 = vpop.f32.mrb[26].mxu0  ;;  %v5743_v14 = vpack.c.bf16 %v6268_v19, %v6260_v0 }
 0x2d8   : > { %v6272_v33 = vpop.eup %6271  ;;  %6291 = vtanh.f32 %v1778_v20  ;;  %v1671_v37 = vadd.f32 %v1670_v30, %v1538_v28  ;;  %v1672_v15 = vpop.f32.mrb[27].mxu0  ;;  %5726 = vmatprep.subr.bf16.mxu0 %v5725_v26  ;;  %v5741_v35 = vpack.c.bf16 %v6270_v54, %v6262_v6 }
 0x2d9   : > { %v6274_v24 = vpop.eup %6273  ;;  %6293 = vtanh.f32 %v1780_v22  ;;  %v1783_v27 = vpop.f32.mrb[26].mxu1  ;;  %v1673_v40 = vadd.f32 %v1672_v15, %v1538_v28  ;;  %5728 = vmatpush1.bf16.msra.mxu0 %v5727_v18 }
 0x2da   : > { %v6276_v41 = vpop.eup %6275  ;;  %6295 = vtanh.f32 %v1671_v37  ;;  %v1784_v4 = vadd.f32 %v1783_v27, %v1538_v28  ;;  %v1785_v45 = vpop.f32.mrb[27].mxu1  ;;  %5742 = vmatprep.subr.bf16.mxu1 %v5741_v35 }
 0x2db   : > { %v6278_v46 = vpop.eup %6277  ;;  %6297 = vtanh.f32 %v1673_v40  ;;  %v1786_v61 = vadd.f32 %v1785_v45, %v1538_v28  ;;  %5744 = vmatpush1.bf16.msra.mxu1 %v5743_v14  ;;  %v1676_v21 = vpop.f32.mrb[28].mxu0 }
 0x2dc   : > { %v6280_v23 = vpop.eup %6279  ;;  %6299 = vtanh.f32 %v1784_v4  ;;  %v1677_v29 = vadd.f32 %v1676_v21, %v1543_v56  ;;  %v1678_v51 = vpop.f32.mrb[29].mxu0 }
 0x2dd   : > { %v6282_v53 = vpop.eup %6281  ;;  %6301 = vtanh.f32 %v1786_v61  ;;  %v1789_v57 = vpop.f32.mrb[28].mxu1  ;;  %v1679_v62 = vadd.f32 %v1678_v51, %v1543_v56  ;;  %v5731_v38 = vpack.c.bf16 %v6280_v23, %v6272_v33 }
 0x2de   : > { %v6284_v44 = vpop.eup %6283  ;;  %6303 = vtanh.f32 %v1677_v29  ;;  %v1790_v34 = vadd.f32 %v1789_v57, %v1543_v56  ;;  %v1791_v47 = vpop.f32.mrb[29].mxu1  ;;  %v5729_v63 = vpack.c.bf16 %v6282_v53, %v6274_v24 }
 0x2df   : > { %v6286_v58 = vpop.eup %6285  ;;  %v1548_v0 = vpop.permute.xlu0 %1547  ;;  %6305 = vtanh.f32 %v1679_v62  ;;  %v1792_v1 = vadd.f32 %v1791_v47, %v1543_v56  ;;  %v5747_v6 = vpack.c.bf16 %v6284_v44, %v6276_v41  ;;  %v1832_v56 = vld [vmem:[%s9075_s7] sm:$0x3] }
 0x2e0   : > { %v1682_v59 = vpop.f32.mrb[30].mxu0  ;;  %v6288_v5 = vpop.eup %6287  ;;  %6307 = vtanh.f32 %v1790_v34  ;;  %5730 = vmatprep.subr.bf16.mxu0 %v5729_v63  ;;  %v5745_v9 = vpack.c.bf16 %v6286_v58, %v6278_v46 }
 0x2e1   : > { %v1683_v7 = vadd.f32 %v1682_v59, %v1548_v0  ;;  %v1684_v8 = vpop.f32.mrb[31].mxu0  ;;  %v6290_v11 = vpop.eup %6289  ;;  %6309 = vtanh.f32 %v1792_v1  ;;  %5732 = vmatpush1.bf16.msra.mxu0 %v5731_v38 }
 0x2e2   : > { %v1795_v12 = vpop.f32.mrb[30].mxu1  ;;  %v1685_v13 = vadd.f32 %v1684_v8, %v1548_v0  ;;  %v6292_v16 = vpop.eup %6291  ;;  %5746 = vmatprep.subr.bf16.mxu1 %v5745_v9 }
 0x2e3   : > { %6311 = vtanh.f32 %v1683_v7  ;;  %v1796_v17 = vadd.f32 %v1795_v12, %v1548_v0  ;;  %v1797_v10 = vpop.f32.mrb[31].mxu1  ;;  %v6294_v18 = vpop.eup %6293  ;;  %5748 = vmatpush1.bf16.msra.mxu1 %v5747_v6 }
 0x2e4   : > { %6313 = vtanh.f32 %v1685_v13  ;;  %v1798_v19 = vadd.f32 %v1797_v10, %v1548_v0  ;;  %v6296_v20 = vpop.eup %6295  ;;  %v1837_v61 = vpop.permute.xlu1 %1836  ;;  %v7003_v10 = vmov 1966171168  }
 0x2e5   : > { %6315 = vtanh.f32 %v1796_v17  ;;  %v6298_v25 = vpop.eup %6297  ;;  %v5735_v26 = vpack.c.bf16 %v6296_v20, %v6288_v5  ;;  %v532_v44 = vpop.permute.xlu0 %531 }
 0x2e6   : > { %6317 = vtanh.f32 %v1798_v19  ;;  %v6300_v54 = vpop.eup %6299  ;;  %v5733_v28 = vpack.c.bf16 %v6298_v25, %v6290_v11 }
 0x2e7   : > { %v6302_v22 = vpop.eup %6301  ;;  %v5751_v30 = vpack.c.bf16 %v6300_v54, %v6292_v16 }
 0x2e8   : > { %v6304_v14 = vpop.eup %6303  ;;  %5734 = vmatprep.subr.bf16.mxu0 %v5733_v28  ;;  %v5749_v31 = vpack.c.bf16 %v6302_v22, %v6294_v18  ;;  %v537_v21 = vpop.permute.xlu1 %536  ;;  %v1999_v18 = vunpack.c.l.s4 %v7003_v10 }
 0x2e9   : > { %v6306_v33 = vpop.eup %6305  ;;  %5736 = vmatpush1.bf16.msra.mxu0 %v5735_v26  ;;  %v542_v47 = vpop.permute.xlu0 %541 }
 0x2ea   : > { %v6308_v37 = vpop.eup %6307  ;;  %5750 = vmatprep.subr.bf16.mxu1 %v5749_v31  ;;  %v2000_v25 = vunpack.c.0.s8 %v1999_v18 }
 0x2eb   : > { %v6310_v15 = vpop.eup %6309  ;;  %5752 = vmatpush1.bf16.msra.mxu1 %v5751_v30 }
 0x2ec   : > { %v7587_v23 = vpop.permute.xlu1 %612  ;;  %v7622_v54 = vsub.s32 %v2000_v25, %v7219_v39  ;;  %v571_v39 = vmul.f32 %v532_v44, %v7247_v52 }
 0x2ed   : > { %v6312_v35 = vpop.eup %6311  ;;  %v552_v5 = vpop.permute.xlu0 %551 }
 0x2ee   : > { %v6314_v24 = vpop.eup %6313  ;;  %v5739_v27 = vpack.c.bf16 %v6312_v35, %v6304_v14  ;;  %9124 = vst [vmem:[#allocation13_spill] sm:$0xff] %v7622_v54  ;;  %v7667_v25 = vmul.f32 %v552_v5, %v7241_v50 }
 0x2ef   : > { %v6316_v40 = vpop.eup %6315  ;;  %v5737_v41 = vpack.c.bf16 %v6314_v24, %v6306_v33  ;;  %v569_v24 = vmul.f32 %v532_v44, %v7241_v50 }
 0x2f0   : > { %v6318_v4 = vpop.eup %6317  ;;  %v5755_v45 = vpack.c.bf16 %v6316_v40, %v6308_v37  ;;  %v7589_v29 = vpop.permute.xlu1 %2064 }
 0x2f1   : > { %5738 = vmatprep.subr.bf16.mxu0 %v5737_v41  ;;  %v5753_v46 = vpack.c.bf16 %v6318_v4, %v6310_v15  ;;  %v562_v19 = vpop.permute.xlu0 %561  ;;  %v572_v41 = vmul.f32 %v532_v44, %v7263_v60  ;;  %v573_v4 = vmul.f32 %v537_v21, %v7241_v50 }
 0x2f2   : > { %5740 = vmatpush1.bf16.msra.mxu0 %v5739_v27  ;;  %v570_v27 = vmul.f32 %v532_v44, %v7255_v55  ;;  %v7650_v44 = vmul.f32 %v542_v47, %v7263_v60 }
 0x2f3   : > { %5754 = vmatprep.subr.bf16.mxu1 %v5753_v46  ;;  %v574_v46 = vmul.f32 %v537_v21, %v7255_v55  ;;  %v7664_v18 = vadd.f32 %v7587_v23, %v572_v41 }
 0x2f4   : > { %5756 = vmatpush1.bf16.msra.mxu1 %v5755_v45  ;;  %v7591_v51 = vpop.permute.xlu1 %2068 }
 0x2f5   : > { %5446 = vmatmul.mubr.msk.f32.vlgmr.msra.gmra.mrb[32].mxu0 %vm1211_vm0, %v1832_v56  ;;  %v7624_v28 = vpop.permute.xlu0 %617 }
 0x2f6   : > { %2337 = vmatprep.mubr.f32.mxu0 %v9083_v32 }
 0x2f7   : > { %5447 = vmatmul.mubr.msk.f32.vlgmr.msra.gmra.mrb[32].mxu1 %vm1211_vm0, %v1832_v56  ;;  %v575_v56 = vmul.f32 %v537_v21, %v7247_v52 }
 0x2f8   : > { %2450 = vmatprep.mubr.f32.mxu1 %v9083_v32  ;;  %v7593_v53 = vpop.permute.xlu1 %546 }
 0x2f9   : > { %v7626_v37 = vpop.permute.xlu0 %627 }
 0x2fc   : > { %v7595_v57 = vpop.permute.xlu1 %622 }
 0x300   : > { %v7597_v62 = vpop.permute.xlu1 %2072 }
 0x304   : > { %v7599_v38 = vpop.permute.xlu1 %2076 }
 0x308   : > { %v7601_v34 = vpop.permute.xlu1 %556 }
 0x30c   : > { %v7603_v63 = vpop.permute.xlu1 %632 }
 0x310   : > { %v7612_v11 = vpop.permute.xlu1 %2080 }
 0x314   : > { %v7619_v20 = vpop.permute.xlu1 %2084 }
 0x318   : > { %v567_v30 = vpop.permute.xlu1 %566 }
 0x319   : > { %v600_v36 = vmul.f32 %v567_v30, %v7263_v60 }
 0x31c   : > { %v7635_v45 = vpop.permute.xlu1 %642 }
 0x3c8   : > { %v1908_v58 = vpop.f32.mrb[32].mxu0 }
 0x3c9   : > { %v7605_v0 = vadd.f32 %v1908_v58, %v1837_v61  ;;  %v1910_v1 = vpop.f32.mrb[33].mxu0 }
 0x3ca   : > { %v1979_v59 = vpop.f32.mrb[32].mxu1  ;;  %v7607_v6 = vadd.f32 %v1910_v1, %v1837_v61  ;;  %v7641_v1 = vmul.f32 %v542_v47, %v7241_v50 }
 0x3cb   : > { %9120 = vst [vmem:[#allocation9_spill] sm:$0xff] %v7605_v0  ;;  %v1984_v7 = vmul.f32 1.442695, %v7605_v0  ;;  %v7610_v8 = vadd.f32 %v1979_v59, %v1837_v61  ;;  %v1981_v9 = vpop.f32.mrb[33].mxu1  ;;  %v7644_v59 = vmul.f32 %v542_v47, %v7255_v55 }
 0x3cc   : > { %9121 = vst [vmem:[#allocation10_spill] sm:$0xff] %v7607_v6  ;;  %v1986_v12 = vmul.f32 1.442695, %v7607_v6  ;;  %v7615_v13 = vadd.f32 %v1981_v9, %v1837_v61  ;;  %v576_v61 = vmul.f32 %v537_v21, %v7263_v60  ;;  %v5364_v9 = vld [vmem:[%s7224_s16 + $0x1] ss:$4 sm:$0xf]  ;;  %v7658_v21 = vadd.f32 %v7587_v23, %v571_v39 }
 0x3cd   : > { %9122 = vst [vmem:[#allocation11_spill] sm:$0xff] %v7610_v8  ;;  %6319 = vpow2.f32 %v1984_v7  ;;  %v1988_v16 = vmul.f32 1.442695, %v7610_v8  ;;  %v7647_v7 = vmul.f32 %v542_v47, %v7247_v52  ;;  %v7670_v47 = vmul.f32 %v552_v5, %v7255_v55 }
 0x3ce   : > { %9123 = vst [vmem:[#allocation12_spill] sm:$0xff] %v7615_v13  ;;  %6321 = vpow2.f32 %v1986_v12  ;;  %v1990_v17 = vmul.f32 1.442695, %v7615_v13  ;;  %v7654_v12 = vadd.f32 %v7587_v23, %v569_v24  ;;  %v599_v24 = vmul.f32 %v567_v30, %v7247_v52 }
 0x3cf   : > { %6323 = vpow2.f32 %v1988_v16  ;;  %v651_v16 = vadd.f32 %v7587_v23, %v570_v27  ;;  %v7690_v27 = vpop.permute.xlu1 %2088 }
 0x3d0   : > { %6325 = vpow2.f32 %v1990_v17  ;;  %v7660_v17 = vpop.permute.xlu0 %637 }
 0x3d4   : > { %v648_v3 = vpop.permute.xlu0 %647 }
 0x3d7   : > { %v6320_v26 = vpop.eup %6319 }
 0x3d8   : > { %v6322_v22 = vpop.eup %6321 }
 0x3d9   : > { %v6324_v14 = vpop.eup %6323  ;;  %v1996_v31 = vcombine.low %v6320_v26, %v6322_v22  ;;  %v7673_v26 = vmul.f32 %v552_v5, %v7247_v52  ;;  %v7676_v22 = vmul.f32 %v552_v5, %v7263_v60 }
 0x3da   : > { %v6326_v33 = vpop.eup %6325 }
 0x3db   : > { %v2004_v15 = vrot.slane %v1996_v31, %v7622_v54  ;;  %v1997_v35 = vcombine.low %v6324_v14, %v6326_v33  ;;  %v7679_v14 = vmul.f32 %v562_v19, %v7241_v50  ;;  %v7682_v31 = vmul.f32 %v562_v19, %v7255_v55 }
 0x3dc   : > { %v7685_v33 = vmul.f32 %v562_v19, %v7247_v52 }
 0x3dd   : > { %v2011_v40 = vrot.slane %v1997_v35, %v7622_v54  ;;  %v598_v35 = vmul.f32 %v567_v30, %v7255_v55 }
 0x3de   : > { %9125 = vst [vmem:[#allocation14_spill] sm:$0xff] %v7685_v33 }
 0x3df   : > { %v2012_v58 = vcombine.high %v2004_v15, %v2011_v40  ;;  %v597_v15 = vmul.f32 %v567_v30, %v7241_v50 }
 0x3e1   : > { %v2019_v10 = vrot.slane %v2012_v58, %v7622_v54  ;;  %v7697_v58 = vmul.f32 %v562_v19, %v7263_v60  ;;  %v656_v19 = vadd.f32 %v7624_v28, %v575_v56  ;;  %v581_v56 = vmul.f32 %v7593_v53, %v7241_v50 }
 0x3e3   : > { %v2021_v23 = vmul.f32 %v5364_v9, %v2019_v10  ;;  %v654_v9 = vadd.f32 %v7624_v28, %v573_v4  ;;  %v655_v10 = vadd.f32 %v7624_v28, %v574_v46  ;;  %v678_v4 = vadd.f32 %v648_v3, %v597_v15 }
 0x3e4   : > { %v680_v46 = vadd.f32 %v648_v3, %v599_v24  ;;  %v582_v15 = vmul.f32 %v7593_v53, %v7255_v55  ;;  %v681_v24 = vadd.f32 %v648_v3, %v600_v36  ;;  %v662_v54 = vadd.f32 %v7626_v37, %v581_v56 }
 0x3e5   : > { %v2026_v5 = vrot.slane %v2021_v23, %v7227_v42  ;;  %v2030_v39 = vrot.slane %v2021_v23, %v7235_v48  ;;  %v2034_v40 = vrot.slane %v2021_v23, %v7230_v43  ;;  %v2038_v41 = vrot.slane %v2021_v23, %v7238_v49 }
 0x3e6   : > { %v679_v49 = vadd.f32 %v648_v3, %v598_v35  ;;  %v583_v35 = vmul.f32 %v7593_v53, %v7247_v52 }
 0x3e7   : > { %v7703_v2 = vadd.f32 %v2026_v5, %v7605_v0  ;;  %v7706_v32 = vadd.f32 %v2030_v39, %v7607_v6  ;;  %v7709_v43 = vadd.f32 %v2034_v40, %v7610_v8  ;;  %v7712_v23 = vadd.f32 %v2038_v41, %v7615_v13  ;;  %v2093_v41 = vpop.permute.xlu1 %2092 }
 0x3e8   : > { %v657_v13 = vadd.f32 %v7624_v28, %v576_v61  ;;  %v584_v8 = vmul.f32 %v7593_v53, %v7263_v60  ;;  %v7755_v61 = vadd.f32 %v7626_v37, %v583_v35 }
 0x3e9   : > { %9126 = vst [vmem:[#allocation15_spill] sm:$0xff] %v7703_v2  ;;  %9127 = vst [vmem:[#allocation16_spill] sm:$0xff] %v7706_v32  ;;  %v7717_v30 = vrot.slane %v7703_v2, %v7227_v42  ;;  %v7721_v5 = vrot.slane %v7706_v32, %v7227_v42  ;;  %v7725_v39 = vrot.slane %v7709_v43, %v7227_v42 }
 0x3ea   : > { %9128 = vst [vmem:[#allocation17_spill] sm:$0xff] %v7709_v43  ;;  %9129 = vst [vmem:[#allocation18_spill] sm:$0xff] %v7712_v23  ;;  %v7729_v40 = vrot.slane %v7712_v23, %v7227_v42 }
 0x3eb   : > { %v2123_v32 = vmul.f32 %v2093_v41, %v7717_v30  ;;  %v2124_v43 = vmul.f32 %v2093_v41, %v7721_v5  ;;  %v2125_v2 = vmul.f32 %v2093_v41, %v7725_v39  ;;  %v2096_v6 = vmul.f32 %v7589_v29, %v7721_v5 }
 0x3ec   : > { %v2126_v23 = vmul.f32 %v2093_v41, %v7729_v40  ;;  %v2100_v3 = vmul.f32 %v7591_v51, %v7721_v5  ;;  %v2098_v42 = vmul.f32 %v7589_v29, %v7729_v40  ;;  %v663_v41 = vadd.f32 %v7626_v37, %v582_v15 }
 0x3ed   : > { %v2155_v36 = vadd.f32 %v2123_v32, %v678_v4  ;;  %v2156_v0 = vadd.f32 %v2124_v43, %v679_v49  ;;  %v2157_v48 = vadd.f32 %v2125_v2, %v680_v46  ;;  %v2102_v53 = vmul.f32 %v7591_v51, %v7729_v40 }
 0x3ee   : > { %v2158_v28 = vadd.f32 %v2126_v23, %v681_v24  ;;  %v2128_v33 = vadd.f32 %v2096_v6, %v651_v16  ;;  %v2095_v32 = vmul.f32 %v7589_v29, %v7717_v30  ;;  %v665_v2 = vadd.f32 %v7626_v37, %v584_v8 }
 0x3ef   : > { %6327 = vtanh.f32 %v2155_v36  ;;  %v2132_v43 = vadd.f32 %v2100_v3, %v655_v10  ;;  %v2099_v49 = vmul.f32 %v7591_v51, %v7717_v30  ;;  %v658_v23 = vadd.f32 %v7595_v57, %v7641_v1 }
 0x3f0   : > { %6329 = vtanh.f32 %v2156_v0  ;;  %v2130_v4 = vadd.f32 %v2098_v42, %v7664_v18  ;;  %v2097_v46 = vmul.f32 %v7589_v29, %v7725_v39  ;;  %v659_v6 = vadd.f32 %v7595_v57, %v7644_v59 }
 0x3f1   : > { %6331 = vtanh.f32 %v2157_v48  ;;  %v2134_v16 = vadd.f32 %v2102_v53, %v657_v13  ;;  %v2101_v0 = vmul.f32 %v7591_v51, %v7725_v39  ;;  %v660_v8 = vadd.f32 %v7595_v57, %v7647_v7 }
 0x3f2   : > { %6333 = vtanh.f32 %v2158_v28  ;;  %v2127_v37 = vadd.f32 %v2095_v32, %v7654_v12  ;;  %v2104_v42 = vmul.f32 %v7597_v62, %v7721_v5  ;;  %v661_v48 = vadd.f32 %v7595_v57, %v7650_v44 }
 0x3f3   : > { %6335 = vtanh.f32 %v2128_v33  ;;  %v2131_v29 = vadd.f32 %v2099_v49, %v654_v9  ;;  %v2108_v13 = vmul.f32 %v7599_v38, %v7721_v5  ;;  %v589_v51 = vmul.f32 %v7601_v34, %v7241_v50 }
 0x3f4   : > { %6337 = vtanh.f32 %v2132_v43  ;;  %v2129_v1 = vadd.f32 %v2097_v46, %v7658_v21  ;;  %v2106_v59 = vmul.f32 %v7597_v62, %v7729_v40  ;;  %v590_v7 = vmul.f32 %v7601_v34, %v7255_v55 }
 0x3f5   : > { %6339 = vtanh.f32 %v2130_v4  ;;  %v2133_v12 = vadd.f32 %v2101_v0, %v656_v19  ;;  %v2110_v57 = vmul.f32 %v7599_v38, %v7729_v40  ;;  %v591_v44 = vmul.f32 %v7601_v34, %v7247_v52 }
 0x3f6   : > { %6341 = vtanh.f32 %v2134_v16  ;;  %v2136_v18 = vadd.f32 %v2104_v42, %v659_v6  ;;  %v2103_v33 = vmul.f32 %v7597_v62, %v7717_v30  ;;  %v592_v21 = vmul.f32 %v7601_v34, %v7263_v60 }
 0x3f7   : > { %6343 = vtanh.f32 %v2127_v37  ;;  %v2140_v9 = vadd.f32 %v2108_v13, %v663_v41  ;;  %v2107_v10 = vmul.f32 %v7599_v38, %v7717_v30  ;;  %v670_v56 = vadd.f32 %v7660_v17, %v589_v51 }
 0x3f8   : > { %6345 = vtanh.f32 %v2131_v29  ;;  %v2138_v15 = vadd.f32 %v2106_v59, %v661_v48  ;;  %v2105_v35 = vmul.f32 %v7597_v62, %v7725_v39  ;;  %v671_v3 = vadd.f32 %v7660_v17, %v590_v7 }
 0x3f9   : > { %v7797_v19 = vpop.eup %6327  ;;  %6347 = vtanh.f32 %v2129_v1  ;;  %v2142_v34 = vadd.f32 %v2110_v57, %v665_v2  ;;  %v2109_v36 = vmul.f32 %v7599_v38, %v7725_v39  ;;  %v672_v28 = vadd.f32 %v7660_v17, %v591_v44 }
 0x3fa   : > { %v7802_v24 = vpop.eup %6329  ;;  %6349 = vtanh.f32 %v2133_v12  ;;  %v2135_v53 = vadd.f32 %v2103_v33, %v658_v23  ;;  %v2112_v32 = vmul.f32 %v7612_v11, %v7721_v5  ;;  %v673_v62 = vadd.f32 %v7660_v17, %v592_v21 }
 0x3fb   : > { %v7807_v41 = vpop.eup %6331  ;;  %6351 = vtanh.f32 %v2136_v18  ;;  %v2139_v49 = vadd.f32 %v2107_v10, %v662_v54  ;;  %v2116_v2 = vmul.f32 %v7619_v20, %v7721_v5  ;;  %v667_v38 = vadd.f32 %v7603_v63, %v7670_v47 }
 0x3fc   : > { %v7812_v43 = vpop.eup %6333  ;;  %6353 = vtanh.f32 %v2140_v9  ;;  %v2137_v46 = vadd.f32 %v2105_v35, %v660_v8  ;;  %v2114_v23 = vmul.f32 %v7612_v11, %v7729_v40  ;;  %v669_v16 = vadd.f32 %v7603_v63, %v7676_v22 }
 0x3fd   : > { %v6336_v4 = vpop.eup %6335  ;;  %6355 = vtanh.f32 %v2138_v15  ;;  %v2141_v17 = vadd.f32 %v2109_v36, %v7755_v61  ;;  %v2118_v54 = vmul.f32 %v7619_v20, %v7729_v40  ;;  %v2144_v42 = vadd.f32 %v2112_v32, %v667_v38  ;;  %v9130_v32 = vld [vmem:[#allocation14_spill] sm:$0xff] }
 0x3fe   : > { %v6338_v6 = vpop.eup %6337  ;;  %6357 = vtanh.f32 %v2142_v34  ;;  %v2111_v47 = vmul.f32 %v7612_v11, %v7717_v30  ;;  %v666_v48 = vadd.f32 %v7603_v63, %v7667_v25  ;;  %v2148_v29 = vadd.f32 %v2116_v2, %v671_v3 }
 0x3ff   : > { %v6340_v0 = vpop.eup %6339  ;;  %v5757_v37 = vpack.c.bf16 %v6338_v6, %v6336_v4  ;;  %6359 = vtanh.f32 %v2135_v53  ;;  %v2115_v22 = vmul.f32 %v7619_v20, %v7717_v30  ;;  %v2146_v51 = vadd.f32 %v2114_v23, %v669_v16 }
 0x400   : > { %v6342_v8 = vpop.eup %6341  ;;  %6361 = vtanh.f32 %v2139_v49  ;;  %v2113_v1 = vmul.f32 %v7612_v11, %v7725_v39  ;;  %v668_v7 = vadd.f32 %v7603_v63, %v7673_v26  ;;  %v2150_v12 = vadd.f32 %v2118_v54, %v673_v62 }
 0x401   : > { %v6344_v61 = vpop.eup %6343  ;;  %5758 = vmatprep.subr.bf16.mxu0 %v5757_v37  ;;  %v5773_v13 = vpack.c.bf16 %v6342_v8, %v6340_v0  ;;  %6363 = vtanh.f32 %v2137_v46  ;;  %v2117_v25 = vmul.f32 %v7619_v20, %v7725_v39  ;;  %v2143_v18 = vadd.f32 %v2111_v47, %v666_v48 }
 0x402   : > { %v6346_v59 = vpop.eup %6345  ;;  %6365 = vtanh.f32 %v2141_v17  ;;  %v2120_v33 = vmul.f32 %v7690_v27, %v7721_v5  ;;  %v675_v11 = vadd.f32 %v7635_v45, %v7682_v31  ;;  %v2147_v9 = vadd.f32 %v2115_v22, %v670_v56 }
 0x403   : > { %v6348_v57 = vpop.eup %6347  ;;  %5774 = vmatprep.subr.bf16.mxu1 %v5773_v13  ;;  %v5759_v44 = vpack.c.bf16 %v6346_v59, %v6344_v61  ;;  %6367 = vtanh.f32 %v2144_v42  ;;  %v2122_v63 = vmul.f32 %v7690_v27, %v7729_v40  ;;  %v2145_v10 = vadd.f32 %v2113_v1, %v668_v7  ;;  %v5448_v7 = vld [vmem:[%s9071_s3 + $0x40] sm:$0xff] }
 0x404   : > { %v6350_v21 = vpop.eup %6349  ;;  %6369 = vtanh.f32 %v2148_v29  ;;  %v2119_v15 = vmul.f32 %v7690_v27, %v7717_v30  ;;  %v677_v5 = vadd.f32 %v7635_v45, %v7697_v58  ;;  %v2149_v3 = vadd.f32 %v2117_v25, %v672_v28  ;;  %v5453_v25 = vld [vmem:[%s9071_s3 + $0x68] sm:$0xff] }
 0x405   : > { %v6352_v26 = vpop.eup %6351  ;;  %5760 = vmatpush1.bf16.msra.mxu0 %v5759_v44  ;;  %v5775_v20 = vpack.c.bf16 %v6350_v21, %v6348_v57  ;;  %6371 = vtanh.f32 %v2146_v51  ;;  %v2121_v31 = vmul.f32 %v7690_v27, %v7725_v39  ;;  %v674_v40 = vadd.f32 %v7635_v45, %v7679_v14  ;;  %v5454_v57 = vld [vmem:[%s9071_s3 + $0x70] sm:$0xff]  ;;  %v5455_v44 = vld [vmem:[%s9071_s3 + $0x78] sm:$0xff] }
 0x406   : > { %v6354_v35 = vpop.eup %6353  ;;  %6373 = vtanh.f32 %v2150_v12  ;;  %v2152_v36 = vadd.f32 %v2120_v33, %v675_v11  ;;  %v676_v30 = vadd.f32 %v7635_v45, %v9130_v32  ;;  %v2154_v62 = vadd.f32 %v2122_v63, %v677_v5  ;;  %v5452_v12 = vld [vmem:[%s9071_s3 + $0x60] sm:$0xff] }
 0x407   : > { %v6356_v56 = vpop.eup %6355  ;;  %5776 = vmatpush1.bf16.msra.mxu1 %v5775_v20  ;;  %v5761_v34 = vpack.c.bf16 %v6354_v35, %v6352_v26  ;;  %6375 = vtanh.f32 %v2143_v18  ;;  %v2151_v49 = vadd.f32 %v2119_v15, %v674_v40  ;;  %v2212_v18 = vpop.permute.xlu0 %2211 }
 0x408   : > { %v6358_v53 = vpop.eup %6357  ;;  %6377 = vtanh.f32 %v2147_v9  ;;  %v2153_v39 = vadd.f32 %v2121_v31, %v676_v30  ;;  %v2217_v15 = vpop.permute.xlu1 %2216 }
 0x409   : > { %v6360_v58 = vpop.eup %6359  ;;  %5762 = vmatprep.subr.bf16.mxu0 %v5761_v34  ;;  %v5777_v28 = vpack.c.bf16 %v6358_v53, %v6356_v56  ;;  %6379 = vtanh.f32 %v2145_v10 }
 0x40a   : > { %v6362_v27 = vpop.eup %6361  ;;  %6381 = vtanh.f32 %v2149_v3 }
 0x40b   : > { %v6364_v2 = vpop.eup %6363  ;;  %5778 = vmatprep.subr.bf16.mxu1 %v5777_v28  ;;  %v5763_v14 = vpack.c.bf16 %v6362_v27, %v6360_v58  ;;  %6383 = vtanh.f32 %v2152_v36  ;;  %v2222_v53 = vpop.permute.xlu0 %2221 }
 0x40c   : > { %v6366_v4 = vpop.eup %6365  ;;  %6385 = vtanh.f32 %v2154_v62 }
 0x40d   : > { %v6368_v38 = vpop.eup %6367  ;;  %5764 = vmatpush1.bf16.msra.mxu0 %v5763_v14  ;;  %v5779_v46 = vpack.c.bf16 %v6366_v4, %v6364_v2  ;;  %6387 = vtanh.f32 %v2151_v49  ;;  %v2227_v2 = vpop.permute.xlu1 %2226 }
 0x40e   : > { %v6370_v45 = vpop.eup %6369  ;;  %6389 = vtanh.f32 %v2153_v39 }
 0x40f   : > { %v6372_v23 = vpop.eup %6371  ;;  %5780 = vmatpush1.bf16.msra.mxu1 %v5779_v46  ;;  %v5765_v6 = vpack.c.bf16 %v6370_v45, %v6368_v38 }
 0x410   : > { %v6374_v16 = vpop.eup %6373 }
 0x411   : > { %v6376_v17 = vpop.eup %6375  ;;  %5766 = vmatprep.subr.bf16.mxu0 %v5765_v6  ;;  %v5781_v54 = vpack.c.bf16 %v6374_v16, %v6372_v23 }
 0x412   : > { %v6378_v0 = vpop.eup %6377 }
 0x413   : > { %v6380_v37 = vpop.eup %6379  ;;  %5782 = vmatprep.subr.bf16.mxu1 %v5781_v54  ;;  %v5767_v42 = vpack.c.bf16 %v6378_v0, %v6376_v17 }
 0x414   : > { %v6382_v47 = vpop.eup %6381 }
 0x415   : > { %v6384_v8 = vpop.eup %6383  ;;  %5768 = vmatpush1.bf16.msra.mxu0 %v5767_v42  ;;  %v5783_v48 = vpack.c.bf16 %v6382_v47, %v6380_v37  ;;  %v2232_v42 = vpop.permute.xlu0 %2231 }
 0x416   : > { %v6386_v29 = vpop.eup %6385  ;;  %v5769_v22 = vpack.c.bf16 %v7802_v24, %v6384_v8  ;;  %v9131_v24 = vmov 0.0  }
 0x417   : > { %v6388_v61 = vpop.eup %6387  ;;  %5784 = vmatpush1.bf16.msra.mxu1 %v5783_v48  ;;  %v5785_v13 = vpack.c.bf16 %v7812_v43, %v6386_v29  ;;  %v5449_v43 = vld [vmem:[%s9071_s3 + $0x48] sm:$0xff] }
 0x418   : > { %v6390_v51 = vpop.eup %6389  ;;  %5770 = vmatprep.subr.bf16.mxu0 %v5769_v22  ;;  %v5771_v1 = vpack.c.bf16 %v7797_v19, %v6388_v61  ;;  %v5450_v19 = vld [vmem:[%s9071_s3 + $0x50] sm:$0xff] }
 0x419   : > { %5786 = vmatprep.subr.bf16.mxu1 %v5785_v13  ;;  %v5787_v59 = vpack.c.bf16 %v7807_v41, %v6390_v51  ;;  %v5451_v41 = vld [vmem:[%s9071_s3 + $0x58] sm:$0xff] }
 0x41a   : > { %5772 = vmatpush1.bf16.msra.mxu0 %v5771_v1 }
 0x41b   : > { %5788 = vmatpush1.bf16.msra.mxu1 %v5787_v59 }
 0x41d   : > { %5464 = vmatmul.mubr.msk.f32.vlgmr.msra.gmra.mrb[34].mxu0 %vm1211_vm0, %v5448_v7 }
 0x41e   : > { %5472 = vmatmul.mubr.msk.f32.vlgmr.msra.gmra.mrb[34].mxu1 %vm1211_vm0, %v5448_v7  ;;  %2343 = vmatprep.mubr.f32.mxu0 %v9131_v24 }
 0x41f   : > { %2456 = vmatprep.mubr.f32.mxu1 %v9131_v24 }
 0x421   : > { %5465 = vmatmul.mubr.msk.f32.gmra.mrb[36].mxu0 %vm1211_vm0, %v5449_v43 }
 0x422   : > { %5473 = vmatmul.mubr.msk.f32.gmra.mrb[36].mxu1 %vm1211_vm0, %v5449_v43  ;;  %2349 = vmatprep.mubr.f32.mxu0 %v9131_v24 }
 0x423   : > { %2462 = vmatprep.mubr.f32.mxu1 %v9131_v24 }
 0x425   : > { %5466 = vmatmul.mubr.msk.f32.gmra.mrb[38].mxu0 %vm1211_vm0, %v5450_v19 }
 0x426   : > { %5474 = vmatmul.mubr.msk.f32.gmra.mrb[38].mxu1 %vm1211_vm0, %v5450_v19  ;;  %2355 = vmatprep.mubr.f32.mxu0 %v9131_v24 }
 0x427   : > { %2468 = vmatprep.mubr.f32.mxu1 %v9131_v24 }
 0x429   : > { %5467 = vmatmul.mubr.msk.f32.gmra.mrb[40].mxu0 %vm1211_vm0, %v5451_v41 }
 0x42a   : > { %5475 = vmatmul.mubr.msk.f32.gmra.mrb[40].mxu1 %vm1211_vm0, %v5451_v41  ;;  %2361 = vmatprep.mubr.f32.mxu0 %v9131_v24 }
 0x42b   : > { %2474 = vmatprep.mubr.f32.mxu1 %v9131_v24 }
 0x42d   : > { %5468 = vmatmul.mubr.msk.f32.gmra.mrb[42].mxu0 %vm1211_vm0, %v5452_v12 }
 0x42e   : > { %5476 = vmatmul.mubr.msk.f32.gmra.mrb[42].mxu1 %vm1211_vm0, %v5452_v12  ;;  %2367 = vmatprep.mubr.f32.mxu0 %v9131_v24  ;;  %v2237_v12 = vpop.permute.xlu1 %2236 }
 0x42f   : > { %2480 = vmatprep.mubr.f32.mxu1 %v9131_v24 }
 0x431   : > { %5469 = vmatmul.mubr.msk.f32.gmra.mrb[44].mxu0 %vm1211_vm0, %v5453_v25 }
 0x432   : > { %5477 = vmatmul.mubr.msk.f32.gmra.mrb[44].mxu1 %vm1211_vm0, %v5453_v25  ;;  %2373 = vmatprep.mubr.f32.mxu0 %v9131_v24 }
 0x433   : > { %2486 = vmatprep.mubr.f32.mxu1 %v9131_v24 }
 0x435   : > { %5470 = vmatmul.mubr.msk.f32.gmra.mrb[46].mxu0 %vm1211_vm0, %v5454_v57 }
 0x436   : > { %5478 = vmatmul.mubr.msk.f32.gmra.mrb[46].mxu1 %vm1211_vm0, %v5454_v57  ;;  %2379 = vmatprep.mubr.f32.mxu0 %v9131_v24 }
 0x437   : > { %2492 = vmatprep.mubr.f32.mxu1 %v9131_v24 }
 0x439   : > { %5471 = vmatmul.mubr.msk.f32.gmra.mrb[48].mxu0 %vm1211_vm0, %v5455_v44 }
 0x43a   : > { %5479 = vmatmul.mubr.msk.f32.gmra.mrb[48].mxu1 %vm1211_vm0, %v5455_v44  ;;  %2677 = vmatprep.mubr.f32.mxu0 %v9131_v24 }
 0x43b   : > { %2790 = vmatprep.mubr.f32.mxu1 %v9131_v24 }
 0x4f0   : > { %v2339_v33 = vpop.f32.mrb[34].mxu0 }
 0x4f1   : > { %v2340_v21 = vadd.f32 %v2339_v33, %v2212_v18  ;;  %v2452_v11 = vpop.f32.mrb[34].mxu1  ;;  %v2341_v9 = vpop.f32.mrb[35].mxu0 }
 0x4f2   : > { %v2453_v63 = vadd.f32 %v2452_v11, %v2212_v18  ;;  %v2342_v26 = vadd.f32 %v2341_v9, %v2212_v18  ;;  %v2454_v20 = vpop.f32.mrb[35].mxu1 }
 0x4f3   : > { %6391 = vtanh.f32 %v2340_v21  ;;  %v2455_v10 = vadd.f32 %v2454_v20, %v2212_v18 }
 0x4f4   : > { %6393 = vtanh.f32 %v2453_v63  ;;  %v2345_v35 = vpop.f32.mrb[36].mxu0 }
 0x4f5   : > { %6395 = vtanh.f32 %v2342_v26  ;;  %v2346_v5 = vadd.f32 %v2345_v35, %v2217_v15  ;;  %v2458_v3 = vpop.f32.mrb[36].mxu1  ;;  %v2347_v31 = vpop.f32.mrb[37].mxu0 }
 0x4f6   : > { %6397 = vtanh.f32 %v2455_v10  ;;  %v2459_v56 = vadd.f32 %v2458_v3, %v2217_v15  ;;  %v2348_v40 = vadd.f32 %v2347_v31, %v2217_v15  ;;  %v2460_v34 = vpop.f32.mrb[37].mxu1 }
 0x4f7   : > { %6399 = vtanh.f32 %v2346_v5  ;;  %v2461_v36 = vadd.f32 %v2460_v34, %v2217_v15  ;;  %v2242_v5 = vpop.permute.xlu0 %2241 }
 0x4f8   : > { %6401 = vtanh.f32 %v2459_v56  ;;  %v2351_v32 = vpop.f32.mrb[38].mxu0 }
 0x4f9   : > { %6403 = vtanh.f32 %v2348_v40  ;;  %v2352_v30 = vadd.f32 %v2351_v32, %v2222_v53  ;;  %v2464_v62 = vpop.f32.mrb[38].mxu1  ;;  %v2353_v58 = vpop.f32.mrb[39].mxu0 }
 0x4fa   : > { %6405 = vtanh.f32 %v2461_v36  ;;  %v2465_v28 = vadd.f32 %v2464_v62, %v2222_v53  ;;  %v2354_v49 = vadd.f32 %v2353_v58, %v2222_v53  ;;  %v2466_v27 = vpop.f32.mrb[39].mxu1 }
 0x4fb   : > { %6407 = vtanh.f32 %v2352_v30  ;;  %v2467_v39 = vadd.f32 %v2466_v27, %v2222_v53 }
 0x4fc   : > { %6409 = vtanh.f32 %v2465_v28  ;;  %v2357_v14 = vpop.f32.mrb[40].mxu0 }
 0x4fd   : > { %v6392_v4 = vpop.eup %6391  ;;  %6411 = vtanh.f32 %v2354_v49  ;;  %v2358_v38 = vadd.f32 %v2357_v14, %v2227_v2  ;;  %v2470_v46 = vpop.f32.mrb[40].mxu1 }
 0x4fe   : > { %v2359_v45 = vpop.f32.mrb[41].mxu0  ;;  %v6394_v23 = vpop.eup %6393  ;;  %6413 = vtanh.f32 %v2467_v39  ;;  %v2471_v6 = vadd.f32 %v2470_v46, %v2227_v2 }
 0x4ff   : > { %v2360_v16 = vadd.f32 %v2359_v45, %v2227_v2  ;;  %v2472_v17 = vpop.f32.mrb[41].mxu1  ;;  %v6396_v54 = vpop.eup %6395  ;;  %6415 = vtanh.f32 %v2358_v38 }
 0x500   : > { %v2473_v0 = vadd.f32 %v2472_v17, %v2227_v2  ;;  %v6398_v37 = vpop.eup %6397  ;;  %6417 = vtanh.f32 %v2471_v6  ;;  %v2363_v47 = vpop.f32.mrb[42].mxu0 }
 0x501   : > { %v6400_v8 = vpop.eup %6399  ;;  %6419 = vtanh.f32 %v2360_v16  ;;  %v2364_v48 = vadd.f32 %v2363_v47, %v2232_v42  ;;  %v2476_v29 = vpop.f32.mrb[42].mxu1 }
 0x502   : > { %v2365_v22 = vpop.f32.mrb[43].mxu0  ;;  %v6402_v61 = vpop.eup %6401  ;;  %6421 = vtanh.f32 %v2473_v0  ;;  %v2477_v13 = vadd.f32 %v2476_v29, %v2232_v42  ;;  %v5791_v59 = vpack.c.bf16 %v6400_v8, %v6392_v4 }
 0x503   : > { %v2366_v51 = vadd.f32 %v2365_v22, %v2232_v42  ;;  %v2478_v1 = vpop.f32.mrb[43].mxu1  ;;  %v6404_v7 = vpop.eup %6403  ;;  %6423 = vtanh.f32 %v2364_v48  ;;  %v5807_v19 = vpack.c.bf16 %v6402_v61, %v6394_v23 }
 0x504   : > { %v2479_v43 = vadd.f32 %v2478_v1, %v2232_v42  ;;  %v6406_v41 = vpop.eup %6405  ;;  %6425 = vtanh.f32 %v2477_v13  ;;  %v2369_v25 = vpop.f32.mrb[44].mxu0  ;;  %v5789_v57 = vpack.c.bf16 %v6404_v7, %v6396_v54 }
 0x505   : > { %v6408_v44 = vpop.eup %6407  ;;  %6427 = vtanh.f32 %v2366_v51  ;;  %v2370_v18 = vadd.f32 %v2369_v25, %v2237_v12  ;;  %v2482_v33 = vpop.f32.mrb[44].mxu1  ;;  %v5805_v11 = vpack.c.bf16 %v6406_v41, %v6398_v37 }
 0x506   : > { %v2371_v21 = vpop.f32.mrb[45].mxu0  ;;  %v6410_v9 = vpop.eup %6409  ;;  %6429 = vtanh.f32 %v2479_v43  ;;  %v2483_v63 = vadd.f32 %v2482_v33, %v2237_v12  ;;  %5790 = vmatprep.subr.bf16.mxu0 %v5789_v57 }
 0x507   : > { %v2372_v26 = vadd.f32 %v2371_v21, %v2237_v12  ;;  %v2484_v20 = vpop.f32.mrb[45].mxu1  ;;  %v6412_v10 = vpop.eup %6411  ;;  %6431 = vtanh.f32 %v2370_v18  ;;  %5806 = vmatprep.subr.bf16.mxu1 %v5805_v11  ;;  %5792 = vmatpush1.bf16.msra.mxu0 %v5791_v59  ;;  %v5480_v21 = vld [vmem:[%s9073_s5 + $0x40] sm:$0xff]  ;;  %v5481_v11 = vld [vmem:[%s9073_s5 + $0x48] sm:$0xff] }
 0x508   : > { %v2485_v15 = vadd.f32 %v2484_v20, %v2237_v12  ;;  %v6414_v35 = vpop.eup %6413  ;;  %6433 = vtanh.f32 %v2483_v63  ;;  %5808 = vmatpush1.bf16.msra.mxu1 %v5807_v19  ;;  %v2375_v3 = vpop.f32.mrb[46].mxu0  ;;  %v5483_v63 = vld [vmem:[%s9073_s5 + $0x58] sm:$0xff]  ;;  %v5485_v20 = vld [vmem:[%s9073_s5 + $0x68] sm:$0xff] }
 0x509   : > { %v6416_v31 = vpop.eup %6415  ;;  %6435 = vtanh.f32 %v2372_v26  ;;  %v2376_v56 = vadd.f32 %v2375_v3, %v2242_v5  ;;  %v2488_v40 = vpop.f32.mrb[46].mxu1  ;;  %v5484_v26 = vld [vmem:[%s9073_s5 + $0x60] sm:$0xff] }
 0x50a   : > { %v2377_v34 = vpop.f32.mrb[47].mxu0  ;;  %v6418_v36 = vpop.eup %6417  ;;  %6437 = vtanh.f32 %v2485_v15  ;;  %v2489_v53 = vadd.f32 %v2488_v40, %v2242_v5  ;;  %v5795_v62 = vpack.c.bf16 %v6416_v31, %v6408_v44  ;;  %v5487_v15 = vld [vmem:[%s9073_s5 + $0x78] sm:$0xff]  ;;  %v5390_v3 = vld [vmem:[%s9070_s2 + $0x80] sm:$0xff]  ;;  %v9132_v31 = vmov 0   ;;  %v5391_v40 = vld [vmem:[%s9070_s2 + $0x88] sm:$0xff] }
 0x50b   : > { %v2378_v32 = vadd.f32 %v2377_v34, %v2242_v5  ;;  %v2490_v30 = vpop.f32.mrb[47].mxu1  ;;  %v6420_v58 = vpop.eup %6419  ;;  %6439 = vtanh.f32 %v2376_v56  ;;  %v5811_v49 = vpack.c.bf16 %v6418_v36, %v6410_v9  ;;  %v5482_v9 = vld [vmem:[%s9073_s5 + $0x50] sm:$0xff]  ;;  %v5385_v56 = vld [vmem:[%s9069_s1 + $0x98] sm:$0xff]  ;;  %v5387_v34 = vld [vmem:[%s9069_s1 + $0xa8] sm:$0xff] }
 0x50c   : > { %v2491_v28 = vadd.f32 %v2490_v30, %v2242_v5  ;;  %v6422_v27 = vpop.eup %6421  ;;  %v2247_v39 = vpop.permute.xlu1 %2246  ;;  %6441 = vtanh.f32 %v2489_v53  ;;  %v5793_v14 = vpack.c.bf16 %v6420_v58, %v6412_v10  ;;  %v5486_v10 = vld [vmem:[%s9073_s5 + $0x70] sm:$0xff]  ;;  %v5383_v5 = vld [vmem:[%s9069_s1 + $0x88] sm:$0xff]  ;;  %v5389_v36 = vld [vmem:[%s9069_s1 + $0xb8] sm:$0xff] }
 0x50d   : > { %v2381_v2 = vpop.f32.mrb[48].mxu0  ;;  %v6424_v4 = vpop.eup %6423  ;;  %6443 = vtanh.f32 %v2378_v32  ;;  %v5809_v23 = vpack.c.bf16 %v6422_v27, %v6414_v35  ;;  %v5382_v35 = vld [vmem:[%s9069_s1 + $0x80] sm:$0xff]  ;;  %698 = vperm.xlu0 %6108, %v5383_v5   ;;  %v5384_v53 = vld [vmem:[%s9069_s1 + $0x90] sm:$0xff]  ;;  %v9133_v32 = vmov 1   ;;  %v5527_v27 = vld [vmem:[%s9072_s4 + $0x98] sm:$0xff] }
 0x50e   : > { %v2382_v38 = vadd.f32 %v2381_v2, %v2247_v39  ;;  %v2494_v46 = vpop.f32.mrb[48].mxu1  ;;  %v2383_v45 = vpop.f32.mrb[49].mxu0  ;;  %6445 = vtanh.f32 %v2491_v28  ;;  %5794 = vmatprep.subr.bf16.mxu0 %v5793_v14  ;;  %693 = vperm.xlu1 %6107, %v5382_v35   ;;  %v5392_v30 = vld [vmem:[%s9070_s2 + $0x90] sm:$0xff]  ;;  %v5386_v58 = vld [vmem:[%s9069_s1 + $0xa0] sm:$0xff]  ;;  %v5529_v2 = vld [vmem:[%s9072_s4 + $0xa8] sm:$0xff] }
 0x50f   : > { %v6426_v6 = vpop.eup %6425  ;;  %v2495_v16 = vadd.f32 %v2494_v46, %v2247_v39  ;;  %v2384_v17 = vadd.f32 %v2383_v45, %v2247_v39  ;;  %v2496_v54 = vpop.f32.mrb[49].mxu1  ;;  %5810 = vmatprep.subr.bf16.mxu1 %v5809_v23  ;;  %5796 = vmatpush1.bf16.msra.mxu0 %v5795_v62  ;;  %v5393_v62 = vld [vmem:[%s9070_s2 + $0x98] sm:$0xff]  ;;  %v5388_v28 = vld [vmem:[%s9069_s1 + $0xb0] sm:$0xff]  ;;  %v5395_v14 = vld [vmem:[%s9070_s2 + $0xa8] sm:$0xff] }
 0x510   : > { %v6428_v0 = vpop.eup %6427  ;;  %6447 = vtanh.f32 %v2382_v38  ;;  %v2497_v37 = vadd.f32 %v2496_v54, %v2247_v39  ;;  %5812 = vmatpush1.bf16.msra.mxu1 %v5811_v49  ;;  %v5525_v49 = vld [vmem:[%s9072_s4 + $0x88] sm:$0xff]  ;;  %v5394_v39 = vld [vmem:[%s9070_s2 + $0xa0] sm:$0xff]  ;;  %v5559_v46 = vld [vmem:[%s9074_s6 + $0x98] sm:$0xff] }
 0x511   : > { %v6430_v42 = vpop.eup %6429  ;;  %6449 = vtanh.f32 %v2495_v16  ;;  %708 = vperm.xlu0 %6108, %v5385_v56   ;;  %v5557_v38 = vld [vmem:[%s9074_s6 + $0x88] sm:$0xff]  ;;  %v5396_v23 = vld [vmem:[%s9070_s2 + $0xb0] sm:$0xff]  ;;  %v5397_v16 = vld [vmem:[%s9070_s2 + $0xb8] sm:$0xff] }
 0x512   : > { %v6432_v47 = vpop.eup %6431  ;;  %6451 = vtanh.f32 %v2384_v17  ;;  %6109 = vset.pattern.permute.xlu1 %v9132_v31  ;;  %v5561_v45 = vld [vmem:[%s9074_s6 + $0xa8] sm:$0xff]  ;;  %v5524_v17 = vld [vmem:[%s9072_s4 + $0x80] sm:$0xff]  ;;  %v5526_v54 = vld [vmem:[%s9072_s4 + $0x90] sm:$0xff] }
 0x513   : > { %v6434_v8 = vpop.eup %6433  ;;  %6453 = vtanh.f32 %v2497_v37  ;;  %v5799_v48 = vpack.c.bf16 %v6432_v47, %v6424_v4  ;;  %774 = vperm.xlu1 %6109, %v5390_v3   ;;  %v5531_v4 = vld [vmem:[%s9072_s4 + $0xb8] sm:$0xff] }
 0x514   : > { %v6436_v29 = vpop.eup %6435  ;;  %v5815_v22 = vpack.c.bf16 %v6434_v8, %v6426_v6  ;;  %v5563_v6 = vld [vmem:[%s9074_s6 + $0xb8] sm:$0xff] }
 0x515   : > { %v6438_v61 = vpop.eup %6437  ;;  %v5797_v13 = vpack.c.bf16 %v6436_v29, %v6428_v0  ;;  %718 = vperm.xlu0 %6108, %v5387_v34   ;;  %v2552_v0 = vpop.permute.xlu0 %2551 }
 0x516   : > { %v6440_v51 = vpop.eup %6439  ;;  %v5813_v1 = vpack.c.bf16 %v6438_v61, %v6430_v42  ;;  %v5528_v42 = vld [vmem:[%s9072_s4 + $0xa0] sm:$0xff] }
 0x517   : > { %v6442_v59 = vpop.eup %6441  ;;  %5798 = vmatprep.subr.bf16.mxu0 %v5797_v13  ;;  %779 = vperm.xlu1 %6109, %v5391_v40  }
 0x518   : > { %v6444_v7 = vpop.eup %6443  ;;  %5814 = vmatprep.subr.bf16.mxu1 %v5813_v1  ;;  %5800 = vmatpush1.bf16.msra.mxu0 %v5799_v48 }
 0x519   : > { %v6446_v43 = vpop.eup %6445  ;;  %5816 = vmatpush1.bf16.msra.mxu1 %v5815_v22  ;;  %728 = vperm.xlu0 %6108, %v5389_v36  }
 0x51a   : > { %v6448_v19 = vpop.eup %6447 }
 0x51b   : > { %v6450_v41 = vpop.eup %6449  ;;  %v5803_v12 = vpack.c.bf16 %v6448_v19, %v6440_v51  ;;  %3109 = vperm.xlu1 %6109, %v5383_v5   ;;  %v2557_v51 = vpop.permute.xlu1 %2556  ;;  %v5558_v5 = vld [vmem:[%s9074_s6 + $0x90] sm:$0xff] }
 0x51c   : > { %v6452_v25 = vpop.eup %6451  ;;  %v5819_v57 = vpack.c.bf16 %v6450_v41, %v6442_v59  ;;  %v5530_v59 = vld [vmem:[%s9072_s4 + $0xb0] sm:$0xff] }
 0x51d   : > { %v6454_v44 = vpop.eup %6453  ;;  %v5801_v18 = vpack.c.bf16 %v6452_v25, %v6444_v7  ;;  %6115 = vset.pattern.permute.xlu0 %v9132_v31 }
 0x51e   : > { %v5817_v33 = vpack.c.bf16 %v6454_v44, %v6446_v43  ;;  %3105 = vperm.xlu0 %6115, %v5382_v35   ;;  %v2562_v44 = vpop.permute.xlu0 %2561 }
 0x51f   : > { %5802 = vmatprep.subr.bf16.mxu0 %v5801_v18  ;;  %6110 = vset.pattern.permute.xlu1 %v9133_v32 }
 0x520   : > { %5818 = vmatprep.subr.bf16.mxu1 %v5817_v33  ;;  %5804 = vmatpush1.bf16.msra.mxu0 %v5803_v12  ;;  %v5556_v33 = vld [vmem:[%s9074_s6 + $0x80] sm:$0xff] }
 0x521   : > { %5820 = vmatpush1.bf16.msra.mxu1 %v5819_v57  ;;  %703 = vperm.xlu1 %6110, %v5384_v53  }
 0x522   : > { %3113 = vperm.xlu0 %6115, %v5384_v53  }
 0x523   : > { %5496 = vmatmul.mubr.msk.f32.vlgmr.msra.gmra.mrb[50].mxu0 %vm1211_vm0, %v5480_v21 }
 0x524   : > { %5504 = vmatmul.mubr.msk.f32.vlgmr.msra.gmra.mrb[50].mxu1 %vm1211_vm0, %v5480_v21  ;;  %2683 = vmatprep.mubr.f32.mxu0 %v9131_v24 }
 0x525   : > { %2796 = vmatprep.mubr.f32.mxu1 %v9131_v24  ;;  %6111 = vset.pattern.permute.xlu1 %v9132_v31 }
 0x526   : > { %784 = vperm.xlu1 %6111, %v5392_v30   ;;  %3121 = vperm.xlu0 %6115, %v5386_v58  }
 0x527   : > { %5497 = vmatmul.mubr.msk.f32.gmra.mrb[52].mxu0 %vm1211_vm0, %v5481_v11 }
 0x528   : > { %5505 = vmatmul.mubr.msk.f32.gmra.mrb[52].mxu1 %vm1211_vm0, %v5481_v11  ;;  %2689 = vmatprep.mubr.f32.mxu0 %v9131_v24 }
 0x529   : > { %2802 = vmatprep.mubr.f32.mxu1 %v9131_v24 }
 0x52a   : > { %789 = vperm.xlu1 %6111, %v5393_v62   ;;  %3129 = vperm.xlu0 %6115, %v5388_v28  }
 0x52b   : > { %5498 = vmatmul.mubr.msk.f32.gmra.mrb[54].mxu0 %vm1211_vm0, %v5482_v9 }
 0x52c   : > { %5506 = vmatmul.mubr.msk.f32.gmra.mrb[54].mxu1 %vm1211_vm0, %v5482_v9  ;;  %2695 = vmatprep.mubr.f32.mxu0 %v9131_v24 }
 0x52d   : > { %2808 = vmatprep.mubr.f32.mxu1 %v9131_v24 }
 0x52e   : > { %3117 = vperm.xlu1 %6111, %v5385_v56   ;;  %3257 = vperm.xlu0 %6115, %v5525_v49  }
 0x52f   : > { %5499 = vmatmul.mubr.msk.f32.gmra.mrb[56].mxu0 %vm1211_vm0, %v5483_v63 }
 0x530   : > { %5507 = vmatmul.mubr.msk.f32.gmra.mrb[56].mxu1 %vm1211_vm0, %v5483_v63  ;;  %2701 = vmatprep.mubr.f32.mxu0 %v9131_v24 }
 0x531   : > { %2814 = vmatprep.mubr.f32.mxu1 %v9131_v24 }
 0x532   : > { %6112 = vset.pattern.permute.xlu1 %v9133_v32  ;;  %3267 = vperm.xlu0 %6115, %v5527_v27   ;;  %v2572_v27 = vpop.permute.xlu0 %2571 }
 0x533   : > { %5500 = vmatmul.mubr.msk.f32.gmra.mrb[58].mxu0 %vm1211_vm0, %v5484_v26  ;;  %713 = vperm.xlu1 %6112, %v5386_v58  }
 0x534   : > { %5508 = vmatmul.mubr.msk.f32.gmra.mrb[58].mxu1 %vm1211_vm0, %v5484_v26  ;;  %2707 = vmatprep.mubr.f32.mxu0 %v9131_v24 }
 0x535   : > { %2820 = vmatprep.mubr.f32.mxu1 %v9131_v24 }
 0x536   : > { %3277 = vperm.xlu0 %6115, %v5529_v2   ;;  %v5560_v2 = vld [vmem:[%s9074_s6 + $0xa0] sm:$0xff] }
 0x537   : > { %5501 = vmatmul.mubr.msk.f32.gmra.mrb[60].mxu0 %vm1211_vm0, %v5485_v20  ;;  %6113 = vset.pattern.permute.xlu1 %v9132_v31 }
 0x538   : > { %5509 = vmatmul.mubr.msk.f32.gmra.mrb[60].mxu1 %vm1211_vm0, %v5485_v20  ;;  %2713 = vmatprep.mubr.f32.mxu0 %v9131_v24 }
 0x539   : > { %2826 = vmatprep.mubr.f32.mxu1 %v9131_v24  ;;  %794 = vperm.xlu1 %6113, %v5394_v39  }
 0x53a   : > { %3287 = vperm.xlu0 %6115, %v5531_v4  }
 0x53b   : > { %5502 = vmatmul.mubr.msk.f32.gmra.mrb[62].mxu0 %vm1211_vm0, %v5486_v10 }
 0x53c   : > { %5510 = vmatmul.mubr.msk.f32.gmra.mrb[62].mxu1 %vm1211_vm0, %v5486_v10  ;;  %2719 = vmatprep.mubr.f32.mxu0 %v9131_v24 }
 0x53d   : > { %2832 = vmatprep.mubr.f32.mxu1 %v9131_v24  ;;  %799 = vperm.xlu1 %6113, %v5395_v14  }
 0x53e   : > { %3597 = vperm.xlu0 %6115, %v5557_v38  }
 0x53f   : > { %5503 = vmatmul.mubr.msk.f32.gmra.mrb[64].mxu0 %vm1211_vm0, %v5487_v15 }
 0x540   : > { %5511 = vmatmul.mubr.msk.f32.gmra.mrb[64].mxu1 %vm1211_vm0, %v5487_v15  ;;  %2947 = vmatprep.mubr.f32.mxu0 %v9131_v24  ;;  %v2567_v15 = vpop.permute.xlu1 %2566 }
 0x541   : > { %3018 = vmatprep.mubr.f32.mxu1 %v9131_v24  ;;  %3125 = vperm.xlu1 %6113, %v5387_v34  }
 0x542   : > { %3607 = vperm.xlu0 %6115, %v5559_v46  }
 0x545   : > { %6114 = vset.pattern.permute.xlu1 %v9133_v32 }
 0x546   : > { %723 = vperm.xlu1 %6114, %v5388_v28   ;;  %3617 = vperm.xlu0 %6115, %v5561_v45  }
 0x54a   : > { %6116 = vset.pattern.permute.xlu1 %v9132_v31  ;;  %3627 = vperm.xlu0 %6115, %v5563_v6  }
 0x54b   : > { %804 = vperm.xlu1 %6116, %v5396_v23  }
 0x54e   : > { %6117 = vset.pattern.permute.xlu0 %v9133_v32 }
 0x54f   : > { %809 = vperm.xlu1 %6116, %v5397_v16  }
 0x553   : > { %3133 = vperm.xlu1 %6116, %v5389_v36  }
 0x557   : > { %3252 = vperm.xlu1 %6116, %v5524_v17  }
 0x55b   : > { %3262 = vperm.xlu1 %6116, %v5526_v54  }
 0x55f   : > { %3272 = vperm.xlu1 %6116, %v5528_v42  }
 0x563   : > { %3282 = vperm.xlu1 %6116, %v5530_v59  }
 0x567   : > { %3592 = vperm.xlu1 %6116, %v5556_v33  }
 0x56b   : > { %3602 = vperm.xlu1 %6116, %v5558_v5  }
 0x56f   : > { %3612 = vperm.xlu1 %6116, %v5560_v2  }
 0x5f6   : > { %v2679_v37 = vpop.f32.mrb[50].mxu0 }
 0x5f7   : > { %v2680_v47 = vadd.f32 %v2679_v37, %v2552_v0  ;;  %v2792_v8 = vpop.f32.mrb[50].mxu1  ;;  %v2681_v48 = vpop.f32.mrb[51].mxu0 }
 0x5f8   : > { %v2793_v29 = vadd.f32 %v2792_v8, %v2552_v0  ;;  %v2682_v22 = vadd.f32 %v2681_v48, %v2552_v0  ;;  %v2794_v61 = vpop.f32.mrb[51].mxu1 }
 0x5f9   : > { %6455 = vtanh.f32 %v2680_v47  ;;  %v2795_v13 = vadd.f32 %v2794_v61, %v2552_v0  ;;  %v2577_v47 = vpop.permute.xlu1 %2576 }
 0x5fa   : > { %6457 = vtanh.f32 %v2793_v29  ;;  %v2685_v1 = vpop.f32.mrb[52].mxu0 }
 0x5fb   : > { %6459 = vtanh.f32 %v2682_v22  ;;  %v2686_v7 = vadd.f32 %v2685_v1, %v2557_v51  ;;  %v2798_v43 = vpop.f32.mrb[52].mxu1  ;;  %v2687_v19 = vpop.f32.mrb[53].mxu0  ;;  %v5562_v1 = vld [vmem:[%s9074_s6 + $0xb0] sm:$0xff] }
 0x5fc   : > { %6461 = vtanh.f32 %v2795_v13  ;;  %v2799_v41 = vadd.f32 %v2798_v43, %v2557_v51  ;;  %v2688_v12 = vadd.f32 %v2687_v19, %v2557_v51  ;;  %v2800_v25 = vpop.f32.mrb[53].mxu1  ;;  %3622 = vperm.xlu1 %6116, %v5562_v1  }
 0x5fd   : > { %6463 = vtanh.f32 %v2686_v7  ;;  %v2801_v57 = vadd.f32 %v2800_v25, %v2557_v51 }
 0x5fe   : > { %6465 = vtanh.f32 %v2799_v41  ;;  %v2691_v18 = vpop.f32.mrb[54].mxu0 }
 0x5ff   : > { %6467 = vtanh.f32 %v2688_v12  ;;  %v2692_v21 = vadd.f32 %v2691_v18, %v2562_v44  ;;  %v2804_v11 = vpop.f32.mrb[54].mxu1  ;;  %v2693_v9 = vpop.f32.mrb[55].mxu0 }
 0x600   : > { %6469 = vtanh.f32 %v2801_v57  ;;  %v2805_v63 = vadd.f32 %v2804_v11, %v2562_v44  ;;  %v2694_v26 = vadd.f32 %v2693_v9, %v2562_v44  ;;  %v2806_v20 = vpop.f32.mrb[55].mxu1  ;;  %v2582_v57 = vpop.permute.xlu0 %2581  ;;  %v5581_v9 = vld [vmem:[%s9076_s8 + $0x4] sm:$0x3] }
 0x601   : > { %6471 = vtanh.f32 %v2692_v21  ;;  %v2807_v10 = vadd.f32 %v2806_v20, %v2562_v44  ;;  %3918 = vperm.xlu1 %6116, %v5581_v9  }
 0x602   : > { %6473 = vtanh.f32 %v2805_v63  ;;  %v2697_v35 = vpop.f32.mrb[56].mxu0 }
 0x603   : > { %v6456_v3 = vpop.eup %6455  ;;  %6475 = vtanh.f32 %v2694_v26  ;;  %v2698_v56 = vadd.f32 %v2697_v35, %v2567_v15  ;;  %v2810_v40 = vpop.f32.mrb[56].mxu1 }
 0x604   : > { %v2699_v34 = vpop.f32.mrb[57].mxu0  ;;  %v6458_v36 = vpop.eup %6457  ;;  %6477 = vtanh.f32 %v2807_v10  ;;  %v2811_v53 = vadd.f32 %v2810_v40, %v2567_v15 }
 0x605   : > { %v2700_v30 = vadd.f32 %v2699_v34, %v2567_v15  ;;  %v2812_v62 = vpop.f32.mrb[57].mxu1  ;;  %v6460_v58 = vpop.eup %6459  ;;  %6479 = vtanh.f32 %v2698_v56  ;;  %6118 = vset.pattern.permute.xlu1 %v9133_v32 }
 0x606   : > { %v2813_v28 = vadd.f32 %v2812_v62, %v2567_v15  ;;  %v6462_v49 = vpop.eup %6461  ;;  %6481 = vtanh.f32 %v2811_v53  ;;  %v2703_v39 = vpop.f32.mrb[58].mxu0 }
 0x607   : > { %v6464_v14 = vpop.eup %6463  ;;  %6483 = vtanh.f32 %v2700_v30  ;;  %v2704_v4 = vadd.f32 %v2703_v39, %v2572_v27  ;;  %v2816_v38 = vpop.f32.mrb[58].mxu1 }
 0x608   : > { %v2705_v46 = vpop.f32.mrb[59].mxu0  ;;  %v6466_v45 = vpop.eup %6465  ;;  %6485 = vtanh.f32 %v2813_v28  ;;  %v2817_v23 = vadd.f32 %v2816_v38, %v2572_v27  ;;  %v5823_v17 = vpack.c.bf16 %v6464_v14, %v6456_v3 }
 0x609   : > { %v2706_v6 = vadd.f32 %v2705_v46, %v2572_v27  ;;  %v2818_v16 = vpop.f32.mrb[59].mxu1  ;;  %v6468_v54 = vpop.eup %6467  ;;  %6487 = vtanh.f32 %v2704_v4  ;;  %v5839_v37 = vpack.c.bf16 %v6466_v45, %v6458_v36 }
 0x60a   : > { %v2819_v0 = vadd.f32 %v2818_v16, %v2572_v27  ;;  %v6470_v42 = vpop.eup %6469  ;;  %6489 = vtanh.f32 %v2817_v23  ;;  %v2709_v8 = vpop.f32.mrb[60].mxu0  ;;  %v5821_v48 = vpack.c.bf16 %v6468_v54, %v6460_v58 }
 0x60b   : > { %v6472_v29 = vpop.eup %6471  ;;  %6491 = vtanh.f32 %v2706_v6  ;;  %v2710_v22 = vadd.f32 %v2709_v8, %v2577_v47  ;;  %v2822_v61 = vpop.f32.mrb[60].mxu1  ;;  %v5837_v51 = vpack.c.bf16 %v6470_v42, %v6462_v49 }
 0x60c   : > { %v2711_v13 = vpop.f32.mrb[61].mxu0  ;;  %v6474_v59 = vpop.eup %6473  ;;  %6493 = vtanh.f32 %v2819_v0  ;;  %v2823_v7 = vadd.f32 %v2822_v61, %v2577_v47  ;;  %5822 = vmatprep.subr.bf16.mxu0 %v5821_v48 }
 0x60d   : > { %v2712_v43 = vadd.f32 %v2711_v13, %v2577_v47  ;;  %v2824_v19 = vpop.f32.mrb[61].mxu1  ;;  %v6476_v41 = vpop.eup %6475  ;;  %6495 = vtanh.f32 %v2710_v22  ;;  %5838 = vmatprep.subr.bf16.mxu1 %v5837_v51  ;;  %5824 = vmatpush1.bf16.msra.mxu0 %v5823_v17 }
 0x60e   : > { %v2825_v12 = vadd.f32 %v2824_v19, %v2577_v47  ;;  %v6478_v25 = vpop.eup %6477  ;;  %6497 = vtanh.f32 %v2823_v7  ;;  %5840 = vmatpush1.bf16.msra.mxu1 %v5839_v37  ;;  %v2715_v44 = vpop.f32.mrb[62].mxu0  ;;  %v5512_v7 = vld [vmem:[%s9075_s7 + $0x2] sm:$0x3] }
 0x60f   : > { %v6480_v18 = vpop.eup %6479  ;;  %6499 = vtanh.f32 %v2712_v43  ;;  %v2716_v33 = vadd.f32 %v2715_v44, %v2582_v57  ;;  %v2828_v21 = vpop.f32.mrb[62].mxu1 }
 0x610   : > { %v2717_v11 = vpop.f32.mrb[63].mxu0  ;;  %v6482_v63 = vpop.eup %6481  ;;  %6501 = vtanh.f32 %v2825_v12  ;;  %v2829_v26 = vadd.f32 %v2828_v21, %v2582_v57  ;;  %v5827_v15 = vpack.c.bf16 %v6480_v18, %v6472_v29 }
 0x611   : > { %v2718_v20 = vadd.f32 %v2717_v11, %v2582_v57  ;;  %v2830_v10 = vpop.f32.mrb[63].mxu1  ;;  %v6484_v35 = vpop.eup %6483  ;;  %6503 = vtanh.f32 %v2716_v33  ;;  %v5843_v3 = vpack.c.bf16 %v6482_v63, %v6474_v59 }
 0x612   : > { %v2831_v5 = vadd.f32 %v2830_v10, %v2582_v57  ;;  %v6486_v56 = vpop.eup %6485  ;;  %v2587_v40 = vpop.permute.xlu1 %2586  ;;  %6505 = vtanh.f32 %v2829_v26  ;;  %v5825_v36 = vpack.c.bf16 %v6484_v35, %v6476_v41 }
 0x613   : > { %v2721_v34 = vpop.f32.mrb[64].mxu0  ;;  %v6488_v53 = vpop.eup %6487  ;;  %6507 = vtanh.f32 %v2718_v20  ;;  %v5841_v28 = vpack.c.bf16 %v6486_v56, %v6478_v25 }
 0x614   : > { %v2722_v30 = vadd.f32 %v2721_v34, %v2587_v40  ;;  %v2834_v62 = vpop.f32.mrb[64].mxu1  ;;  %v2723_v58 = vpop.f32.mrb[65].mxu0  ;;  %6509 = vtanh.f32 %v2831_v5  ;;  %5826 = vmatprep.subr.bf16.mxu0 %v5825_v36 }
 0x615   : > { %v6490_v49 = vpop.eup %6489  ;;  %v2835_v27 = vadd.f32 %v2834_v62, %v2587_v40  ;;  %v2724_v39 = vadd.f32 %v2723_v58, %v2587_v40  ;;  %v2836_v2 = vpop.f32.mrb[65].mxu1  ;;  %5842 = vmatprep.subr.bf16.mxu1 %v5841_v28  ;;  %5828 = vmatpush1.bf16.msra.mxu0 %v5827_v15 }
 0x616   : > { %v6492_v14 = vpop.eup %6491  ;;  %6511 = vtanh.f32 %v2722_v30  ;;  %v2837_v4 = vadd.f32 %v2836_v2, %v2587_v40  ;;  %5844 = vmatpush1.bf16.msra.mxu1 %v5843_v3  ;;  %v694_v43 = vpop.permute.xlu1 %693 }
 0x617   : > { %v6494_v38 = vpop.eup %6493  ;;  %6513 = vtanh.f32 %v2835_v27  ;;  %v2878_v44 = vpop.permute.xlu0 %2877  ;;  %v732_v27 = vmul.f32 %v694_v43, %v7255_v55 }
 0x618   : > { %v6496_v46 = vpop.eup %6495  ;;  %6515 = vtanh.f32 %v2724_v39  ;;  %v733_v39 = vmul.f32 %v694_v43, %v7247_v52 }
 0x619   : > { %v6498_v45 = vpop.eup %6497  ;;  %6517 = vtanh.f32 %v2837_v4  ;;  %v5831_v23 = vpack.c.bf16 %v6496_v46, %v6488_v53  ;;  %v734_v4 = vmul.f32 %v694_v43, %v7263_v60  ;;  %v9138_v46 = vld [vmem:[#allocation13_spill] sm:$0xff] }
 0x61a   : > { %v6500_v6 = vpop.eup %6499  ;;  %v5847_v16 = vpack.c.bf16 %v6498_v45, %v6490_v49  ;;  %v775_v19 = vpop.permute.xlu1 %774  ;;  %v731_v49 = vmul.f32 %v694_v43, %v7241_v50 }
 0x61b   : > { %v6502_v17 = vpop.eup %6501  ;;  %v5829_v54 = vpack.c.bf16 %v6500_v6, %v6492_v14  ;;  %v699_v40 = vpop.permute.xlu0 %698 }
 0x61c   : > { %v6504_v0 = vpop.eup %6503  ;;  %v5845_v37 = vpack.c.bf16 %v6502_v17, %v6494_v38  ;;  %v736_v6 = vmul.f32 %v699_v40, %v7255_v55  ;;  %v737_v17 = vmul.f32 %v699_v40, %v7247_v52 }
 0x61d   : > { %v6506_v42 = vpop.eup %6505  ;;  %5830 = vmatprep.subr.bf16.mxu0 %v5829_v54  ;;  %v738_v54 = vmul.f32 %v699_v40, %v7263_v60 }
 0x61e   : > { %v6508_v47 = vpop.eup %6507  ;;  %5846 = vmatprep.subr.bf16.mxu1 %v5845_v37  ;;  %5832 = vmatpush1.bf16.msra.mxu0 %v5831_v23  ;;  %v780_v41 = vpop.permute.xlu1 %779  ;;  %v735_v23 = vmul.f32 %v699_v40, %v7241_v50  ;;  %v813_v37 = vadd.f32 %v775_v19, %v732_v27 }
 0x61f   : > { %v6510_v8 = vpop.eup %6509  ;;  %5848 = vmatpush1.bf16.msra.mxu1 %v5847_v16  ;;  %v709_v36 = vpop.permute.xlu0 %708  ;;  %v8137_v43 = vadd.f32 %v780_v41, %v737_v17 }
 0x620   : > { %v6512_v48 = vpop.eup %6511 }
 0x621   : > { %v6514_v29 = vpop.eup %6513  ;;  %v5835_v22 = vpack.c.bf16 %v6512_v48, %v6504_v0  ;;  %v8122_v0 = vadd.f32 %v775_v19, %v731_v49  ;;  %v743_v48 = vmul.f32 %v709_v36, %v7241_v50  ;;  %v9142_v49 = vld [vmem:[#allocation8_spill] sm:$0xff] }
 0x622   : > { %v6516_v61 = vpop.eup %6515  ;;  %v5851_v13 = vpack.c.bf16 %v6514_v29, %v6506_v42  ;;  %v8086_v12 = vpop.permute.xlu1 %3109  ;;  %v8124_v42 = vadd.f32 %v775_v19, %v733_v39  ;;  %v744_v29 = vmul.f32 %v709_v36, %v7255_v55 }
 0x623   : > { %v6518_v51 = vpop.eup %6517  ;;  %v5833_v1 = vpack.c.bf16 %v6516_v61, %v6508_v47  ;;  %v719_v38 = vpop.permute.xlu0 %718  ;;  %v8129_v61 = vadd.f32 %v780_v41, %v735_v23 }
 0x624   : > { %v5849_v59 = vpack.c.bf16 %v6518_v51, %v6510_v8  ;;  %v815_v8 = vadd.f32 %v775_v19, %v734_v4  ;;  %v746_v51 = vmul.f32 %v709_v36, %v7263_v60  ;;  %v819_v19 = vadd.f32 %v780_v41, %v738_v54 }
 0x625   : > { %5834 = vmatprep.subr.bf16.mxu0 %v5833_v1 }
 0x626   : > { %5850 = vmatprep.subr.bf16.mxu1 %v5849_v59  ;;  %5836 = vmatpush1.bf16.msra.mxu0 %v5835_v22  ;;  %v8088_v25 = vpop.permute.xlu1 %703  ;;  %v745_v22 = vmul.f32 %v709_v36, %v7247_v52  ;;  %v9139_v36 = vld [vmem:[#allocation5_spill] sm:$0xff] }
 0x627   : > { %5852 = vmatpush1.bf16.msra.mxu1 %v5851_v13  ;;  %v817_v13 = vadd.f32 %v780_v41, %v736_v6  ;;  %v741_v41 = vmul.f32 %v8088_v25, %v7247_v52 }
 0x629   : > { %5514 = vmatmul.mubr.msk.f32.vlgmr.msra.gmra.mrb[66].mxu0 %vm1211_vm0, %v5512_v7 }
 0x62a   : > { %5515 = vmatmul.mubr.msk.f32.vlgmr.msra.gmra.mrb[66].mxu1 %vm1211_vm0, %v5512_v7  ;;  %3378 = vmatprep.mubr.f32.mxu0 %v9131_v24  ;;  %v8090_v57 = vpop.permute.xlu1 %784  ;;  %v739_v7 = vmul.f32 %v8088_v25, %v7241_v50 }
 0x62b   : > { %3491 = vmatprep.mubr.f32.mxu1 %v9131_v24  ;;  %v8193_v54 = vadd.f32 %v8090_v57, %v741_v41 }
 0x62c   : > { %v8166_v39 = vadd.f32 %v8090_v57, %v739_v7 }
 0x62e   : > { %v8092_v18 = vpop.permute.xlu1 %789 }
 0x62f   : > { %v825_v41 = vadd.f32 %v8092_v18, %v744_v29 }
 0x632   : > { %v8106_v56 = vpop.permute.xlu1 %3117 }
 0x636   : > { %v8108_v34 = vpop.permute.xlu1 %713 }
 0x63a   : > { %v8113_v2 = vpop.permute.xlu1 %794 }
 0x63e   : > { %v8132_v1 = vpop.permute.xlu1 %799 }
 0x6fc   : > { %v2949_v33 = vpop.f32.mrb[66].mxu0 }
 0x6fd   : > { %v8094_v21 = vadd.f32 %v2949_v33, %v2878_v44  ;;  %v3020_v11 = vpop.f32.mrb[66].mxu1  ;;  %v2951_v9 = vpop.f32.mrb[67].mxu0 }
 0x6fe   : > { %v8096_v63 = vadd.f32 %v3020_v11, %v2878_v44  ;;  %v8098_v26 = vadd.f32 %v2951_v9, %v2878_v44  ;;  %v3022_v20 = vpop.f32.mrb[67].mxu1  ;;  %v729_v33 = vpop.permute.xlu0 %728  ;;  %v8143_v11 = vmul.f32 %v719_v38, %v7255_v55  ;;  %v8146_v9 = vmul.f32 %v719_v38, %v7247_v52 }
 0x6ff   : > { %9134 = vst [vmem:[#allocation14_spill] sm:$0xff] %v8094_v21  ;;  %v3025_v10 = vmul.f32 1.442695, %v8094_v21  ;;  %v8101_v15 = vadd.f32 %v3022_v20, %v2878_v44  ;;  %v8140_v44 = vmul.f32 %v719_v38, %v7241_v50  ;;  %v8149_v20 = vmul.f32 %v719_v38, %v7263_v60  ;;  %v8177_v38 = vpop.permute.xlu1 %3125 }
 0x700   : > { %9135 = vst [vmem:[#allocation19_spill] sm:$0xff] %v8096_v63  ;;  %9136 = vst [vmem:[#allocation20_spill] sm:$0xff] %v8098_v26  ;;  %v3029_v35 = vmul.f32 1.442695, %v8096_v63  ;;  %v3027_v5 = vmul.f32 1.442695, %v8098_v26  ;;  %v8159_v40 = vmul.f32 %v729_v33, %v7241_v50  ;;  %v8172_v4 = vmul.f32 %v729_v33, %v7247_v52 }
 0x701   : > { %9137 = vst [vmem:[#allocation21_spill] sm:$0xff] %v8101_v15  ;;  %6519 = vpow2.f32 %v3025_v10  ;;  %v3031_v3 = vmul.f32 1.442695, %v8101_v15  ;;  %v6935_v10 = vld [vmem:[%s7224_s16] ss:$4 sm:$0xf] }
 0x702   : > { %6521 = vpow2.f32 %v3029_v35  ;;  %v3106_v7 = vpop.permute.xlu0 %3105  ;;  %s5298_s16 = sshll.u32 %s8782_s27, 4  ;;  %s9023_s16 = int_to_ptr.vmem [resolvable:$true] %s5298_s16 }
 0x703   : > { %6523 = vpow2.f32 %v3027_v5  ;;  %v740_v5 = vmul.f32 %v8088_v25, %v7255_v55  ;;  %s6936_s13 = scalar_lea.vmem %s9023_s16, 256  ;;  %p6943_p0 = scmp.lt.s32.totalorder %s9023_s16, %s6941_s29 }
 0x704   : > { %6525 = vpow2.f32 %v3031_v3  ;;  %v742_v3 = vmul.f32 %v8088_v25, %v7263_v60  ;;  %v8175_v25 = vmul.f32 %v729_v33, %v7263_v60  ;;  %p6937_p11 = scmp.ne.s32.totalorder %s9023_s16, %s6936_s13  ;;  %p6944_p1 = scmp.lt.s32.totalorder %s6942_s14, %s6936_s13 }
 0x705   : > { %v821_v17 = vadd.f32 %v8090_v57, %v740_v5 }
 0x706   : > { %p6938_p12 = pnand %p6937_p11, %p7093_p5  ;;  %p6945_p2 = por %p6944_p1, %p6943_p0 }
 0x708   : > { %p6939_p13 = pneg %p6938_p12 }
 0x70a   : > { %p6946_p3 = pnand %p6945_p2, %p6939_p13 }
 0x70b   : > { %v6520_v53 = vpop.eup %6519 }
 0x70c   : > { %v6522_v30 = vpop.eup %6521 }
 0x70d   : > { %v6524_v62 = vpop.eup %6523 }
 0x70e   : > { %v6526_v58 = vpop.eup %6525  ;;  %v3037_v28 = vcombine.low %v6520_v53, %v6524_v62 }
 0x70f   : > { %v3038_v14 = vcombine.low %v6522_v30, %v6526_v58  ;;  %v9140_v30 = vld [vmem:[#allocation7_spill] sm:$0xff]  ;;  %v9141_v58 = vld [vmem:[#allocation6_spill] sm:$0xff] }
 0x710   : > { %v3045_v45 = vrot.slane %v3037_v28, %v9138_v46 }
 0x711   : > { %v3052_v16 = vrot.slane %v3038_v14, %v9138_v46  ;;  %v8169_v14 = vmul.f32 %v729_v33, %v7255_v55 }
 0x713   : > { %v3053_v47 = vcombine.high %v3045_v45, %v3052_v16 }
 0x715   : > { %v3060_v59 = vrot.slane %v3053_v47, %v9138_v46  ;;  %v823_v47 = vadd.f32 %v8090_v57, %v742_v3  ;;  %v747_v57 = vmul.f32 %v8108_v34, %v7241_v50  ;;  %v8221_v3 = vadd.f32 %v8092_v18, %v745_v22 }
 0x717   : > { %v3062_v35 = vmul.f32 %v6935_v10, %v3060_v59  ;;  %v8197_v59 = vadd.f32 %v8092_v18, %v743_v48  ;;  %v748_v48 = vmul.f32 %v8108_v34, %v7255_v55  ;;  %v8238_v46 = vadd.f32 %v8113_v2, %v747_v57 }
 0x719   : > { %v3067_v53 = vrot.slane %v3062_v35, %v9139_v36  ;;  %v3071_v62 = vrot.slane %v3062_v35, %v9140_v30  ;;  %v3075_v28 = vrot.slane %v3062_v35, %v9141_v58  ;;  %v3079_v27 = vrot.slane %v3062_v35, %v9142_v49 }
 0x71a   : > { %v750_v49 = vmul.f32 %v8108_v34, %v7263_v60 }
 0x71b   : > { %v8180_v45 = vadd.f32 %v3067_v53, %v8094_v21  ;;  %v8183_v23 = vadd.f32 %v3071_v62, %v8098_v26  ;;  %v8186_v6 = vadd.f32 %v3075_v28, %v8096_v63  ;;  %v8189_v16 = vadd.f32 %v3079_v27, %v8101_v15  ;;  %v724_v27 = vpop.permute.xlu1 %723  ;;  %v3114_v15 = vpop.permute.xlu0 %3113 }
 0x71c   : > { %v749_v28 = vmul.f32 %v8108_v34, %v7247_v52  ;;  %v829_v26 = vadd.f32 %v8113_v2, %v748_v48  ;;  %v756_v48 = vmul.f32 %v724_v27, %v7255_v55 }
 0x71d   : > { %9143 = vst [vmem:[#allocation7_spill] sm:$0xff] %v8180_v45  ;;  %9144 = vst [vmem:[#allocation6_spill] sm:$0xff] %v8183_v23  ;;  %v8201_v33 = vrot.slane %v8180_v45, %v9139_v36  ;;  %v8205_v10 = vrot.slane %v8183_v23, %v9139_v36  ;;  %v8209_v35 = vrot.slane %v8186_v6, %v9139_v36 }
 0x71e   : > { %9145 = vst [vmem:[#allocation8_spill] sm:$0xff] %v8186_v6  ;;  %9146 = vst [vmem:[#allocation22_spill] sm:$0xff] %v8189_v16  ;;  %v8213_v5 = vrot.slane %v8189_v16, %v9139_v36  ;;  %v827_v36 = vadd.f32 %v8092_v18, %v746_v51  ;;  %v831_v51 = vadd.f32 %v8113_v2, %v750_v49 }
 0x71f   : > { %v3137_v53 = vmul.f32 %v3106_v7, %v8205_v10  ;;  %v3141_v30 = vmul.f32 %v8086_v12, %v8205_v10  ;;  %v3136_v29 = vmul.f32 %v3106_v7, %v8201_v33  ;;  %v3140_v22 = vmul.f32 %v8086_v12, %v8201_v33 }
 0x720   : > { %v3139_v62 = vmul.f32 %v3106_v7, %v8213_v5  ;;  %v3143_v58 = vmul.f32 %v8086_v12, %v8213_v5  ;;  %v3138_v45 = vmul.f32 %v3106_v7, %v8209_v35  ;;  %v3142_v34 = vmul.f32 %v8086_v12, %v8209_v35  ;;  %v8264_v7 = vpop.permute.xlu1 %804 }
 0x721   : > { %v3169_v16 = vadd.f32 %v3137_v53, %v813_v37  ;;  %v3173_v6 = vadd.f32 %v3141_v30, %v817_v13  ;;  %v3168_v21 = vadd.f32 %v3136_v29, %v8122_v0  ;;  %v3145_v37 = vmul.f32 %v3114_v15, %v8205_v10 }
 0x722   : > { %v3171_v23 = vadd.f32 %v3139_v62, %v815_v8  ;;  %v3175_v63 = vadd.f32 %v3143_v58, %v819_v19  ;;  %v8247_v8 = vadd.f32 %v8113_v2, %v749_v28  ;;  %v3172_v13 = vadd.f32 %v3140_v22, %v8129_v61 }
 0x723   : > { %6527 = vtanh.f32 %v3169_v16  ;;  %v3149_v18 = vmul.f32 %v8106_v56, %v8205_v10  ;;  %v3170_v12 = vadd.f32 %v3138_v45, %v8124_v42  ;;  %v3147_v19 = vmul.f32 %v3114_v15, %v8213_v5 }
 0x724   : > { %6529 = vtanh.f32 %v3173_v6  ;;  %v8257_v0 = vadd.f32 %v8132_v1, %v8140_v44  ;;  %v3174_v16 = vadd.f32 %v3142_v34, %v8137_v43  ;;  %v3151_v61 = vmul.f32 %v8106_v56, %v8213_v5  ;;  %v8287_v30 = vpop.permute.xlu1 %809 }
 0x725   : > { %6531 = vtanh.f32 %v3171_v23  ;;  %v833_v6 = vadd.f32 %v8132_v1, %v8143_v11  ;;  %v3177_v2 = vadd.f32 %v3145_v37, %v821_v17  ;;  %v3144_v42 = vmul.f32 %v3114_v15, %v8201_v33  ;;  %v3122_v17 = vpop.permute.xlu0 %3121 }
 0x726   : > { %6533 = vtanh.f32 %v3175_v63  ;;  %v8269_v45 = vadd.f32 %v8132_v1, %v8146_v9  ;;  %v3181_v63 = vadd.f32 %v3149_v18, %v825_v41  ;;  %v3148_v43 = vmul.f32 %v8106_v56, %v8201_v33 }
 0x727   : > { %6535 = vtanh.f32 %v3168_v21  ;;  %v835_v44 = vadd.f32 %v8132_v1, %v8149_v20  ;;  %v3179_v11 = vadd.f32 %v3147_v19, %v823_v47  ;;  %v3146_v23 = vmul.f32 %v3114_v15, %v8209_v35 }
 0x728   : > { %6537 = vtanh.f32 %v3172_v13  ;;  %v755_v21 = vmul.f32 %v724_v27, %v7241_v50  ;;  %v3183_v57 = vadd.f32 %v3151_v61, %v827_v36  ;;  %v3150_v9 = vmul.f32 %v8106_v56, %v8209_v35 }
 0x729   : > { %6539 = vtanh.f32 %v3170_v12  ;;  %v3176_v41 = vadd.f32 %v3144_v42, %v8166_v39  ;;  %v3153_v53 = vmul.f32 %v3122_v17, %v8205_v10  ;;  %v757_v1 = vmul.f32 %v724_v27, %v7247_v52  ;;  %v3130_v61 = vpop.permute.xlu0 %3129 }
 0x72a   : > { %6541 = vtanh.f32 %v3174_v16  ;;  %v3180_v15 = vadd.f32 %v3148_v43, %v8197_v59  ;;  %v3157_v20 = vmul.f32 %v8177_v38, %v8205_v10  ;;  %v758_v36 = vmul.f32 %v724_v27, %v7263_v60 }
 0x72b   : > { %6543 = vtanh.f32 %v3177_v2  ;;  %v3178_v56 = vadd.f32 %v3146_v23, %v8193_v54  ;;  %v3155_v39 = vmul.f32 %v3122_v17, %v8213_v5  ;;  %v8292_v58 = vadd.f32 %v8264_v7, %v755_v21 }
 0x72c   : > { %6545 = vtanh.f32 %v3181_v63  ;;  %v3182_v59 = vadd.f32 %v3150_v9, %v8221_v3  ;;  %v3159_v28 = vmul.f32 %v8177_v38, %v8213_v5  ;;  %v3185_v22 = vadd.f32 %v3153_v53, %v829_v26  ;;  %v3134_v63 = vpop.permute.xlu1 %3133 }
 0x72d   : > { %v6528_v47 = vpop.eup %6527  ;;  %6547 = vtanh.f32 %v3179_v11  ;;  %v3152_v27 = vmul.f32 %v3122_v17, %v8201_v33  ;;  %v837_v54 = vadd.f32 %v8264_v7, %v756_v48  ;;  %v3189_v37 = vadd.f32 %v3157_v20, %v833_v6 }
 0x72e   : > { %v6530_v62 = vpop.eup %6529  ;;  %6549 = vtanh.f32 %v3183_v57  ;;  %v3156_v13 = vmul.f32 %v8177_v38, %v8201_v33  ;;  %v3187_v12 = vadd.f32 %v3155_v39, %v831_v51  ;;  %v3154_v19 = vmul.f32 %v3122_v17, %v8209_v35 }
 0x72f   : > { %v6532_v49 = vpop.eup %6531  ;;  %v5853_v29 = vpack.c.bf16 %v6530_v62, %v6528_v47  ;;  %6551 = vtanh.f32 %v3176_v41  ;;  %v8303_v26 = vadd.f32 %v8264_v7, %v757_v1  ;;  %v3191_v2 = vadd.f32 %v3159_v28, %v835_v44 }
 0x730   : > { %v6534_v34 = vpop.eup %6533  ;;  %6553 = vtanh.f32 %v3180_v15  ;;  %v3158_v6 = vmul.f32 %v8177_v38, %v8209_v35  ;;  %v3184_v11 = vadd.f32 %v3152_v27, %v8238_v46  ;;  %v3161_v51 = vmul.f32 %v3130_v61, %v8205_v10 }
 0x731   : > { %v6536_v18 = vpop.eup %6535  ;;  %5854 = vmatprep.subr.bf16.mxu0 %v5853_v29  ;;  %v5869_v3 = vpack.c.bf16 %v6534_v34, %v6532_v49  ;;  %6555 = vtanh.f32 %v3178_v56  ;;  %v839_v21 = vadd.f32 %v8264_v7, %v758_v36  ;;  %v3188_v17 = vadd.f32 %v3156_v13, %v8257_v0 }
 0x732   : > { %v6538_v16 = vpop.eup %6537  ;;  %6557 = vtanh.f32 %v3182_v59  ;;  %v3165_v44 = vmul.f32 %v3134_v63, %v8205_v10  ;;  %v3186_v9 = vadd.f32 %v3154_v19, %v8247_v8  ;;  %v3163_v48 = vmul.f32 %v3130_v61, %v8213_v5 }
 0x733   : > { %v6540_v42 = vpop.eup %6539  ;;  %5870 = vmatprep.subr.bf16.mxu1 %v5869_v3  ;;  %v5855_v43 = vpack.c.bf16 %v6538_v16, %v6536_v18  ;;  %6559 = vtanh.f32 %v3185_v22  ;;  %v841_v46 = vadd.f32 %v8287_v30, %v8169_v14  ;;  %v3190_v7 = vadd.f32 %v3158_v6, %v8269_v45 }
 0x734   : > { %v6542_v23 = vpop.eup %6541  ;;  %6561 = vtanh.f32 %v3189_v37  ;;  %v3167_v53 = vmul.f32 %v3134_v63, %v8213_v5  ;;  %v3193_v1 = vadd.f32 %v3161_v51, %v837_v54  ;;  %v3160_v15 = vmul.f32 %v3130_v61, %v8201_v33 }
 0x735   : > { %v6544_v57 = vpop.eup %6543  ;;  %5856 = vmatpush1.bf16.msra.mxu0 %v5855_v43  ;;  %v5871_v38 = vpack.c.bf16 %v6542_v23, %v6540_v42  ;;  %6563 = vtanh.f32 %v3187_v12  ;;  %v843_v8 = vadd.f32 %v8287_v30, %v8175_v25  ;;  %v3197_v47 = vadd.f32 %v3165_v44, %v841_v46  ;;  %v5521_v46 = vld [vmem:[%s9071_s3 + $0xa8] sm:$0xff] }
 0x736   : > { %v6546_v41 = vpop.eup %6545  ;;  %6565 = vtanh.f32 %v3191_v2  ;;  %v3164_v14 = vmul.f32 %v3134_v63, %v8201_v33  ;;  %v3195_v5 = vadd.f32 %v3163_v48, %v839_v21  ;;  %v3162_v56 = vmul.f32 %v3130_v61, %v8209_v35  ;;  %v5519_v48 = vld [vmem:[%s9071_s3 + $0x98] sm:$0xff] }
 0x737   : > { %v6548_v0 = vpop.eup %6547  ;;  %5872 = vmatpush1.bf16.msra.mxu1 %v5871_v38  ;;  %v5857_v10 = vpack.c.bf16 %v6546_v41, %v6544_v57  ;;  %6567 = vtanh.f32 %v3184_v11  ;;  %v840_v62 = vadd.f32 %v8287_v30, %v8159_v40  ;;  %v3199_v59 = vadd.f32 %v3167_v53, %v843_v8  ;;  %v5516_v57 = vld [vmem:[%s9071_s3 + $0x80] sm:$0xff]  ;;  %v5517_v38 = vld [vmem:[%s9071_s3 + $0x88] sm:$0xff]  ;;  %v5523_v53 = vld [vmem:[%s9071_s3 + $0xb8] sm:$0xff] }
 0x738   : > { %v6550_v20 = vpop.eup %6549  ;;  %6569 = vtanh.f32 %v3188_v17  ;;  %v3166_v28 = vmul.f32 %v3134_v63, %v8209_v35  ;;  %v3192_v33 = vadd.f32 %v3160_v15, %v8292_v58  ;;  %v842_v22 = vadd.f32 %v8287_v30, %v8172_v4  ;;  %v5520_v41 = vld [vmem:[%s9071_s3 + $0xa0] sm:$0xff] }
 0x739   : > { %v6552_v36 = vpop.eup %6551  ;;  %5858 = vmatprep.subr.bf16.mxu0 %v5857_v10  ;;  %v5873_v45 = vpack.c.bf16 %v6550_v20, %v6548_v0  ;;  %6571 = vtanh.f32 %v3186_v9  ;;  %v3196_v27 = vadd.f32 %v3164_v14, %v840_v62  ;;  %v3194_v40 = vadd.f32 %v3162_v56, %v8303_v26  ;;  %v5518_v9 = vld [vmem:[%s9071_s3 + $0x90] sm:$0xff]  ;;  %v3253_v0 = vpop.permute.xlu1 %3252 }
 0x73a   : > { %v6554_v39 = vpop.eup %6553  ;;  %6573 = vtanh.f32 %v3190_v7  ;;  %v3198_v35 = vadd.f32 %v3166_v28, %v842_v22  ;;  %v5522_v7 = vld [vmem:[%s9071_s3 + $0xb0] sm:$0xff] }
 0x73b   : > { %v6556_v25 = vpop.eup %6555  ;;  %5874 = vmatprep.subr.bf16.mxu1 %v5873_v45  ;;  %v5859_v49 = vpack.c.bf16 %v6554_v39, %v6552_v36  ;;  %6575 = vtanh.f32 %v3193_v1  ;;  %v3258_v36 = vpop.permute.xlu0 %3257 }
 0x73c   : > { %v6558_v29 = vpop.eup %6557  ;;  %6577 = vtanh.f32 %v3197_v47 }
 0x73d   : > { %v6560_v34 = vpop.eup %6559  ;;  %5860 = vmatpush1.bf16.msra.mxu0 %v5859_v49  ;;  %v5875_v54 = vpack.c.bf16 %v6558_v29, %v6556_v25  ;;  %6579 = vtanh.f32 %v3195_v5  ;;  %v3263_v49 = vpop.permute.xlu1 %3262 }
 0x73e   : > { %v6562_v37 = vpop.eup %6561  ;;  %6581 = vtanh.f32 %v3199_v59 }
 0x73f   : > { %v6564_v13 = vpop.eup %6563  ;;  %5876 = vmatpush1.bf16.msra.mxu1 %v5875_v54  ;;  %v5861_v18 = vpack.c.bf16 %v6562_v37, %v6560_v34  ;;  %6583 = vtanh.f32 %v3192_v33 }
 0x740   : > { %v6566_v58 = vpop.eup %6565  ;;  %6585 = vtanh.f32 %v3196_v27 }
 0x741   : > { %v6568_v3 = vpop.eup %6567  ;;  %5862 = vmatprep.subr.bf16.mxu0 %v5861_v18  ;;  %v5877_v4 = vpack.c.bf16 %v6566_v58, %v6564_v13  ;;  %6587 = vtanh.f32 %v3194_v40 }
 0x742   : > { %v6570_v30 = vpop.eup %6569  ;;  %6589 = vtanh.f32 %v3198_v35  ;;  %v3268_v35 = vpop.permute.xlu0 %3267 }
 0x743   : > { %v6572_v12 = vpop.eup %6571  ;;  %5878 = vmatprep.subr.bf16.mxu1 %v5877_v4  ;;  %v5863_v19 = vpack.c.bf16 %v6570_v30, %v6568_v3 }
 0x744   : > { %v6574_v16 = vpop.eup %6573 }
 0x745   : > { %v6576_v26 = vpop.eup %6575  ;;  %5864 = vmatpush1.bf16.msra.mxu0 %v5863_v19  ;;  %v5879_v61 = vpack.c.bf16 %v6574_v16, %v6572_v12 }
 0x746   : > { %v6578_v2 = vpop.eup %6577 }
 0x747   : > { %v6580_v6 = vpop.eup %6579  ;;  %5880 = vmatpush1.bf16.msra.mxu1 %v5879_v61  ;;  %v5865_v42 = vpack.c.bf16 %v6578_v2, %v6576_v26 }
 0x748   : > { %v6582_v63 = vpop.eup %6581 }
 0x749   : > { %v6584_v43 = vpop.eup %6583  ;;  %5866 = vmatprep.subr.bf16.mxu0 %v5865_v42  ;;  %v5881_v11 = vpack.c.bf16 %v6582_v63, %v6580_v6  ;;  %v3273_v6 = vpop.permute.xlu1 %3272 }
 0x74a   : > { %v6586_v51 = vpop.eup %6585 }
 0x74b   : > { %v6588_v23 = vpop.eup %6587  ;;  %5882 = vmatprep.subr.bf16.mxu1 %v5881_v11  ;;  %v5867_v21 = vpack.c.bf16 %v6586_v51, %v6584_v43 }
 0x74c   : > { %v6590_v17 = vpop.eup %6589 }
 0x74d   : > { %5868 = vmatpush1.bf16.msra.mxu0 %v5867_v21  ;;  %v5883_v44 = vpack.c.bf16 %v6590_v17, %v6588_v23 }
 0x74f   : > { %5884 = vmatpush1.bf16.msra.mxu1 %v5883_v44 }
 0x750   : > { %5532 = vmatmul.mubr.msk.f32.vlgmr.msra.gmra.mrb[68].mxu0 %vm1211_vm0, %v5516_v57 }
 0x751   : > { %3384 = vmatprep.mubr.f32.mxu0 %v9131_v24 }
 0x752   : > { %5540 = vmatmul.mubr.msk.f32.vlgmr.msra.gmra.mrb[68].mxu1 %vm1211_vm0, %v5516_v57 }
 0x753   : > { %3497 = vmatprep.mubr.f32.mxu1 %v9131_v24 }
 0x754   : > { %5533 = vmatmul.mubr.msk.f32.gmra.mrb[70].mxu0 %vm1211_vm0, %v5517_v38 }
 0x755   : > { %3390 = vmatprep.mubr.f32.mxu0 %v9131_v24 }
 0x756   : > { %5541 = vmatmul.mubr.msk.f32.gmra.mrb[70].mxu1 %vm1211_vm0, %v5517_v38 }
 0x757   : > { %3503 = vmatprep.mubr.f32.mxu1 %v9131_v24 }
 0x758   : > { %5534 = vmatmul.mubr.msk.f32.gmra.mrb[72].mxu0 %vm1211_vm0, %v5518_v9 }
 0x759   : > { %3396 = vmatprep.mubr.f32.mxu0 %v9131_v24 }
 0x75a   : > { %5542 = vmatmul.mubr.msk.f32.gmra.mrb[72].mxu1 %vm1211_vm0, %v5518_v9 }
 0x75b   : > { %3509 = vmatprep.mubr.f32.mxu1 %v9131_v24 }
 0x75c   : > { %5535 = vmatmul.mubr.msk.f32.gmra.mrb[74].mxu0 %vm1211_vm0, %v5519_v48 }
 0x75d   : > { %3402 = vmatprep.mubr.f32.mxu0 %v9131_v24 }
 0x75e   : > { %5543 = vmatmul.mubr.msk.f32.gmra.mrb[74].mxu1 %vm1211_vm0, %v5519_v48 }
 0x75f   : > { %3515 = vmatprep.mubr.f32.mxu1 %v9131_v24 }
 0x760   : > { %5536 = vmatmul.mubr.msk.f32.gmra.mrb[76].mxu0 %vm1211_vm0, %v5520_v41 }
 0x761   : > { %3408 = vmatprep.mubr.f32.mxu0 %v9131_v24 }
 0x762   : > { %5544 = vmatmul.mubr.msk.f32.gmra.mrb[76].mxu1 %vm1211_vm0, %v5520_v41 }
 0x763   : > { %3521 = vmatprep.mubr.f32.mxu1 %v9131_v24 }
 0x764   : > { %5537 = vmatmul.mubr.msk.f32.gmra.mrb[78].mxu0 %vm1211_vm0, %v5521_v46 }
 0x765   : > { %3414 = vmatprep.mubr.f32.mxu0 %v9131_v24 }
 0x766   : > { %5545 = vmatmul.mubr.msk.f32.gmra.mrb[78].mxu1 %vm1211_vm0, %v5521_v46  ;;  %v3278_v46 = vpop.permute.xlu0 %3277 }
 0x767   : > { %3527 = vmatprep.mubr.f32.mxu1 %v9131_v24 }
 0x768   : > { %5538 = vmatmul.mubr.msk.f32.gmra.mrb[80].mxu0 %vm1211_vm0, %v5522_v7 }
 0x769   : > { %3420 = vmatprep.mubr.f32.mxu0 %v9131_v24 }
 0x76a   : > { %5546 = vmatmul.mubr.msk.f32.gmra.mrb[80].mxu1 %vm1211_vm0, %v5522_v7 }
 0x76b   : > { %3533 = vmatprep.mubr.f32.mxu1 %v9131_v24 }
 0x76c   : > { %5539 = vmatmul.mubr.msk.f32.gmra.mrb[82].mxu0 %vm1211_vm0, %v5523_v53 }
 0x76d   : > { %3718 = vmatprep.mubr.f32.mxu0 %v9131_v24 }
 0x76e   : > { %5547 = vmatmul.mubr.msk.f32.gmra.mrb[82].mxu1 %vm1211_vm0, %v5523_v53 }
 0x76f   : > { %3831 = vmatprep.mubr.f32.mxu1 %v9131_v24 }
 0x823   : > { %v3380_v10 = vpop.f32.mrb[68].mxu0 }
 0x824   : > { %v3381_v1 = vadd.f32 %v3380_v10, %v3253_v0  ;;  %v3382_v15 = vpop.f32.mrb[69].mxu0 }
 0x825   : > { %v3493_v20 = vpop.f32.mrb[68].mxu1  ;;  %v3383_v8 = vadd.f32 %v3382_v15, %v3253_v0 }
 0x826   : > { %6591 = vtanh.f32 %v3381_v1  ;;  %v3494_v47 = vadd.f32 %v3493_v20, %v3253_v0  ;;  %v3495_v14 = vpop.f32.mrb[69].mxu1 }
 0x827   : > { %6593 = vtanh.f32 %v3383_v8  ;;  %v3496_v45 = vadd.f32 %v3495_v14, %v3253_v0  ;;  %v3386_v5 = vpop.f32.mrb[70].mxu0 }
 0x828   : > { %6595 = vtanh.f32 %v3494_v47  ;;  %v3387_v56 = vadd.f32 %v3386_v5, %v3258_v36  ;;  %v3388_v39 = vpop.f32.mrb[71].mxu0 }
 0x829   : > { %6597 = vtanh.f32 %v3496_v45  ;;  %v3499_v62 = vpop.f32.mrb[70].mxu1  ;;  %v3389_v59 = vadd.f32 %v3388_v39, %v3258_v36  ;;  %v3283_v39 = vpop.permute.xlu1 %3282 }
 0x82a   : > { %6599 = vtanh.f32 %v3387_v56  ;;  %v3500_v28 = vadd.f32 %v3499_v62, %v3258_v36  ;;  %v3501_v25 = vpop.f32.mrb[71].mxu1 }
 0x82b   : > { %6601 = vtanh.f32 %v3389_v59  ;;  %v3502_v33 = vadd.f32 %v3501_v25, %v3258_v36  ;;  %v3392_v29 = vpop.f32.mrb[72].mxu0 }
 0x82c   : > { %6603 = vtanh.f32 %v3500_v28  ;;  %v3393_v22 = vadd.f32 %v3392_v29, %v3263_v49  ;;  %v3394_v27 = vpop.f32.mrb[73].mxu0 }
 0x82d   : > { %6605 = vtanh.f32 %v3502_v33  ;;  %v3505_v34 = vpop.f32.mrb[72].mxu1  ;;  %v3395_v54 = vadd.f32 %v3394_v27, %v3263_v49 }
 0x82e   : > { %6607 = vtanh.f32 %v3393_v22  ;;  %v3506_v40 = vadd.f32 %v3505_v34, %v3263_v49  ;;  %v3507_v37 = vpop.f32.mrb[73].mxu1 }
 0x82f   : > { %6609 = vtanh.f32 %v3395_v54  ;;  %v3508_v13 = vadd.f32 %v3507_v37, %v3263_v49  ;;  %v3398_v18 = vpop.f32.mrb[74].mxu0 }
 0x830   : > { %v6592_v58 = vpop.eup %6591  ;;  %6611 = vtanh.f32 %v3506_v40  ;;  %v3399_v3 = vadd.f32 %v3398_v18, %v3268_v35  ;;  %v3400_v4 = vpop.f32.mrb[75].mxu0 }
 0x831   : > { %v6594_v30 = vpop.eup %6593  ;;  %6613 = vtanh.f32 %v3508_v13  ;;  %v3511_v12 = vpop.f32.mrb[74].mxu1  ;;  %v3401_v19 = vadd.f32 %v3400_v4, %v3268_v35 }
 0x832   : > { %v6596_v16 = vpop.eup %6595  ;;  %6615 = vtanh.f32 %v3399_v3  ;;  %v3512_v26 = vadd.f32 %v3511_v12, %v3268_v35  ;;  %v3513_v61 = vpop.f32.mrb[75].mxu1 }
 0x833   : > { %v6598_v2 = vpop.eup %6597  ;;  %6617 = vtanh.f32 %v3401_v19  ;;  %v3514_v42 = vadd.f32 %v3513_v61, %v3268_v35  ;;  %v3404_v63 = vpop.f32.mrb[76].mxu0 }
 0x834   : > { %v6600_v43 = vpop.eup %6599  ;;  %6619 = vtanh.f32 %v3512_v26  ;;  %v3405_v11 = vadd.f32 %v3404_v63, %v3273_v6  ;;  %v3406_v51 = vpop.f32.mrb[77].mxu0 }
 0x835   : > { %v6602_v23 = vpop.eup %6601  ;;  %6621 = vtanh.f32 %v3514_v42  ;;  %v3517_v21 = vpop.f32.mrb[76].mxu1  ;;  %v3407_v17 = vadd.f32 %v3406_v51, %v3273_v6  ;;  %v5887_v44 = vpack.c.bf16 %v6600_v43, %v6592_v58 }
 0x836   : > { %v6604_v57 = vpop.eup %6603  ;;  %6623 = vtanh.f32 %v3405_v11  ;;  %v3518_v38 = vadd.f32 %v3517_v21, %v3273_v6  ;;  %v3519_v9 = vpop.f32.mrb[77].mxu1  ;;  %v5885_v48 = vpack.c.bf16 %v6602_v23, %v6594_v30 }
 0x837   : > { %v6606_v41 = vpop.eup %6605  ;;  %6625 = vtanh.f32 %v3407_v17  ;;  %v3520_v7 = vadd.f32 %v3519_v9, %v3273_v6  ;;  %v3410_v53 = vpop.f32.mrb[78].mxu0  ;;  %v5903_v0 = vpack.c.bf16 %v6604_v57, %v6596_v16 }
 0x838   : > { %v6608_v10 = vpop.eup %6607  ;;  %6627 = vtanh.f32 %v3518_v38  ;;  %v3411_v1 = vadd.f32 %v3410_v53, %v3278_v46  ;;  %v3412_v15 = vpop.f32.mrb[79].mxu0  ;;  %5886 = vmatprep.subr.bf16.mxu0 %v5885_v48  ;;  %v5901_v20 = vpack.c.bf16 %v6606_v41, %v6598_v2 }
 0x839   : > { %v6610_v8 = vpop.eup %6609  ;;  %6629 = vtanh.f32 %v3520_v7  ;;  %v3523_v47 = vpop.f32.mrb[78].mxu1  ;;  %v3413_v14 = vadd.f32 %v3412_v15, %v3278_v46  ;;  %5888 = vmatpush1.bf16.msra.mxu0 %v5887_v44 }
 0x83a   : > { %v6612_v36 = vpop.eup %6611  ;;  %6631 = vtanh.f32 %v3411_v1  ;;  %v3524_v45 = vadd.f32 %v3523_v47, %v3278_v46  ;;  %v3525_v5 = vpop.f32.mrb[79].mxu1  ;;  %5902 = vmatprep.subr.bf16.mxu1 %v5901_v20  ;;  %v5548_v47 = vld [vmem:[%s9073_s5 + $0x80] sm:$0xff] }
 0x83b   : > { %v6614_v56 = vpop.eup %6613  ;;  %6633 = vtanh.f32 %v3413_v14  ;;  %v3526_v62 = vadd.f32 %v3525_v5, %v3278_v46  ;;  %5904 = vmatpush1.bf16.msra.mxu1 %v5903_v0  ;;  %v3416_v59 = vpop.f32.mrb[80].mxu0  ;;  %v5549_v14 = vld [vmem:[%s9073_s5 + $0x88] sm:$0xff]  ;;  %v5552_v5 = vld [vmem:[%s9073_s5 + $0xa0] sm:$0xff] }
 0x83c   : > { %v6616_v28 = vpop.eup %6615  ;;  %6635 = vtanh.f32 %v3524_v45  ;;  %v3417_v25 = vadd.f32 %v3416_v59, %v3283_v39  ;;  %v3418_v49 = vpop.f32.mrb[81].mxu0  ;;  %v5551_v45 = vld [vmem:[%s9073_s5 + $0x98] sm:$0xff]  ;;  %v5399_v59 = vld [vmem:[%s9069_s1 + $0xc8] sm:$0xff] }
 0x83d   : > { %v6618_v33 = vpop.eup %6617  ;;  %6637 = vtanh.f32 %v3526_v62  ;;  %v3529_v29 = vpop.f32.mrb[80].mxu1  ;;  %v3419_v22 = vadd.f32 %v3418_v49, %v3283_v39  ;;  %v5891_v27 = vpack.c.bf16 %v6616_v28, %v6608_v10  ;;  %v5555_v62 = vld [vmem:[%s9073_s5 + $0xb8] sm:$0xff]  ;;  %v5398_v28 = vld [vmem:[%s9069_s1 + $0xc0] sm:$0xff]  ;;  %860 = vperm.xlu1 %6118, %v5399_v59   ;;  %v5400_v49 = vld [vmem:[%s9069_s1 + $0xd0] sm:$0xff] }
 0x83e   : > { %v6620_v34 = vpop.eup %6619  ;;  %6639 = vtanh.f32 %v3417_v25  ;;  %v3530_v54 = vadd.f32 %v3529_v29, %v3283_v39  ;;  %v3531_v40 = vpop.f32.mrb[81].mxu1  ;;  %v5889_v37 = vpack.c.bf16 %v6618_v33, %v6610_v8  ;;  %855 = vperm.xlu0 %6117, %v5398_v28   ;;  %v5406_v25 = vld [vmem:[%s9070_s2 + $0xc0] sm:$0xff]  ;;  %v5404_v29 = vld [vmem:[%s9069_s1 + $0xf0] sm:$0xff] }
 0x83f   : > { %v6622_v35 = vpop.eup %6621  ;;  %v3288_v13 = vpop.permute.xlu0 %3287  ;;  %6641 = vtanh.f32 %v3419_v22  ;;  %v3532_v18 = vadd.f32 %v3531_v40, %v3283_v39  ;;  %v5907_v3 = vpack.c.bf16 %v6620_v34, %v6612_v36  ;;  %v5550_v36 = vld [vmem:[%s9073_s5 + $0x90] sm:$0xff]  ;;  %v5402_v33 = vld [vmem:[%s9069_s1 + $0xe0] sm:$0xff]  ;;  %v5407_v22 = vld [vmem:[%s9070_s2 + $0xc8] sm:$0xff] }
 0x840   : > { %v3422_v58 = vpop.f32.mrb[82].mxu0  ;;  %v6624_v4 = vpop.eup %6623  ;;  %6643 = vtanh.f32 %v3530_v54  ;;  %5890 = vmatprep.subr.bf16.mxu0 %v5889_v37  ;;  %v5905_v19 = vpack.c.bf16 %v6622_v35, %v6614_v56  ;;  %v5553_v56 = vld [vmem:[%s9073_s5 + $0xa8] sm:$0xff]  ;;  %v5554_v39 = vld [vmem:[%s9073_s5 + $0xb0] sm:$0xff]  ;;  %v5409_v34 = vld [vmem:[%s9070_s2 + $0xd8] sm:$0xff] }
 0x841   : > { %v3423_v30 = vadd.f32 %v3422_v58, %v3288_v13  ;;  %v3424_v12 = vpop.f32.mrb[83].mxu0  ;;  %v6626_v16 = vpop.eup %6625  ;;  %6645 = vtanh.f32 %v3532_v18  ;;  %5892 = vmatpush1.bf16.msra.mxu0 %v5891_v27  ;;  %6119 = vset.pattern.permute.xlu1 %v9132_v31  ;;  %v5401_v27 = vld [vmem:[%s9069_s1 + $0xd8] sm:$0xff]  ;;  %v5408_v54 = vld [vmem:[%s9070_s2 + $0xd0] sm:$0xff]  ;;  %v5411_v40 = vld [vmem:[%s9070_s2 + $0xe8] sm:$0xff] }
 0x842   : > { %v3535_v26 = vpop.f32.mrb[82].mxu1  ;;  %v3425_v61 = vadd.f32 %v3424_v12, %v3288_v13  ;;  %v6628_v2 = vpop.eup %6627  ;;  %5906 = vmatprep.subr.bf16.mxu1 %v5905_v19  ;;  %865 = vperm.xlu0 %6117, %v5400_v49   ;;  %v5413_v37 = vld [vmem:[%s9070_s2 + $0xf8] sm:$0xff]  ;;  %v5592_v35 = vld [vmem:[%s9072_s4 + $0xc0] sm:$0xff]  ;;  %v5594_v18 = vld [vmem:[%s9072_s4 + $0xd0] sm:$0xff] }
 0x843   : > { %6647 = vtanh.f32 %v3423_v30  ;;  %v3536_v6 = vadd.f32 %v3535_v26, %v3288_v13  ;;  %v3537_v42 = vpop.f32.mrb[83].mxu1  ;;  %v6630_v63 = vpop.eup %6629  ;;  %5908 = vmatpush1.bf16.msra.mxu1 %v5907_v3  ;;  %936 = vperm.xlu1 %6119, %v5406_v25   ;;  %v5410_v58 = vld [vmem:[%s9070_s2 + $0xe0] sm:$0xff]  ;;  %v5626_v12 = vld [vmem:[%s9074_s6 + $0xd0] sm:$0xff]  ;;  %v5405_v19 = vld [vmem:[%s9069_s1 + $0xf8] sm:$0xff] }
 0x844   : > { %6649 = vtanh.f32 %v3425_v61  ;;  %v3538_v43 = vadd.f32 %v3537_v42, %v3288_v13  ;;  %v6632_v11 = vpop.eup %6631  ;;  %v5403_v13 = vld [vmem:[%s9069_s1 + $0xe8] sm:$0xff]  ;;  %v5596_v3 = vld [vmem:[%s9072_s4 + $0xe0] sm:$0xff]  ;;  %v5412_v26 = vld [vmem:[%s9070_s2 + $0xf0] sm:$0xff] }
 0x845   : > { %6651 = vtanh.f32 %v3536_v6  ;;  %v6634_v51 = vpop.eup %6633  ;;  %v5895_v23 = vpack.c.bf16 %v6632_v11, %v6624_v4  ;;  %v5598_v4 = vld [vmem:[%s9072_s4 + $0xf0] sm:$0xff]  ;;  %v5624_v30 = vld [vmem:[%s9074_s6 + $0xc0] sm:$0xff]  ;;  %v3593_v6 = vpop.permute.xlu1 %3592 }
 0x846   : > { %6653 = vtanh.f32 %v3538_v43  ;;  %v6636_v21 = vpop.eup %6635  ;;  %v5893_v17 = vpack.c.bf16 %v6634_v51, %v6626_v16  ;;  %875 = vperm.xlu0 %6117, %v5402_v33   ;;  %v5628_v16 = vld [vmem:[%s9074_s6 + $0xe0] sm:$0xff]  ;;  %v5630_v61 = vld [vmem:[%s9074_s6 + $0xf0] sm:$0xff] }
 0x847   : > { %v6638_v44 = vpop.eup %6637  ;;  %v5911_v57 = vpack.c.bf16 %v6636_v21, %v6628_v2  ;;  %4111 = vperm.xlu1 %6119, %v5398_v28   ;;  %v5593_v2 = vld [vmem:[%s9072_s4 + $0xc8] sm:$0xff] }
 0x848   : > { %v6640_v38 = vpop.eup %6639  ;;  %5894 = vmatprep.subr.bf16.mxu0 %v5893_v17  ;;  %v5909_v9 = vpack.c.bf16 %v6638_v44, %v6630_v63  ;;  %v5597_v63 = vld [vmem:[%s9072_s4 + $0xe8] sm:$0xff]  ;;  %v3598_v44 = vpop.permute.xlu0 %3597 }
 0x849   : > { %v6642_v48 = vpop.eup %6641  ;;  %5896 = vmatpush1.bf16.msra.mxu0 %v5895_v23 }
 0x84a   : > { %v6644_v41 = vpop.eup %6643  ;;  %5910 = vmatprep.subr.bf16.mxu1 %v5909_v9  ;;  %885 = vperm.xlu0 %6117, %v5404_v29   ;;  %v5599_v9 = vld [vmem:[%s9072_s4 + $0xf8] sm:$0xff] }
 0x84b   : > { %v6646_v46 = vpop.eup %6645  ;;  %5912 = vmatpush1.bf16.msra.mxu1 %v5911_v57  ;;  %4115 = vperm.xlu1 %6119, %v5399_v59   ;;  %v5627_v59 = vld [vmem:[%s9074_s6 + $0xd8] sm:$0xff] }
 0x84d   : > { %v6648_v7 = vpop.eup %6647 }
 0x84e   : > { %v6650_v53 = vpop.eup %6649  ;;  %v5899_v0 = vpack.c.bf16 %v6648_v7, %v6640_v38  ;;  %6124 = vset.pattern.permute.xlu0 %v9132_v31 }
 0x84f   : > { %v6652_v10 = vpop.eup %6651  ;;  %v5897_v1 = vpack.c.bf16 %v6650_v53, %v6642_v48  ;;  %6120 = vset.pattern.permute.xlu1 %v9133_v32  ;;  %941 = vperm.xlu0 %6124, %v5407_v22  }
 0x850   : > { %v6654_v15 = vpop.eup %6653  ;;  %v5915_v20 = vpack.c.bf16 %v6652_v10, %v6644_v41  ;;  %870 = vperm.xlu1 %6120, %v5401_v27   ;;  %v3603_v10 = vpop.permute.xlu1 %3602 }
 0x851   : > { %5898 = vmatprep.subr.bf16.mxu0 %v5897_v1  ;;  %v5913_v8 = vpack.c.bf16 %v6654_v15, %v6646_v46 }
 0x852   : > { %5900 = vmatpush1.bf16.msra.mxu0 %v5899_v0 }
 0x853   : > { %5914 = vmatprep.subr.bf16.mxu1 %v5913_v8  ;;  %951 = vperm.xlu0 %6124, %v5409_v34  }
 0x854   : > { %5916 = vmatpush1.bf16.msra.mxu1 %v5915_v20  ;;  %6121 = vset.pattern.permute.xlu1 %v9132_v31  ;;  %v5625_v20 = vld [vmem:[%s9074_s6 + $0xc8] sm:$0xff] }
 0x855   : > { %5564 = vmatmul.mubr.msk.f32.vlgmr.msra.gmra.mrb[84].mxu0 %vm1211_vm0, %v5548_v47  ;;  %946 = vperm.xlu1 %6121, %v5408_v54  }
 0x856   : > { %3724 = vmatprep.mubr.f32.mxu0 %v9131_v24 }
 0x857   : > { %5572 = vmatmul.mubr.msk.f32.vlgmr.msra.gmra.mrb[84].mxu1 %vm1211_vm0, %v5548_v47  ;;  %961 = vperm.xlu0 %6124, %v5411_v40  }
 0x858   : > { %3837 = vmatprep.mubr.f32.mxu1 %v9131_v24 }
 0x859   : > { %5565 = vmatmul.mubr.msk.f32.gmra.mrb[86].mxu0 %vm1211_vm0, %v5549_v14  ;;  %4119 = vperm.xlu1 %6121, %v5400_v49  }
 0x85a   : > { %3730 = vmatprep.mubr.f32.mxu0 %v9131_v24 }
 0x85b   : > { %5573 = vmatmul.mubr.msk.f32.gmra.mrb[86].mxu1 %vm1211_vm0, %v5549_v14  ;;  %971 = vperm.xlu0 %6124, %v5413_v37   ;;  %v3613_v37 = vpop.permute.xlu1 %3612 }
 0x85c   : > { %3843 = vmatprep.mubr.f32.mxu1 %v9131_v24 }
 0x85d   : > { %5566 = vmatmul.mubr.msk.f32.gmra.mrb[88].mxu0 %vm1211_vm0, %v5550_v36  ;;  %4123 = vperm.xlu1 %6121, %v5401_v27  }
 0x85e   : > { %3736 = vmatprep.mubr.f32.mxu0 %v9131_v24 }
 0x85f   : > { %5574 = vmatmul.mubr.msk.f32.gmra.mrb[88].mxu1 %vm1211_vm0, %v5550_v36  ;;  %4258 = vperm.xlu0 %6124, %v5592_v35  }
 0x860   : > { %3849 = vmatprep.mubr.f32.mxu1 %v9131_v24 }
 0x861   : > { %5567 = vmatmul.mubr.msk.f32.gmra.mrb[90].mxu0 %vm1211_vm0, %v5551_v45  ;;  %6122 = vset.pattern.permute.xlu1 %v9133_v32 }
 0x862   : > { %3742 = vmatprep.mubr.f32.mxu0 %v9131_v24  ;;  %880 = vperm.xlu1 %6122, %v5403_v13  }
 0x863   : > { %5575 = vmatmul.mubr.msk.f32.gmra.mrb[90].mxu1 %vm1211_vm0, %v5551_v45  ;;  %4268 = vperm.xlu0 %6124, %v5594_v18   ;;  %v5629_v18 = vld [vmem:[%s9074_s6 + $0xe8] sm:$0xff] }
 0x864   : > { %3855 = vmatprep.mubr.f32.mxu1 %v9131_v24 }
 0x865   : > { %5568 = vmatmul.mubr.msk.f32.gmra.mrb[92].mxu0 %vm1211_vm0, %v5552_v5 }
 0x866   : > { %3748 = vmatprep.mubr.f32.mxu0 %v9131_v24  ;;  %6123 = vset.pattern.permute.xlu1 %v9132_v31 }
 0x867   : > { %5576 = vmatmul.mubr.msk.f32.gmra.mrb[92].mxu1 %vm1211_vm0, %v5552_v5  ;;  %956 = vperm.xlu1 %6123, %v5410_v58  }
 0x868   : > { %3861 = vmatprep.mubr.f32.mxu1 %v9131_v24  ;;  %4278 = vperm.xlu0 %6124, %v5596_v3  }
 0x869   : > { %5569 = vmatmul.mubr.msk.f32.gmra.mrb[94].mxu0 %vm1211_vm0, %v5553_v56 }
 0x86a   : > { %3754 = vmatprep.mubr.f32.mxu0 %v9131_v24 }
 0x86b   : > { %5577 = vmatmul.mubr.msk.f32.gmra.mrb[94].mxu1 %vm1211_vm0, %v5553_v56  ;;  %4127 = vperm.xlu1 %6123, %v5402_v33   ;;  %v3608_v56 = vpop.permute.xlu0 %3607 }
 0x86c   : > { %3867 = vmatprep.mubr.f32.mxu1 %v9131_v24  ;;  %4288 = vperm.xlu0 %6124, %v5598_v4  }
 0x86d   : > { %5570 = vmatmul.mubr.msk.f32.gmra.mrb[96].mxu0 %vm1211_vm0, %v5554_v39 }
 0x86e   : > { %3760 = vmatprep.mubr.f32.mxu0 %v9131_v24 }
 0x86f   : > { %5578 = vmatmul.mubr.msk.f32.gmra.mrb[96].mxu1 %vm1211_vm0, %v5554_v39  ;;  %4131 = vperm.xlu1 %6123, %v5403_v13  }
 0x870   : > { %3873 = vmatprep.mubr.f32.mxu1 %v9131_v24  ;;  %4598 = vperm.xlu0 %6124, %v5624_v30  }
 0x871   : > { %5571 = vmatmul.mubr.msk.f32.gmra.mrb[98].mxu0 %vm1211_vm0, %v5555_v62 }
 0x872   : > { %3988 = vmatprep.mubr.f32.mxu0 %v9131_v24 }
 0x873   : > { %5579 = vmatmul.mubr.msk.f32.gmra.mrb[98].mxu1 %vm1211_vm0, %v5555_v62  ;;  %6125 = vset.pattern.permute.xlu1 %v9133_v32  ;;  %v5649_v32 = vld [vmem:[%s9076_s8 + $0x6] sm:$0x3] }
 0x874   : > { %4059 = vmatprep.mubr.f32.mxu1 %v9131_v24  ;;  %4608 = vperm.xlu0 %6124, %v5626_v12  }
 0x875   : > { %890 = vperm.xlu1 %6125, %v5405_v19  }
 0x878   : > { %4618 = vperm.xlu0 %6124, %v5628_v16  }
 0x879   : > { %6126 = vset.pattern.permute.xlu1 %v9132_v31  ;;  %v5595_v31 = vld [vmem:[%s9072_s4 + $0xd8] sm:$0xff] }
 0x87a   : > { %966 = vperm.xlu1 %6126, %v5412_v26  }
 0x87c   : > { %4628 = vperm.xlu0 %6124, %v5630_v61  }
 0x87e   : > { %4135 = vperm.xlu1 %6126, %v5404_v29  }
 0x880   : > { %4924 = vperm.xlu0 %6124, %v5649_v32  }
 0x882   : > { %4139 = vperm.xlu1 %6126, %v5405_v19  }
 0x886   : > { %4263 = vperm.xlu1 %6126, %v5593_v2  }
 0x88a   : > { %4273 = vperm.xlu1 %6126, %v5595_v31  }
 0x88e   : > { %4283 = vperm.xlu1 %6126, %v5597_v63  }
 0x892   : > { %4293 = vperm.xlu1 %6126, %v5599_v9  }
 0x896   : > { %4603 = vperm.xlu1 %6126, %v5625_v20  }
 0x89a   : > { %4613 = vperm.xlu1 %6126, %v5627_v59  }
 0x89e   : > { %4623 = vperm.xlu1 %6126, %v5629_v18  }
 0x928   : > { %v3720_v42 = vpop.f32.mrb[84].mxu0 }
 0x929   : > { %v3721_v43 = vadd.f32 %v3720_v42, %v3593_v6  ;;  %v3722_v11 = vpop.f32.mrb[85].mxu0 }
 0x92a   : > { %v3833_v51 = vpop.f32.mrb[84].mxu1  ;;  %v3723_v23 = vadd.f32 %v3722_v11, %v3593_v6  ;;  %v5631_v11 = vld [vmem:[%s9074_s6 + $0xf8] sm:$0xff] }
 0x92b   : > { %6655 = vtanh.f32 %v3721_v43  ;;  %v3834_v21 = vadd.f32 %v3833_v51, %v3593_v6  ;;  %v3835_v17 = vpop.f32.mrb[85].mxu1  ;;  %4633 = vperm.xlu1 %6126, %v5631_v11  }
 0x92c   : > { %6657 = vtanh.f32 %v3723_v23  ;;  %v3836_v57 = vadd.f32 %v3835_v17, %v3593_v6  ;;  %v3726_v38 = vpop.f32.mrb[86].mxu0  ;;  %v3618_v6 = vpop.permute.xlu0 %3617 }
 0x92d   : > { %6659 = vtanh.f32 %v3834_v21  ;;  %v3727_v48 = vadd.f32 %v3726_v38, %v3598_v44  ;;  %v3728_v41 = vpop.f32.mrb[87].mxu0 }
 0x92e   : > { %6661 = vtanh.f32 %v3836_v57  ;;  %v3839_v46 = vpop.f32.mrb[86].mxu1  ;;  %v3729_v7 = vadd.f32 %v3728_v41, %v3598_v44 }
 0x92f   : > { %6663 = vtanh.f32 %v3727_v48  ;;  %v3840_v53 = vadd.f32 %v3839_v46, %v3598_v44  ;;  %v3841_v0 = vpop.f32.mrb[87].mxu1 }
 0x930   : > { %6665 = vtanh.f32 %v3729_v7  ;;  %v3842_v1 = vadd.f32 %v3841_v0, %v3598_v44  ;;  %v3732_v15 = vpop.f32.mrb[88].mxu0  ;;  %v3623_v7 = vpop.permute.xlu1 %3622 }
 0x931   : > { %6667 = vtanh.f32 %v3840_v53  ;;  %v3733_v8 = vadd.f32 %v3732_v15, %v3603_v10  ;;  %v3734_v47 = vpop.f32.mrb[89].mxu0 }
 0x932   : > { %6669 = vtanh.f32 %v3842_v1  ;;  %v3845_v14 = vpop.f32.mrb[88].mxu1  ;;  %v3735_v36 = vadd.f32 %v3734_v47, %v3603_v10 }
 0x933   : > { %6671 = vtanh.f32 %v3733_v8  ;;  %v3846_v45 = vadd.f32 %v3845_v14, %v3603_v10  ;;  %v3847_v5 = vpop.f32.mrb[89].mxu1 }
 0x934   : > { %6673 = vtanh.f32 %v3735_v36  ;;  %v3848_v39 = vadd.f32 %v3847_v5, %v3603_v10  ;;  %v3738_v62 = vpop.f32.mrb[90].mxu0 }
 0x935   : > { %v6656_v28 = vpop.eup %6655  ;;  %6675 = vtanh.f32 %v3846_v45  ;;  %v3739_v25 = vadd.f32 %v3738_v62, %v3608_v56  ;;  %v3740_v49 = vpop.f32.mrb[91].mxu0 }
 0x936   : > { %v6658_v33 = vpop.eup %6657  ;;  %6677 = vtanh.f32 %v3848_v39  ;;  %v3851_v29 = vpop.f32.mrb[90].mxu1  ;;  %v3741_v22 = vadd.f32 %v3740_v49, %v3608_v56 }
 0x937   : > { %v6660_v27 = vpop.eup %6659  ;;  %6679 = vtanh.f32 %v3739_v25  ;;  %v3852_v34 = vadd.f32 %v3851_v29, %v3608_v56  ;;  %v3853_v54 = vpop.f32.mrb[91].mxu1 }
 0x938   : > { %v6662_v40 = vpop.eup %6661  ;;  %6681 = vtanh.f32 %v3741_v22  ;;  %v3854_v35 = vadd.f32 %v3853_v54, %v3608_v56  ;;  %v3744_v13 = vpop.f32.mrb[92].mxu0 }
 0x939   : > { %v6664_v58 = vpop.eup %6663  ;;  %6683 = vtanh.f32 %v3852_v34  ;;  %v3745_v3 = vadd.f32 %v3744_v13, %v3613_v37  ;;  %v3746_v4 = vpop.f32.mrb[93].mxu0 }
 0x93a   : > { %v6666_v30 = vpop.eup %6665  ;;  %6685 = vtanh.f32 %v3854_v35  ;;  %v3857_v12 = vpop.f32.mrb[92].mxu1  ;;  %v3747_v19 = vadd.f32 %v3746_v4, %v3613_v37  ;;  %v5919_v16 = vpack.c.bf16 %v6664_v58, %v6656_v28 }
 0x93b   : > { %v6668_v26 = vpop.eup %6667  ;;  %6687 = vtanh.f32 %v3745_v3  ;;  %v3858_v61 = vadd.f32 %v3857_v12, %v3613_v37  ;;  %v3859_v32 = vpop.f32.mrb[93].mxu1  ;;  %v5917_v2 = vpack.c.bf16 %v6666_v30, %v6658_v33 }
 0x93c   : > { %v6670_v31 = vpop.eup %6669  ;;  %6689 = vtanh.f32 %v3747_v19  ;;  %v3860_v42 = vadd.f32 %v3859_v32, %v3613_v37  ;;  %v3750_v63 = vpop.f32.mrb[94].mxu0  ;;  %v5935_v43 = vpack.c.bf16 %v6668_v26, %v6660_v27 }
 0x93d   : > { %v6672_v51 = vpop.eup %6671  ;;  %6691 = vtanh.f32 %v3858_v61  ;;  %v3751_v23 = vadd.f32 %v3750_v63, %v3618_v6  ;;  %v3752_v21 = vpop.f32.mrb[95].mxu0  ;;  %5918 = vmatprep.subr.bf16.mxu0 %v5917_v2  ;;  %v5933_v17 = vpack.c.bf16 %v6670_v31, %v6662_v40 }
 0x93e   : > { %v6674_v44 = vpop.eup %6673  ;;  %6693 = vtanh.f32 %v3860_v42  ;;  %v3863_v57 = vpop.f32.mrb[94].mxu1  ;;  %v3753_v38 = vadd.f32 %v3752_v21, %v3618_v6  ;;  %5920 = vmatpush1.bf16.msra.mxu0 %v5919_v16 }
 0x93f   : > { %v6676_v9 = vpop.eup %6675  ;;  %6695 = vtanh.f32 %v3751_v23  ;;  %v3864_v48 = vadd.f32 %v3863_v57, %v3618_v6  ;;  %v3865_v41 = vpop.f32.mrb[95].mxu1  ;;  %5934 = vmatprep.subr.bf16.mxu1 %v5933_v17  ;;  %v5580_v17 = vld [vmem:[%s9075_s7 + $0x4] sm:$0x3] }
 0x940   : > { %v6678_v46 = vpop.eup %6677  ;;  %6697 = vtanh.f32 %v3753_v38  ;;  %v3866_v53 = vadd.f32 %v3865_v41, %v3618_v6  ;;  %5936 = vmatpush1.bf16.msra.mxu1 %v5935_v43  ;;  %v3756_v0 = vpop.f32.mrb[96].mxu0 }
 0x941   : > { %v6680_v10 = vpop.eup %6679  ;;  %6699 = vtanh.f32 %v3864_v48  ;;  %v3757_v1 = vadd.f32 %v3756_v0, %v3623_v7  ;;  %v3758_v15 = vpop.f32.mrb[97].mxu0 }
 0x942   : > { %v6682_v20 = vpop.eup %6681  ;;  %6701 = vtanh.f32 %v3866_v53  ;;  %v3869_v8 = vpop.f32.mrb[96].mxu1  ;;  %v3759_v47 = vadd.f32 %v3758_v15, %v3623_v7  ;;  %v5923_v14 = vpack.c.bf16 %v6680_v10, %v6672_v51 }
 0x943   : > { %v6684_v36 = vpop.eup %6683  ;;  %6703 = vtanh.f32 %v3757_v1  ;;  %v3870_v45 = vadd.f32 %v3869_v8, %v3623_v7  ;;  %v3871_v5 = vpop.f32.mrb[97].mxu1  ;;  %v5921_v56 = vpack.c.bf16 %v6682_v20, %v6674_v44  ;;  %v9147_v20 = vld [vmem:[#allocation9_spill] sm:$0xff]  ;;  %v9148_v8 = vld [vmem:[#allocation14_spill] sm:$0xff] }
 0x944   : > { %v6686_v39 = vpop.eup %6685  ;;  %v3628_v62 = vpop.permute.xlu0 %3627  ;;  %6705 = vtanh.f32 %v3759_v47  ;;  %v3872_v59 = vadd.f32 %v3871_v5, %v3623_v7  ;;  %v5939_v25 = vpack.c.bf16 %v6684_v36, %v6676_v9  ;;  %v5100_v47 = vadd.f32 %v9148_v8, %v9147_v20  ;;  %v9150_v5 = vld [vmem:[#allocation20_spill] sm:$0xff] }
 0x945   : > { %v3762_v28 = vpop.f32.mrb[98].mxu0  ;;  %v6688_v49 = vpop.eup %6687  ;;  %6707 = vtanh.f32 %v3870_v45  ;;  %5922 = vmatprep.subr.bf16.mxu0 %v5921_v56  ;;  %v5937_v22 = vpack.c.bf16 %v6686_v39, %v6678_v46  ;;  %v9149_v45 = vld [vmem:[#allocation10_spill] sm:$0xff] }
 0x946   : > { %v3763_v33 = vadd.f32 %v3762_v28, %v3628_v62  ;;  %v3764_v29 = vpop.f32.mrb[99].mxu0  ;;  %v6690_v27 = vpop.eup %6689  ;;  %6709 = vtanh.f32 %v3872_v59  ;;  %5924 = vmatpush1.bf16.msra.mxu0 %v5923_v14  ;;  %v5101_v56 = vadd.f32 %v9150_v5, %v9149_v45  ;;  %v9151_v28 = vld [vmem:[#allocation11_spill] sm:$0xff] }
 0x947   : > { %v3875_v34 = vpop.f32.mrb[98].mxu1  ;;  %v3765_v54 = vadd.f32 %v3764_v29, %v3628_v62  ;;  %v6692_v40 = vpop.eup %6691  ;;  %5938 = vmatprep.subr.bf16.mxu1 %v5937_v22 }
 0x948   : > { %6711 = vtanh.f32 %v3763_v33  ;;  %v3876_v37 = vadd.f32 %v3875_v34, %v3628_v62  ;;  %v3877_v35 = vpop.f32.mrb[99].mxu1  ;;  %v6694_v13 = vpop.eup %6693  ;;  %5940 = vmatpush1.bf16.msra.mxu1 %v5939_v25  ;;  %v9152_v25 = vld [vmem:[#allocation19_spill] sm:$0xff]  ;;  %v9153_v34 = vld [vmem:[#allocation12_spill] sm:$0xff] }
 0x949   : > { %6713 = vtanh.f32 %v3765_v54  ;;  %v3878_v18 = vadd.f32 %v3877_v35, %v3628_v62  ;;  %v6696_v58 = vpop.eup %6695  ;;  %v3919_v44 = vpop.permute.xlu1 %3918  ;;  %v9154_v54 = vld [vmem:[#allocation21_spill] sm:$0xff] }
 0x94a   : > { %6715 = vtanh.f32 %v3876_v37  ;;  %v6698_v3 = vpop.eup %6697  ;;  %v5927_v4 = vpack.c.bf16 %v6696_v58, %v6688_v49  ;;  %v856_v7 = vpop.permute.xlu0 %855  ;;  %v5102_v49 = vadd.f32 %v9152_v25, %v9151_v28 }
 0x94b   : > { %6717 = vtanh.f32 %v3878_v18  ;;  %v6700_v30 = vpop.eup %6699  ;;  %v5925_v12 = vpack.c.bf16 %v6698_v3, %v6690_v27 }
 0x94c   : > { %v6702_v19 = vpop.eup %6701  ;;  %v5943_v16 = vpack.c.bf16 %v6700_v30, %v6692_v40  ;;  %v5103_v40 = vadd.f32 %v9154_v54, %v9153_v34 }
 0x94d   : > { %v6704_v26 = vpop.eup %6703  ;;  %5926 = vmatprep.subr.bf16.mxu0 %v5925_v12  ;;  %v5941_v61 = vpack.c.bf16 %v6702_v19, %v6694_v13  ;;  %v861_v57 = vpop.permute.xlu1 %860  ;;  %v894_v19 = vmul.f32 %v856_v7, %v7255_v55 }
 0x94e   : > { %v6706_v32 = vpop.eup %6705  ;;  %5928 = vmatpush1.bf16.msra.mxu0 %v5927_v4  ;;  %v866_v0 = vpop.permute.xlu0 %865  ;;  %v893_v4 = vmul.f32 %v856_v7, %v7241_v50 }
 0x94f   : > { %v6708_v2 = vpop.eup %6707  ;;  %5942 = vmatprep.subr.bf16.mxu1 %v5941_v61 }
 0x950   : > { %v6710_v31 = vpop.eup %6709  ;;  %5944 = vmatpush1.bf16.msra.mxu1 %v5943_v16  ;;  %v895_v16 = vmul.f32 %v856_v7, %v7247_v52 }
 0x951   : > { %v937_v38 = vpop.permute.xlu1 %936 }
 0x952   : > { %v6712_v6 = vpop.eup %6711  ;;  %v876_v1 = vpop.permute.xlu0 %875 }
 0x953   : > { %v6714_v42 = vpop.eup %6713  ;;  %v5931_v63 = vpack.c.bf16 %v6712_v6, %v6704_v26  ;;  %v896_v26 = vmul.f32 %v856_v7, %v7263_v60  ;;  %v900_v6 = vmul.f32 %v861_v57, %v7263_v60  ;;  %v909_v20 = vmul.f32 %v876_v1, %v7241_v50 }
 0x954   : > { %v6716_v43 = vpop.eup %6715  ;;  %v5929_v11 = vpack.c.bf16 %v6714_v42, %v6706_v32  ;;  %v897_v32 = vmul.f32 %v861_v57, %v7241_v50  ;;  %v901_v42 = vmul.f32 %v866_v0, %v7241_v50 }
 0x955   : > { %v6718_v51 = vpop.eup %6717  ;;  %v5947_v23 = vpack.c.bf16 %v6716_v43, %v6708_v2  ;;  %v8556_v9 = vpop.permute.xlu1 %4111  ;;  %v898_v2 = vmul.f32 %v861_v57, %v7255_v55  ;;  %v903_v43 = vmul.f32 %v866_v0, %v7247_v52 }
 0x956   : > { %5930 = vmatprep.subr.bf16.mxu0 %v5929_v11  ;;  %v5945_v21 = vpack.c.bf16 %v6718_v51, %v6710_v31  ;;  %v886_v37 = vpop.permute.xlu0 %885  ;;  %v899_v31 = vmul.f32 %v861_v57, %v7247_v52  ;;  %v904_v11 = vmul.f32 %v866_v0, %v7263_v60 }
 0x957   : > { %5932 = vmatpush1.bf16.msra.mxu0 %v5931_v63  ;;  %v902_v63 = vmul.f32 %v866_v0, %v7255_v55  ;;  %v910_v0 = vmul.f32 %v876_v1, %v7255_v55  ;;  %v8638_v45 = vmul.f32 %v886_v37, %v7255_v55  ;;  %v8641_v5 = vmul.f32 %v886_v37, %v7247_v52 }
 0x958   : > { %5946 = vmatprep.subr.bf16.mxu1 %v5945_v21  ;;  %v8616_v21 = vadd.f32 %v937_v38, %v894_v19 }
 0x959   : > { %5948 = vmatpush1.bf16.msra.mxu1 %v5947_v23  ;;  %v8558_v48 = vpop.permute.xlu1 %4115  ;;  %v8614_v23 = vadd.f32 %v937_v38, %v893_v4 }
 0x95a   : > { %5582 = vmatmul.mubr.msk.f32.vlgmr.msra.gmra.mrb[100].mxu0 %vm1211_vm0, %v5580_v17  ;;  %v942_v51 = vpop.permute.xlu0 %941 }
 0x95b   : > { %4384 = vmatprep.mubr.f32.mxu0 %v9131_v24  ;;  %v978_v25 = vadd.f32 %v942_v51, %v897_v32 }
 0x95c   : > { %5583 = vmatmul.mubr.msk.f32.vlgmr.msra.gmra.mrb[100].mxu1 %vm1211_vm0, %v5580_v17  ;;  %v8618_v17 = vadd.f32 %v937_v38, %v895_v16 }
 0x95d   : > { %4497 = vmatprep.mubr.f32.mxu1 %v9131_v24  ;;  %v871_v41 = vpop.permute.xlu1 %870 }
 0x95e   : > { %v905_v7 = vmul.f32 %v871_v41, %v7241_v50  ;;  %v906_v57 = vmul.f32 %v871_v41, %v7255_v55  ;;  %v908_v8 = vmul.f32 %v871_v41, %v7263_v60 }
 0x961   : > { %v8560_v46 = vpop.permute.xlu1 %946 }
 0x965   : > { %v8562_v53 = vpop.permute.xlu1 %4119 }
 0x969   : > { %v8564_v10 = vpop.permute.xlu1 %4123 }
 0x96d   : > { %v8572_v39 = vpop.permute.xlu1 %880 }
 0x96e   : > { %v914_v4 = vmul.f32 %v8572_v39, %v7255_v55  ;;  %v916_v32 = vmul.f32 %v8572_v39, %v7263_v60 }
 0x971   : > { %v8604_v61 = vpop.permute.xlu1 %956 }
 0xa2d   : > { %v3990_v15 = vpop.f32.mrb[100].mxu0 }
 0xa2e   : > { %v8568_v14 = vadd.f32 %v3990_v15, %v3919_v44  ;;  %v3992_v36 = vpop.f32.mrb[101].mxu0  ;;  %v907_v15 = vmul.f32 %v871_v41, %v7247_v52  ;;  %v8646_v41 = vpop.permute.xlu1 %4127 }
 0xa2f   : > { %v4061_v62 = vpop.f32.mrb[100].mxu1  ;;  %v8574_v59 = vadd.f32 %v3992_v36, %v3919_v44  ;;  %v8632_v36 = vmul.f32 %v876_v1, %v7263_v60 }
 0xa30   : > { %v4066_v33 = vmul.f32 1.442695, %v8568_v14  ;;  %v8580_v29 = vadd.f32 %v5100_v47, %v8568_v14  ;;  %v8582_v22 = vadd.f32 %v4061_v62, %v3919_v44  ;;  %v4063_v27 = vpop.f32.mrb[101].mxu1  ;;  %v8629_v47 = vmul.f32 %v876_v1, %v7247_v52  ;;  %v952_v62 = vpop.permute.xlu0 %951 }
 0xa31   : > { %v4068_v35 = vmul.f32 1.442695, %v8574_v59  ;;  %v8588_v13 = vadd.f32 %v5101_v56, %v8574_v59  ;;  %v8590_v18 = vadd.f32 %v4063_v27, %v3919_v44  ;;  %v8620_v44 = vadd.f32 %v937_v38, %v896_v26 }
 0xa32   : > { %6719 = vpow2.f32 %v4066_v33  ;;  %v4070_v58 = vmul.f32 1.442695, %v8582_v22  ;;  %v8594_v3 = vadd.f32 %v5102_v49, %v8582_v22  ;;  %v8635_v38 = vmul.f32 %v886_v37, %v7241_v50 }
 0xa33   : > { %6721 = vpow2.f32 %v4068_v35  ;;  %v4072_v30 = vmul.f32 1.442695, %v8590_v18  ;;  %v8599_v12 = vadd.f32 %v5103_v40, %v8590_v18  ;;  %v8644_v56 = vmul.f32 %v886_v37, %v7263_v60 }
 0xa34   : > { %9155 = vst [vmem:[#allocation9_spill] sm:$0xff] %v8594_v3  ;;  %6723 = vpow2.f32 %v4070_v58  ;;  %v979_v49 = vadd.f32 %v942_v51, %v898_v2  ;;  %v8648_v1 = vadd.f32 %v942_v51, %v899_v31  ;;  %v8650_v33 = vadd.f32 %v942_v51, %v900_v6  ;;  %v9157_v2 = vld [vmem:[#allocation15_spill] sm:$0xff] }
 0xa35   : > { %9156 = vst [vmem:[#allocation14_spill] sm:$0xff] %v8599_v12  ;;  %6725 = vpow2.f32 %v4072_v30  ;;  %v8652_v34 = vadd.f32 %v952_v62, %v905_v7  ;;  %v8654_v54 = vadd.f32 %v952_v62, %v906_v57  ;;  %v8656_v40 = vadd.f32 %v952_v62, %v907_v15  ;;  %v9158_v57 = vld [vmem:[#allocation16_spill] sm:$0xff] }
 0xa36   : > { %v913_v58 = vmul.f32 %v8572_v39, %v7241_v50  ;;  %v8662_v30 = vadd.f32 %v952_v62, %v908_v8  ;;  %v915_v26 = vmul.f32 %v8572_v39, %v7247_v52  ;;  %v8670_v51 = vadd.f32 %v8560_v46, %v901_v42  ;;  %v962_v39 = vpop.permute.xlu0 %961 }
 0xa37   : > { %v983_v7 = vadd.f32 %v8560_v46, %v902_v63  ;;  %v8675_v62 = vadd.f32 %v8560_v46, %v903_v43  ;;  %v8688_v63 = vadd.f32 %v962_v39, %v914_v4  ;;  %v9162_v43 = vld [vmem:[#allocation18_spill] sm:$0xff] }
 0xa3c   : > { %v6720_v28 = vpop.eup %6719 }
 0xa3d   : > { %v6722_v27 = vpop.eup %6721  ;;  %v4078_v35 = vrot.slane %v6720_v28, 1  ;;  %v8678_v28 = vadd.f32 %v8560_v46, %v904_v11  ;;  %v8694_v46 = vadd.f32 %v962_v39, %v915_v26  ;;  %v8696_v11 = vadd.f32 %v962_v39, %v916_v32 }
 0xa3e   : > { %v6724_v37 = vpop.eup %6723  ;;  %v4079_v19 = vrot.slane %v6722_v27, 1  ;;  %v8680_v27 = vpop.permute.xlu1 %4131  ;;  %v8718_v32 = vadd.f32 %v8604_v61, %v910_v0 }
 0xa3f   : > { %v6726_v16 = vpop.eup %6725  ;;  %v4086_v31 = vmul.f32 %v4078_v35, %v9157_v2  ;;  %v4080_v6 = vrot.slane %v6724_v37, 1  ;;  %v9160_v37 = vld [vmem:[#allocation17_spill] sm:$0xff]  ;;  %v8686_v2 = vadd.f32 %v962_v39, %v913_v58  ;;  %v8706_v58 = vadd.f32 %v8604_v61, %v909_v20 }
 0xa40   : > { %v4087_v15 = vmul.f32 %v4079_v19, %v9158_v57  ;;  %v4081_v8 = vrot.slane %v6726_v16, 1  ;;  %v9163_v57 = vld [vmem:[#allocation5_spill] sm:$0xff]  ;;  %v9167_v39 = vlaneseq }
 0xa41   : > { %v8683_v35 = vadd.f32 %v4086_v31, %v8568_v14  ;;  %v4088_v42 = vmul.f32 %v4080_v6, %v9160_v37 }
 0xa42   : > { %v8691_v19 = vadd.f32 %v4087_v15, %v8574_v59  ;;  %v4089_v16 = vmul.f32 %v4081_v8, %v9162_v43  ;;  %v9166_v15 = vld [vmem:[#allocation13_spill] sm:$0xff]  ;;  %vm8737_vm1 = vcmp.lt.s32.totalorder %v9167_v39, 512 }
 0xa43   : > { %9159 = vst [vmem:[#allocation10_spill] sm:$0xff] %v8683_v35  ;;  %v8700_v14 = vrot.slane %v8683_v35, %v9163_v57  ;;  %v8703_v31 = vadd.f32 %v4088_v42, %v8582_v22  ;;  %v891_v42 = vpop.permute.xlu1 %890 }
 0xa44   : > { %9161 = vst [vmem:[#allocation20_spill] sm:$0xff] %v8691_v19  ;;  %v8710_v59 = vrot.slane %v8691_v19, %v9163_v57  ;;  %v5198_v4 = vcombine.low %v8683_v35, %v8691_v19  ;;  %v8715_v26 = vadd.f32 %v4089_v16, %v8590_v18 }
 0xa45   : > { %9164 = vst [vmem:[#allocation11_spill] sm:$0xff] %v8703_v31  ;;  %v8722_v22 = vrot.slane %v8703_v31, %v9163_v57  ;;  %v4142_v20 = vmul.f32 %v8556_v9, %v8700_v14  ;;  %v4146_v6 = vmul.f32 %v8558_v48, %v8700_v14 }
 0xa46   : > { %9165 = vst [vmem:[#allocation19_spill] sm:$0xff] %v8715_v26  ;;  %v5206_v8 = vrot.slane %v5198_v4, %v9166_v15  ;;  %v8732_v18 = vrot.slane %v8715_v26, %v9163_v57  ;;  %v5199_v0 = vcombine.low %v8703_v31, %v8715_v26  ;;  %v4143_v43 = vmul.f32 %v8556_v9, %v8710_v59 }
 0xa47   : > { %v4147_v16 = vmul.f32 %v8558_v48, %v8710_v59  ;;  %v4174_v4 = vadd.f32 %v4142_v20, %v8614_v23  ;;  %v4178_v19 = vadd.f32 %v4146_v6, %v978_v25  ;;  %v4144_v31 = vmul.f32 %v8556_v9, %v8722_v22 }
 0xa48   : > { %v5213_v57 = vrot.slane %v5199_v0, %v9166_v15  ;;  %v4145_v26 = vmul.f32 %v8556_v9, %v8732_v18  ;;  %v4149_v39 = vmul.f32 %v8558_v48, %v8732_v18  ;;  %v4175_v35 = vadd.f32 %v4143_v43, %v8616_v21 }
 0xa49   : > { %v4179_v12 = vadd.f32 %v4147_v16, %v979_v49  ;;  %6727 = vtanh.f32 %v4174_v4  ;;  %v4148_v23 = vmul.f32 %v8558_v48, %v8722_v22  ;;  %v4176_v0 = vadd.f32 %v4144_v31, %v8618_v17  ;;  %v8769_v49 = vpop.permute.xlu1 %966 }
 0xa4a   : > { %v5214_v25 = vcombine.low %v5206_v8, %v5213_v57  ;;  %v4177_v20 = vadd.f32 %v4145_v26, %v8620_v44  ;;  %v4181_v6 = vadd.f32 %v4149_v39, %v8650_v33  ;;  %6729 = vtanh.f32 %v4178_v19 }
 0xa4b   : > { %6731 = vtanh.f32 %v4175_v35  ;;  %v4180_v9 = vadd.f32 %v4148_v23, %v8648_v1  ;;  %v4151_v3 = vmul.f32 %v8562_v53, %v8710_v59  ;;  %v4155_v48 = vmul.f32 %v8564_v10, %v8710_v59 }
 0xa4c   : > { %v5221_v21 = vrot.slane %v5214_v25, %v9166_v15  ;;  %6733 = vtanh.f32 %v4179_v12  ;;  %v4153_v44 = vmul.f32 %v8562_v53, %v8732_v18  ;;  %v4157_v17 = vmul.f32 %v8564_v10, %v8732_v18 }
 0xa4d   : > { %6735 = vtanh.f32 %v4177_v20  ;;  %v4183_v33 = vadd.f32 %v4151_v3, %v983_v7  ;;  %v4150_v1 = vmul.f32 %v8562_v53, %v8700_v14  ;;  %v8777_v35 = vadd.f32 %v8604_v61, %v8629_v47 }
 0xa4e   : > { %6737 = vtanh.f32 %v4181_v6  ;;  %v4187_v12 = vadd.f32 %v4155_v48, %v8654_v54  ;;  %v4154_v19 = vmul.f32 %v8564_v10, %v8700_v14  ;;  %5652 = vst.msk [vmem:[%s8782_s27 + $0x1] ss:$4 sm:$0xf] %vm8737_vm1, %v5221_v21  ;;  %v993_v3 = vadd.f32 %v8604_v61, %v8632_v36 }
 0xa4f   : > { %6739 = vtanh.f32 %v4176_v0  ;;  %v4185_v7 = vadd.f32 %v4153_v44, %v8678_v28  ;;  %v4152_v47 = vmul.f32 %v8562_v53, %v8722_v22  ;;  %v921_v54 = vmul.f32 %v891_v42, %v7241_v50 }
 0xa50   : > { %6741 = vtanh.f32 %v4180_v9  ;;  %v4189_v31 = vadd.f32 %v4157_v17, %v8662_v30  ;;  %v4156_v26 = vmul.f32 %v8564_v10, %v8722_v22  ;;  %v922_v8 = vmul.f32 %v891_v42, %v7255_v55  ;;  %v8807_v10 = vpop.permute.xlu0 %971  ;;  %v8809_v55 = vpop.permute.xlu1 %4135 }
 0xa51   : > { %6743 = vtanh.f32 %v4183_v33  ;;  %v4182_v43 = vadd.f32 %v4150_v1, %v8670_v51  ;;  %v4159_v61 = vmul.f32 %v8646_v41, %v8710_v59  ;;  %v924_v36 = vmul.f32 %v891_v42, %v7263_v60 }
 0xa52   : > { %6745 = vtanh.f32 %v4187_v12  ;;  %v4186_v53 = vadd.f32 %v4154_v19, %v8652_v34  ;;  %v4163_v50 = vmul.f32 %v8680_v27, %v8710_v59  ;;  %v8805_v28 = vmul.f32 %v891_v42, %v7247_v52 }
 0xa53   : > { %v6728_v30 = vpop.eup %6727  ;;  %6747 = vtanh.f32 %v4185_v7  ;;  %v4184_v51 = vadd.f32 %v4152_v47, %v8675_v62  ;;  %v4161_v60 = vmul.f32 %v8646_v41, %v8732_v18  ;;  %v8815_v34 = vadd.f32 %v8807_v10, %v921_v54 }
 0xa54   : > { %v6730_v16 = vpop.eup %6729  ;;  %6749 = vtanh.f32 %v4189_v31  ;;  %v4188_v4 = vadd.f32 %v4156_v26, %v8656_v40  ;;  %v4165_v52 = vmul.f32 %v8680_v27, %v8732_v18  ;;  %v1003_v57 = vadd.f32 %v8807_v10, %v922_v8 }
 0xa55   : > { %v6732_v42 = vpop.eup %6731  ;;  %6751 = vtanh.f32 %v4182_v43  ;;  %v4191_v39 = vadd.f32 %v4159_v61, %v8718_v32  ;;  %v4158_v62 = vmul.f32 %v8646_v41, %v8700_v14  ;;  %v1005_v25 = vadd.f32 %v8807_v10, %v924_v36 }
 0xa56   : > { %v6734_v23 = vpop.eup %6733  ;;  %6753 = vtanh.f32 %v4186_v53  ;;  %v4195_v20 = vadd.f32 %v4163_v50, %v8688_v63  ;;  %v4162_v40 = vmul.f32 %v8680_v27, %v8700_v14  ;;  %v4193_v9 = vadd.f32 %v4161_v60, %v993_v3  ;;  %v4140_v63 = vpop.permute.xlu1 %4139 }
 0xa57   : > { %v6736_v6 = vpop.eup %6735  ;;  %v5949_v0 = vpack.c.bf16 %v6734_v23, %v6732_v42  ;;  %6755 = vtanh.f32 %v4184_v51  ;;  %v4160_v21 = vmul.f32 %v8646_v41, %v8722_v22  ;;  %v5951_v48 = vpack.c.bf16 %v6730_v16, %v6728_v30 }
 0xa58   : > { %v6738_v32 = vpop.eup %6737  ;;  %6757 = vtanh.f32 %v4188_v4  ;;  %v4197_v44 = vadd.f32 %v4165_v52, %v8696_v11  ;;  %v4164_v33 = vmul.f32 %v8680_v27, %v8722_v22  ;;  %v4190_v12 = vadd.f32 %v4158_v62, %v8706_v58 }
 0xa59   : > { %v6740_v17 = vpop.eup %6739  ;;  %5950 = vmatprep.subr.bf16.mxu0 %v5949_v0  ;;  %v5965_v1 = vpack.c.bf16 %v6738_v32, %v6736_v6  ;;  %6759 = vtanh.f32 %v4191_v39  ;;  %v4167_v19 = vmul.f32 %v8809_v55, %v8710_v59  ;;  %v999_v41 = vadd.f32 %v8769_v49, %v8638_v45 }
 0xa5a   : > { %v6742_v3 = vpop.eup %6741  ;;  %5952 = vmatpush1.bf16.msra.mxu0 %v5951_v48  ;;  %6761 = vtanh.f32 %v4195_v20  ;;  %v4194_v11 = vadd.f32 %v4162_v40, %v8686_v2  ;;  %v4171_v27 = vmul.f32 %v4140_v63, %v8710_v59  ;;  %v4192_v54 = vadd.f32 %v4160_v21, %v8777_v35 }
 0xa5b   : > { %v6744_v7 = vpop.eup %6743  ;;  %5966 = vmatprep.subr.bf16.mxu1 %v5965_v1  ;;  %v5967_v47 = vpack.c.bf16 %v6742_v3, %v6740_v17  ;;  %6763 = vtanh.f32 %v4193_v9  ;;  %v4169_v58 = vmul.f32 %v8809_v55, %v8732_v18  ;;  %v1001_v26 = vadd.f32 %v8769_v49, %v8644_v56 }
 0xa5c   : > { %v6746_v31 = vpop.eup %6745  ;;  %6765 = vtanh.f32 %v4197_v44  ;;  %v4196_v45 = vadd.f32 %v4164_v33, %v8694_v46  ;;  %v4173_v2 = vmul.f32 %v4140_v63, %v8732_v18  ;;  %v4199_v43 = vadd.f32 %v4167_v19, %v999_v41 }
 0xa5d   : > { %v6748_v8 = vpop.eup %6747  ;;  %5968 = vmatpush1.bf16.msra.mxu1 %v5967_v47  ;;  %v5953_v59 = vpack.c.bf16 %v6746_v31, %v6744_v7  ;;  %6767 = vtanh.f32 %v4190_v12  ;;  %v4166_v35 = vmul.f32 %v8809_v55, %v8700_v14  ;;  %v998_v36 = vadd.f32 %v8769_v49, %v8635_v38  ;;  %v5586_v7 = vld [vmem:[%s9071_s3 + $0xd0] sm:$0xff]  ;;  %v5587_v47 = vld [vmem:[%s9071_s3 + $0xd8] sm:$0xff] }
 0xa5e   : > { %v6750_v61 = vpop.eup %6749  ;;  %6769 = vtanh.f32 %v4194_v11  ;;  %v4203_v53 = vadd.f32 %v4171_v27, %v1003_v57  ;;  %v4170_v56 = vmul.f32 %v4140_v63, %v8700_v14  ;;  %v4201_v18 = vadd.f32 %v4169_v58, %v1001_v26  ;;  %v5584_v11 = vld [vmem:[%s9071_s3 + $0xc0] sm:$0xff]  ;;  %v5585_v27 = vld [vmem:[%s9071_s3 + $0xc8] sm:$0xff]  ;;  %v5590_v31 = vld [vmem:[%s9071_s3 + $0xf0] sm:$0xff] }
 0xa5f   : > { %v6752_v50 = vpop.eup %6751  ;;  %5954 = vmatprep.subr.bf16.mxu0 %v5953_v59  ;;  %v5969_v46 = vpack.c.bf16 %v6750_v61, %v6748_v8  ;;  %6771 = vtanh.f32 %v4192_v54  ;;  %v4168_v30 = vmul.f32 %v8809_v55, %v8722_v22  ;;  %v1004_v60 = vadd.f32 %v8807_v10, %v8805_v28  ;;  %v5588_v54 = vld [vmem:[%s9071_s3 + $0xe0] sm:$0xff]  ;;  %v5589_v58 = vld [vmem:[%s9071_s3 + $0xe8] sm:$0xff]  ;;  %v5591_v26 = vld [vmem:[%s9071_s3 + $0xf8] sm:$0xff] }
 0xa60   : > { %v6754_v51 = vpop.eup %6753  ;;  %6773 = vtanh.f32 %v4196_v45  ;;  %v4205_v16 = vadd.f32 %v4173_v2, %v1005_v25  ;;  %v4172_v38 = vmul.f32 %v4140_v63, %v8722_v22  ;;  %v1000_v14 = vadd.f32 %v8769_v49, %v8641_v5  ;;  %v4259_v45 = vpop.permute.xlu0 %4258 }
 0xa61   : > { %v6756_v4 = vpop.eup %6755  ;;  %5970 = vmatprep.subr.bf16.mxu1 %v5969_v46  ;;  %v5955_v52 = vpack.c.bf16 %v6754_v51, %v6752_v50  ;;  %6775 = vtanh.f32 %v4199_v43  ;;  %v4198_v42 = vadd.f32 %v4166_v35, %v998_v36  ;;  %v4202_v55 = vadd.f32 %v4170_v56, %v8815_v34 }
 0xa62   : > { %v6758_v57 = vpop.eup %6757  ;;  %6777 = vtanh.f32 %v4203_v53  ;;  %v4200_v28 = vadd.f32 %v4168_v30, %v1000_v14  ;;  %v4204_v22 = vadd.f32 %v4172_v38, %v1004_v60  ;;  %v4264_v53 = vpop.permute.xlu1 %4263 }
 0xa63   : > { %v6760_v39 = vpop.eup %6759  ;;  %5956 = vmatpush1.bf16.msra.mxu0 %v5955_v52  ;;  %v5971_v62 = vpack.c.bf16 %v6758_v57, %v6756_v4  ;;  %6779 = vtanh.f32 %v4201_v18 }
 0xa64   : > { %v6762_v10 = vpop.eup %6761  ;;  %6781 = vtanh.f32 %v4205_v16  ;;  %v4269_v38 = vpop.permute.xlu0 %4268 }
 0xa65   : > { %v6764_v23 = vpop.eup %6763  ;;  %5972 = vmatpush1.bf16.msra.mxu1 %v5971_v62  ;;  %v5957_v25 = vpack.c.bf16 %v6762_v10, %v6760_v39  ;;  %6783 = vtanh.f32 %v4198_v42 }
 0xa66   : > { %v6766_v5 = vpop.eup %6765  ;;  %6785 = vtanh.f32 %v4202_v55 }
 0xa67   : > { %v6768_v49 = vpop.eup %6767  ;;  %5958 = vmatprep.subr.bf16.mxu0 %v5957_v25  ;;  %v5973_v20 = vpack.c.bf16 %v6766_v5, %v6764_v23  ;;  %6787 = vtanh.f32 %v4200_v28  ;;  %v4274_v28 = vpop.permute.xlu1 %4273 }
 0xa68   : > { %v6770_v40 = vpop.eup %6769  ;;  %6789 = vtanh.f32 %v4204_v22 }
 0xa69   : > { %v6772_v34 = vpop.eup %6771  ;;  %5974 = vmatprep.subr.bf16.mxu1 %v5973_v20  ;;  %v5959_v6 = vpack.c.bf16 %v6770_v40, %v6768_v49 }
 0xa6a   : > { %v6774_v0 = vpop.eup %6773 }
 0xa6b   : > { %v6776_v9 = vpop.eup %6775  ;;  %5960 = vmatpush1.bf16.msra.mxu0 %v5959_v6  ;;  %v5975_v21 = vpack.c.bf16 %v6774_v0, %v6772_v34 }
 0xa6c   : > { %v6778_v32 = vpop.eup %6777 }
 0xa6d   : > { %v6780_v48 = vpop.eup %6779  ;;  %5976 = vmatpush1.bf16.msra.mxu1 %v5975_v21  ;;  %v5961_v44 = vpack.c.bf16 %v6778_v32, %v6776_v9  ;;  %v4279_v21 = vpop.permute.xlu0 %4278 }
 0xa6e   : > { %v6782_v33 = vpop.eup %6781 }
 0xa6f   : > { %v6784_v17 = vpop.eup %6783  ;;  %5962 = vmatprep.subr.bf16.mxu0 %v5961_v44  ;;  %v5977_v63 = vpack.c.bf16 %v6782_v33, %v6780_v48 }
 0xa70   : > { %v6786_v1 = vpop.eup %6785 }
 0xa71   : > { %v6788_v12 = vpop.eup %6787  ;;  %5978 = vmatprep.subr.bf16.mxu1 %v5977_v63  ;;  %v5963_v19 = vpack.c.bf16 %v6786_v1, %v6784_v17 }
 0xa72   : > { %v6790_v3 = vpop.eup %6789 }
 0xa73   : > { %5964 = vmatpush1.bf16.msra.mxu0 %v5963_v19  ;;  %v5979_v41 = vpack.c.bf16 %v6790_v3, %v6788_v12 }
 0xa75   : > { %5980 = vmatpush1.bf16.msra.mxu1 %v5979_v41 }
 0xa76   : > { %5600 = vmatmul.mubr.msk.f32.vlgmr.msra.gmra.mrb[102].mxu0 %vm1211_vm0, %v5584_v11 }
 0xa77   : > { %4390 = vmatprep.mubr.f32.mxu0 %v9131_v24 }
 0xa78   : > { %5608 = vmatmul.mubr.msk.f32.vlgmr.msra.gmra.mrb[102].mxu1 %vm1211_vm0, %v5584_v11 }
 0xa79   : > { %4503 = vmatprep.mubr.f32.mxu1 %v9131_v24 }
 0xa7a   : > { %5601 = vmatmul.mubr.msk.f32.gmra.mrb[104].mxu0 %vm1211_vm0, %v5585_v27 }
 0xa7b   : > { %4396 = vmatprep.mubr.f32.mxu0 %v9131_v24 }
 0xa7c   : > { %5609 = vmatmul.mubr.msk.f32.gmra.mrb[104].mxu1 %vm1211_vm0, %v5585_v27 }
 0xa7d   : > { %4509 = vmatprep.mubr.f32.mxu1 %v9131_v24 }
 0xa7e   : > { %5602 = vmatmul.mubr.msk.f32.gmra.mrb[106].mxu0 %vm1211_vm0, %v5586_v7 }
 0xa7f   : > { %4402 = vmatprep.mubr.f32.mxu0 %v9131_v24 }
 0xa80   : > { %5610 = vmatmul.mubr.msk.f32.gmra.mrb[106].mxu1 %vm1211_vm0, %v5586_v7 }
 0xa81   : > { %4515 = vmatprep.mubr.f32.mxu1 %v9131_v24 }
 0xa82   : > { %5603 = vmatmul.mubr.msk.f32.gmra.mrb[108].mxu0 %vm1211_vm0, %v5587_v47 }
 0xa83   : > { %4408 = vmatprep.mubr.f32.mxu0 %v9131_v24 }
 0xa84   : > { %5611 = vmatmul.mubr.msk.f32.gmra.mrb[108].mxu1 %vm1211_vm0, %v5587_v47  ;;  %v4284_v47 = vpop.permute.xlu1 %4283 }
 0xa85   : > { %4521 = vmatprep.mubr.f32.mxu1 %v9131_v24 }
 0xa86   : > { %5604 = vmatmul.mubr.msk.f32.gmra.mrb[110].mxu0 %vm1211_vm0, %v5588_v54 }
 0xa87   : > { %4414 = vmatprep.mubr.f32.mxu0 %v9131_v24 }
 0xa88   : > { %5612 = vmatmul.mubr.msk.f32.gmra.mrb[110].mxu1 %vm1211_vm0, %v5588_v54 }
 0xa89   : > { %4527 = vmatprep.mubr.f32.mxu1 %v9131_v24 }
 0xa8a   : > { %5605 = vmatmul.mubr.msk.f32.gmra.mrb[112].mxu0 %vm1211_vm0, %v5589_v58 }
 0xa8b   : > { %4420 = vmatprep.mubr.f32.mxu0 %v9131_v24 }
 0xa8c   : > { %5613 = vmatmul.mubr.msk.f32.gmra.mrb[112].mxu1 %vm1211_vm0, %v5589_v58 }
 0xa8d   : > { %4533 = vmatprep.mubr.f32.mxu1 %v9131_v24 }
 0xa8e   : > { %5606 = vmatmul.mubr.msk.f32.gmra.mrb[114].mxu0 %vm1211_vm0, %v5590_v31 }
 0xa8f   : > { %4426 = vmatprep.mubr.f32.mxu0 %v9131_v24 }
 0xa90   : > { %5614 = vmatmul.mubr.msk.f32.gmra.mrb[114].mxu1 %vm1211_vm0, %v5590_v31 }
 0xa91   : > { %4539 = vmatprep.mubr.f32.mxu1 %v9131_v24 }
 0xa92   : > { %5607 = vmatmul.mubr.msk.f32.gmra.mrb[116].mxu0 %vm1211_vm0, %v5591_v26 }
 0xa93   : > { %4724 = vmatprep.mubr.f32.mxu0 %v9131_v24 }
 0xa94   : > { %5615 = vmatmul.mubr.msk.f32.gmra.mrb[116].mxu1 %vm1211_vm0, %v5591_v26 }
 0xa95   : > { %4837 = vmatprep.mubr.f32.mxu1 %v9131_v24 }
 0xb49   : > { %v4386_v2 = vpop.f32.mrb[102].mxu0 }
 0xb4a   : > { %v4387_v8 = vadd.f32 %v4386_v2, %v4259_v45  ;;  %v4388_v59 = vpop.f32.mrb[103].mxu0 }
 0xb4b   : > { %v4499_v43 = vpop.f32.mrb[102].mxu1  ;;  %v4389_v35 = vadd.f32 %v4388_v59, %v4259_v45 }
 0xb4c   : > { %6791 = vtanh.f32 %v4387_v8  ;;  %v4500_v61 = vadd.f32 %v4499_v43, %v4259_v45  ;;  %v4501_v36 = vpop.f32.mrb[103].mxu1 }
 0xb4d   : > { %6793 = vtanh.f32 %v4389_v35  ;;  %v4502_v56 = vadd.f32 %v4501_v36, %v4259_v45  ;;  %v4392_v50 = vpop.f32.mrb[104].mxu0 }
 0xb4e   : > { %6795 = vtanh.f32 %v4500_v61  ;;  %v4393_v46 = vadd.f32 %v4392_v50, %v4264_v53  ;;  %v4394_v18 = vpop.f32.mrb[105].mxu0  ;;  %v4289_v50 = vpop.permute.xlu0 %4288 }
 0xb4f   : > { %6797 = vtanh.f32 %v4502_v56  ;;  %v4505_v30 = vpop.f32.mrb[104].mxu1  ;;  %v4395_v51 = vadd.f32 %v4394_v18, %v4264_v53 }
 0xb50   : > { %6799 = vtanh.f32 %v4393_v46  ;;  %v4506_v60 = vadd.f32 %v4505_v30, %v4264_v53  ;;  %v4507_v16 = vpop.f32.mrb[105].mxu1 }
 0xb51   : > { %6801 = vtanh.f32 %v4395_v51  ;;  %v4508_v4 = vadd.f32 %v4507_v16, %v4264_v53  ;;  %v4398_v14 = vpop.f32.mrb[106].mxu0 }
 0xb52   : > { %6803 = vtanh.f32 %v4506_v60  ;;  %v4399_v52 = vadd.f32 %v4398_v14, %v4269_v38  ;;  %v4400_v42 = vpop.f32.mrb[107].mxu0 }
 0xb53   : > { %6805 = vtanh.f32 %v4508_v4  ;;  %v4511_v57 = vpop.f32.mrb[106].mxu1  ;;  %v4401_v55 = vadd.f32 %v4400_v42, %v4269_v38 }
 0xb54   : > { %6807 = vtanh.f32 %v4399_v52  ;;  %v4512_v39 = vadd.f32 %v4511_v57, %v4269_v38  ;;  %v4513_v62 = vpop.f32.mrb[107].mxu1 }
 0xb55   : > { %6809 = vtanh.f32 %v4401_v55  ;;  %v4514_v10 = vadd.f32 %v4513_v62, %v4269_v38  ;;  %v4404_v22 = vpop.f32.mrb[108].mxu0  ;;  %v4294_v62 = vpop.permute.xlu1 %4293 }
 0xb56   : > { %v6792_v23 = vpop.eup %6791  ;;  %6811 = vtanh.f32 %v4512_v39  ;;  %v4405_v25 = vadd.f32 %v4404_v22, %v4274_v28  ;;  %v4406_v5 = vpop.f32.mrb[109].mxu0 }
 0xb57   : > { %v6794_v49 = vpop.eup %6793  ;;  %6813 = vtanh.f32 %v4514_v10  ;;  %v4517_v20 = vpop.f32.mrb[108].mxu1  ;;  %v4407_v40 = vadd.f32 %v4406_v5, %v4274_v28 }
 0xb58   : > { %v6796_v34 = vpop.eup %6795  ;;  %6815 = vtanh.f32 %v4405_v25  ;;  %v4518_v6 = vadd.f32 %v4517_v20, %v4274_v28  ;;  %v4519_v0 = vpop.f32.mrb[109].mxu1 }
 0xb59   : > { %v6798_v9 = vpop.eup %6797  ;;  %6817 = vtanh.f32 %v4407_v40  ;;  %v4520_v32 = vadd.f32 %v4519_v0, %v4274_v28  ;;  %v4410_v48 = vpop.f32.mrb[110].mxu0 }
 0xb5a   : > { %v6800_v44 = vpop.eup %6799  ;;  %6819 = vtanh.f32 %v4518_v6  ;;  %v4411_v33 = vadd.f32 %v4410_v48, %v4279_v21  ;;  %v4412_v17 = vpop.f32.mrb[111].mxu0 }
 0xb5b   : > { %v6802_v63 = vpop.eup %6801  ;;  %6821 = vtanh.f32 %v4520_v32  ;;  %v4523_v1 = vpop.f32.mrb[110].mxu1  ;;  %v4413_v12 = vadd.f32 %v4412_v17, %v4279_v21  ;;  %v5983_v19 = vpack.c.bf16 %v6800_v44, %v6792_v23 }
 0xb5c   : > { %v6804_v3 = vpop.eup %6803  ;;  %6823 = vtanh.f32 %v4411_v33  ;;  %v4524_v41 = vadd.f32 %v4523_v1, %v4279_v21  ;;  %v4525_v11 = vpop.f32.mrb[111].mxu1  ;;  %v5981_v27 = vpack.c.bf16 %v6802_v63, %v6794_v49 }
 0xb5d   : > { %v6806_v7 = vpop.eup %6805  ;;  %6825 = vtanh.f32 %v4413_v12  ;;  %v4526_v54 = vadd.f32 %v4525_v11, %v4279_v21  ;;  %v4416_v58 = vpop.f32.mrb[112].mxu0  ;;  %v5999_v31 = vpack.c.bf16 %v6804_v3, %v6796_v34 }
 0xb5e   : > { %v6808_v26 = vpop.eup %6807  ;;  %6827 = vtanh.f32 %v4524_v41  ;;  %v4417_v45 = vadd.f32 %v4416_v58, %v4284_v47  ;;  %v4418_v2 = vpop.f32.mrb[113].mxu0  ;;  %5982 = vmatprep.subr.bf16.mxu0 %v5981_v27  ;;  %v5997_v8 = vpack.c.bf16 %v6806_v7, %v6798_v9 }
 0xb5f   : > { %v6810_v59 = vpop.eup %6809  ;;  %6829 = vtanh.f32 %v4526_v54  ;;  %v4529_v43 = vpop.f32.mrb[112].mxu1  ;;  %v4419_v35 = vadd.f32 %v4418_v2, %v4284_v47  ;;  %5984 = vmatpush1.bf16.msra.mxu0 %v5983_v19 }
 0xb60   : > { %v6812_v61 = vpop.eup %6811  ;;  %6831 = vtanh.f32 %v4417_v45  ;;  %v4530_v36 = vadd.f32 %v4529_v43, %v4284_v47  ;;  %v4531_v53 = vpop.f32.mrb[113].mxu1  ;;  %5998 = vmatprep.subr.bf16.mxu1 %v5997_v8  ;;  %v5616_v8 = vld [vmem:[%s9073_s5 + $0xc0] sm:$0xff]  ;;  %v5618_v43 = vld [vmem:[%s9073_s5 + $0xd0] sm:$0xff] }
 0xb61   : > { %v6814_v56 = vpop.eup %6813  ;;  %6833 = vtanh.f32 %v4419_v35  ;;  %v4532_v46 = vadd.f32 %v4531_v53, %v4284_v47  ;;  %6000 = vmatpush1.bf16.msra.mxu1 %v5999_v31  ;;  %v4422_v18 = vpop.f32.mrb[114].mxu0  ;;  %v5619_v35 = vld [vmem:[%s9073_s5 + $0xd8] sm:$0xff]  ;;  %v5622_v53 = vld [vmem:[%s9073_s5 + $0xf0] sm:$0xff] }
 0xb62   : > { %v6816_v30 = vpop.eup %6815  ;;  %6835 = vtanh.f32 %v4530_v36  ;;  %v4423_v51 = vadd.f32 %v4422_v18, %v4289_v50  ;;  %v4424_v60 = vpop.f32.mrb[115].mxu0  ;;  %v5621_v36 = vld [vmem:[%s9073_s5 + $0xe8] sm:$0xff] }
 0xb63   : > { %v6818_v16 = vpop.eup %6817  ;;  %6837 = vtanh.f32 %v4532_v46  ;;  %v4535_v38 = vpop.f32.mrb[114].mxu1  ;;  %v4425_v4 = vadd.f32 %v4424_v60, %v4289_v50  ;;  %v5987_v14 = vpack.c.bf16 %v6816_v30, %v6808_v26 }
 0xb64   : > { %v6820_v52 = vpop.eup %6819  ;;  %6839 = vtanh.f32 %v4423_v51  ;;  %v4536_v42 = vadd.f32 %v4535_v38, %v4289_v50  ;;  %v4537_v57 = vpop.f32.mrb[115].mxu1  ;;  %v5985_v55 = vpack.c.bf16 %v6818_v16, %v6810_v59  ;;  %v5617_v59 = vld [vmem:[%s9073_s5 + $0xc8] sm:$0xff] }
 0xb65   : > { %v6822_v39 = vpop.eup %6821  ;;  %6841 = vtanh.f32 %v4425_v4  ;;  %v4538_v28 = vadd.f32 %v4537_v57, %v4289_v50  ;;  %v4428_v10 = vpop.f32.mrb[116].mxu0  ;;  %v6003_v22 = vpack.c.bf16 %v6820_v52, %v6812_v61  ;;  %v5620_v61 = vld [vmem:[%s9073_s5 + $0xe0] sm:$0xff] }
 0xb66   : > { %v6824_v23 = vpop.eup %6823  ;;  %6843 = vtanh.f32 %v4536_v42  ;;  %v4429_v25 = vadd.f32 %v4428_v10, %v4294_v62  ;;  %v4430_v5 = vpop.f32.mrb[117].mxu0  ;;  %5986 = vmatprep.subr.bf16.mxu0 %v5985_v55  ;;  %v6001_v49 = vpack.c.bf16 %v6822_v39, %v6814_v56  ;;  %v5623_v56 = vld [vmem:[%s9073_s5 + $0xf8] sm:$0xff] }
 0xb67   : > { %v6826_v20 = vpop.eup %6825  ;;  %6845 = vtanh.f32 %v4538_v28  ;;  %v4541_v40 = vpop.f32.mrb[116].mxu1  ;;  %v4431_v34 = vadd.f32 %v4430_v5, %v4294_v62  ;;  %5988 = vmatpush1.bf16.msra.mxu0 %v5987_v14 }
 0xb68   : > { %v6828_v6 = vpop.eup %6827  ;;  %6847 = vtanh.f32 %v4429_v25  ;;  %v4542_v0 = vadd.f32 %v4541_v40, %v4294_v62  ;;  %v4543_v9 = vpop.f32.mrb[117].mxu1  ;;  %6002 = vmatprep.subr.bf16.mxu1 %v6001_v49 }
 0xb69   : > { %v6830_v21 = vpop.eup %6829  ;;  %6849 = vtanh.f32 %v4431_v34  ;;  %v4544_v32 = vadd.f32 %v4543_v9, %v4294_v62  ;;  %6004 = vmatpush1.bf16.msra.mxu1 %v6003_v22  ;;  %v4599_v50 = vpop.permute.xlu0 %4598 }
 0xb6a   : > { %v6832_v48 = vpop.eup %6831  ;;  %6851 = vtanh.f32 %v4542_v0  ;;  %v4604_v4 = vpop.permute.xlu1 %4603 }
 0xb6b   : > { %v6834_v44 = vpop.eup %6833  ;;  %6853 = vtanh.f32 %v4544_v32  ;;  %v5991_v33 = vpack.c.bf16 %v6832_v48, %v6824_v23 }
 0xb6c   : > { %v6836_v17 = vpop.eup %6835  ;;  %v5989_v63 = vpack.c.bf16 %v6834_v44, %v6826_v20 }
 0xb6d   : > { %v6838_v1 = vpop.eup %6837  ;;  %v6007_v12 = vpack.c.bf16 %v6836_v17, %v6828_v6  ;;  %v4609_v28 = vpop.permute.xlu0 %4608 }
 0xb6e   : > { %v6840_v19 = vpop.eup %6839  ;;  %5990 = vmatprep.subr.bf16.mxu0 %v5989_v63  ;;  %v6005_v3 = vpack.c.bf16 %v6838_v1, %v6830_v21  ;;  %v4614_v34 = vpop.permute.xlu1 %4613 }
 0xb6f   : > { %v6842_v41 = vpop.eup %6841  ;;  %5992 = vmatpush1.bf16.msra.mxu0 %v5991_v33 }
 0xb70   : > { %v6844_v11 = vpop.eup %6843  ;;  %6006 = vmatprep.subr.bf16.mxu1 %v6005_v3 }
 0xb71   : > { %v6846_v27 = vpop.eup %6845  ;;  %6008 = vmatpush1.bf16.msra.mxu1 %v6007_v12 }
 0xb72   : > { %v6848_v7 = vpop.eup %6847 }
 0xb73   : > { %v6850_v47 = vpop.eup %6849  ;;  %v5995_v54 = vpack.c.bf16 %v6848_v7, %v6840_v19  ;;  %v4619_v19 = vpop.permute.xlu0 %4618 }
 0xb74   : > { %v6852_v58 = vpop.eup %6851  ;;  %v5993_v31 = vpack.c.bf16 %v6850_v47, %v6842_v41 }
 0xb75   : > { %v6854_v26 = vpop.eup %6853  ;;  %v6011_v45 = vpack.c.bf16 %v6852_v58, %v6844_v11 }
 0xb76   : > { %5994 = vmatprep.subr.bf16.mxu0 %v5993_v31  ;;  %v6009_v2 = vpack.c.bf16 %v6854_v26, %v6846_v27 }
 0xb77   : > { %5996 = vmatpush1.bf16.msra.mxu0 %v5995_v54 }
 0xb78   : > { %6010 = vmatprep.subr.bf16.mxu1 %v6009_v2 }
 0xb79   : > { %6012 = vmatpush1.bf16.msra.mxu1 %v6011_v45 }
 0xb7a   : > { %5632 = vmatmul.mubr.msk.f32.vlgmr.msra.gmra.mrb[118].mxu0 %vm1211_vm0, %v5616_v8 }
 0xb7b   : > { %4730 = vmatprep.mubr.f32.mxu0 %v9131_v24 }
 0xb7c   : > { %5640 = vmatmul.mubr.msk.f32.vlgmr.msra.gmra.mrb[118].mxu1 %vm1211_vm0, %v5616_v8 }
 0xb7d   : > { %4843 = vmatprep.mubr.f32.mxu1 %v9131_v24 }
 0xb7e   : > { %5633 = vmatmul.mubr.msk.f32.gmra.mrb[120].mxu0 %vm1211_vm0, %v5617_v59 }
 0xb7f   : > { %4736 = vmatprep.mubr.f32.mxu0 %v9131_v24 }
 0xb80   : > { %5641 = vmatmul.mubr.msk.f32.gmra.mrb[120].mxu1 %vm1211_vm0, %v5617_v59 }
 0xb81   : > { %4849 = vmatprep.mubr.f32.mxu1 %v9131_v24 }
 0xb82   : > { %5634 = vmatmul.mubr.msk.f32.gmra.mrb[122].mxu0 %vm1211_vm0, %v5618_v43 }
 0xb83   : > { %4742 = vmatprep.mubr.f32.mxu0 %v9131_v24 }
 0xb84   : > { %5642 = vmatmul.mubr.msk.f32.gmra.mrb[122].mxu1 %vm1211_vm0, %v5618_v43  ;;  %v4624_v43 = vpop.permute.xlu1 %4623 }
 0xb85   : > { %4855 = vmatprep.mubr.f32.mxu1 %v9131_v24 }
 0xb86   : > { %5635 = vmatmul.mubr.msk.f32.gmra.mrb[124].mxu0 %vm1211_vm0, %v5619_v35 }
 0xb87   : > { %4748 = vmatprep.mubr.f32.mxu0 %v9131_v24 }
 0xb88   : > { %5643 = vmatmul.mubr.msk.f32.gmra.mrb[124].mxu1 %vm1211_vm0, %v5619_v35 }
 0xb89   : > { %4861 = vmatprep.mubr.f32.mxu1 %v9131_v24 }
 0xb8a   : > { %5636 = vmatmul.mubr.msk.f32.gmra.mrb[126].mxu0 %vm1211_vm0, %v5620_v61 }
 0xb8b   : > { %4754 = vmatprep.mubr.f32.mxu0 %v9131_v24 }
 0xb8c   : > { %5644 = vmatmul.mubr.msk.f32.gmra.mrb[126].mxu1 %vm1211_vm0, %v5620_v61 }
 0xb8d   : > { %4867 = vmatprep.mubr.f32.mxu1 %v9131_v24 }
 0xb8e   : > { %5637 = vmatmul.mubr.msk.f32.gmra.mrb[128].mxu0 %vm1211_vm0, %v5621_v36 }
 0xb8f   : > { %4760 = vmatprep.mubr.f32.mxu0 %v9131_v24 }
 0xb90   : > { %5645 = vmatmul.mubr.msk.f32.gmra.mrb[128].mxu1 %vm1211_vm0, %v5621_v36 }
 0xb91   : > { %4873 = vmatprep.mubr.f32.mxu1 %v9131_v24 }
 0xb92   : > { %5638 = vmatmul.mubr.msk.f32.gmra.mrb[130].mxu0 %vm1211_vm0, %v5622_v53 }
 0xb93   : > { %4766 = vmatprep.mubr.f32.mxu0 %v9131_v24 }
 0xb94   : > { %5646 = vmatmul.mubr.msk.f32.gmra.mrb[130].mxu1 %vm1211_vm0, %v5622_v53 }
 0xb95   : > { %4879 = vmatprep.mubr.f32.mxu1 %v9131_v24 }
 0xb96   : > { %5639 = vmatmul.mubr.msk.f32.gmra.mrb[132].mxu0 %vm1211_vm0, %v5623_v56 }
 0xb97   : > { %4994 = vmatprep.mubr.f32.mxu0 %v9131_v24 }
 0xb98   : > { %5647 = vmatmul.mubr.msk.f32.gmra.mrb[132].mxu1 %vm1211_vm0, %v5623_v56 }
 0xb99   : > { %5065 = vmatprep.mubr.f32.mxu1 %v9131_v24 }
 0xc4d   : > { %v4726_v46 = vpop.f32.mrb[118].mxu0 }
 0xc4e   : > { %v4727_v18 = vadd.f32 %v4726_v46, %v4599_v50  ;;  %v4728_v30 = vpop.f32.mrb[119].mxu0 }
 0xc4f   : > { %v4839_v51 = vpop.f32.mrb[118].mxu1  ;;  %v4729_v60 = vadd.f32 %v4728_v30, %v4599_v50 }
 0xc50   : > { %6855 = vtanh.f32 %v4727_v18  ;;  %v4840_v16 = vadd.f32 %v4839_v51, %v4599_v50  ;;  %v4841_v38 = vpop.f32.mrb[119].mxu1 }
 0xc51   : > { %6857 = vtanh.f32 %v4729_v60  ;;  %v4842_v14 = vadd.f32 %v4841_v38, %v4599_v50  ;;  %v4732_v52 = vpop.f32.mrb[120].mxu0 }
 0xc52   : > { %6859 = vtanh.f32 %v4840_v16  ;;  %v4733_v42 = vadd.f32 %v4732_v52, %v4604_v4  ;;  %v4734_v57 = vpop.f32.mrb[121].mxu0 }
 0xc53   : > { %6861 = vtanh.f32 %v4842_v14  ;;  %v4845_v55 = vpop.f32.mrb[120].mxu1  ;;  %v4735_v39 = vadd.f32 %v4734_v57, %v4604_v4  ;;  %v4629_v14 = vpop.permute.xlu0 %4628 }
 0xc54   : > { %6863 = vtanh.f32 %v4733_v42  ;;  %v4846_v24 = vadd.f32 %v4845_v55, %v4604_v4  ;;  %v4847_v62 = vpop.f32.mrb[121].mxu1 }
 0xc55   : > { %6865 = vtanh.f32 %v4735_v39  ;;  %v4848_v10 = vadd.f32 %v4847_v62, %v4604_v4  ;;  %v4738_v22 = vpop.f32.mrb[122].mxu0 }
 0xc56   : > { %6867 = vtanh.f32 %v4846_v24  ;;  %v4739_v23 = vadd.f32 %v4738_v22, %v4609_v28  ;;  %v4740_v25 = vpop.f32.mrb[123].mxu0 }
 0xc57   : > { %6869 = vtanh.f32 %v4848_v10  ;;  %v4851_v5 = vpop.f32.mrb[122].mxu1  ;;  %v4741_v49 = vadd.f32 %v4740_v25, %v4609_v28 }
 0xc58   : > { %6871 = vtanh.f32 %v4739_v23  ;;  %v4852_v20 = vadd.f32 %v4851_v5, %v4609_v28  ;;  %v4853_v40 = vpop.f32.mrb[123].mxu1 }
 0xc59   : > { %6873 = vtanh.f32 %v4741_v49  ;;  %v4854_v6 = vadd.f32 %v4853_v40, %v4609_v28  ;;  %v4744_v0 = vpop.f32.mrb[124].mxu0 }
 0xc5a   : > { %v6856_v9 = vpop.eup %6855  ;;  %6875 = vtanh.f32 %v4852_v20  ;;  %v4745_v21 = vadd.f32 %v4744_v0, %v4614_v34  ;;  %v4746_v32 = vpop.f32.mrb[125].mxu0 }
 0xc5b   : > { %v6858_v48 = vpop.eup %6857  ;;  %6877 = vtanh.f32 %v4854_v6  ;;  %v4857_v44 = vpop.f32.mrb[124].mxu1  ;;  %v4747_v33 = vadd.f32 %v4746_v32, %v4614_v34 }
 0xc5c   : > { %v6860_v17 = vpop.eup %6859  ;;  %6879 = vtanh.f32 %v4745_v21  ;;  %v4858_v63 = vadd.f32 %v4857_v44, %v4614_v34  ;;  %v4859_v1 = vpop.f32.mrb[125].mxu1 }
 0xc5d   : > { %v6862_v12 = vpop.eup %6861  ;;  %6881 = vtanh.f32 %v4747_v33  ;;  %v4860_v3 = vadd.f32 %v4859_v1, %v4614_v34  ;;  %v4750_v41 = vpop.f32.mrb[126].mxu0 }
 0xc5e   : > { %v6864_v11 = vpop.eup %6863  ;;  %6883 = vtanh.f32 %v4858_v63  ;;  %v4751_v27 = vadd.f32 %v4750_v41, %v4619_v19  ;;  %v4752_v7 = vpop.f32.mrb[127].mxu0 }
 0xc5f   : > { %v6866_v47 = vpop.eup %6865  ;;  %6885 = vtanh.f32 %v4860_v3  ;;  %v4863_v54 = vpop.f32.mrb[126].mxu1  ;;  %v4753_v58 = vadd.f32 %v4752_v7, %v4619_v19  ;;  %v6015_v31 = vpack.c.bf16 %v6864_v11, %v6856_v9 }
 0xc60   : > { %v6868_v26 = vpop.eup %6867  ;;  %6887 = vtanh.f32 %v4751_v27  ;;  %v4864_v45 = vadd.f32 %v4863_v54, %v4619_v19  ;;  %v4865_v2 = vpop.f32.mrb[127].mxu1  ;;  %v6013_v8 = vpack.c.bf16 %v6866_v47, %v6858_v48 }
 0xc61   : > { %v6870_v59 = vpop.eup %6869  ;;  %6889 = vtanh.f32 %v4753_v58  ;;  %v4866_v35 = vadd.f32 %v4865_v2, %v4619_v19  ;;  %v4756_v61 = vpop.f32.mrb[128].mxu0  ;;  %v6031_v36 = vpack.c.bf16 %v6868_v26, %v6860_v17 }
 0xc62   : > { %v6872_v53 = vpop.eup %6871  ;;  %6891 = vtanh.f32 %v4864_v45  ;;  %v4757_v56 = vadd.f32 %v4756_v61, %v4624_v43  ;;  %v4758_v50 = vpop.f32.mrb[129].mxu0  ;;  %6014 = vmatprep.subr.bf16.mxu0 %v6013_v8  ;;  %v6029_v46 = vpack.c.bf16 %v6870_v59, %v6862_v12 }
 0xc63   : > { %v6874_v18 = vpop.eup %6873  ;;  %6893 = vtanh.f32 %v4866_v35  ;;  %v4869_v30 = vpop.f32.mrb[128].mxu1  ;;  %v4759_v51 = vadd.f32 %v4758_v50, %v4624_v43  ;;  %6016 = vmatpush1.bf16.msra.mxu0 %v6015_v31  ;;  %v5648_v50 = vld [vmem:[%s9075_s7 + $0x6] sm:$0x3] }
 0xc64   : > { %v6876_v60 = vpop.eup %6875  ;;  %6895 = vtanh.f32 %v4757_v56  ;;  %v4870_v16 = vadd.f32 %v4869_v30, %v4624_v43  ;;  %v4871_v38 = vpop.f32.mrb[129].mxu1  ;;  %6030 = vmatprep.subr.bf16.mxu1 %v6029_v46 }
 0xc65   : > { %v6878_v4 = vpop.eup %6877  ;;  %6897 = vtanh.f32 %v4759_v51  ;;  %v4872_v52 = vadd.f32 %v4871_v38, %v4624_v43  ;;  %6032 = vmatpush1.bf16.msra.mxu1 %v6031_v36  ;;  %v4762_v42 = vpop.f32.mrb[130].mxu0 }
 0xc66   : > { %v6880_v57 = vpop.eup %6879  ;;  %6899 = vtanh.f32 %v4870_v16  ;;  %v4763_v55 = vadd.f32 %v4762_v42, %v4629_v14  ;;  %v4764_v39 = vpop.f32.mrb[131].mxu0 }
 0xc67   : > { %v6882_v24 = vpop.eup %6881  ;;  %6901 = vtanh.f32 %v4872_v52  ;;  %v4875_v62 = vpop.f32.mrb[130].mxu1  ;;  %v4765_v28 = vadd.f32 %v4764_v39, %v4629_v14  ;;  %v6019_v10 = vpack.c.bf16 %v6880_v57, %v6872_v53 }
 0xc68   : > { %v6884_v22 = vpop.eup %6883  ;;  %6903 = vtanh.f32 %v4763_v55  ;;  %v4876_v23 = vadd.f32 %v4875_v62, %v4629_v14  ;;  %v4877_v25 = vpop.f32.mrb[131].mxu1  ;;  %v6017_v5 = vpack.c.bf16 %v6882_v24, %v6874_v18  ;;  %v9170_v24 = vld [vmem:[#allocation9_spill] sm:$0xff] }
 0xc69   : > { %v6886_v49 = vpop.eup %6885  ;;  %v4634_v20 = vpop.permute.xlu1 %4633  ;;  %6905 = vtanh.f32 %v4765_v28  ;;  %v4878_v40 = vadd.f32 %v4877_v25, %v4629_v14  ;;  %v6035_v6 = vpack.c.bf16 %v6884_v22, %v6876_v60  ;;  %v9171_v22 = vld [vmem:[#allocation14_spill] sm:$0xff] }
 0xc6a   : > { %v4768_v34 = vpop.f32.mrb[132].mxu0  ;;  %v6888_v0 = vpop.eup %6887  ;;  %6907 = vtanh.f32 %v4876_v23  ;;  %6018 = vmatprep.subr.bf16.mxu0 %v6017_v5  ;;  %v6033_v32 = vpack.c.bf16 %v6886_v49, %v6878_v4 }
 0xc6b   : > { %v4769_v9 = vadd.f32 %v4768_v34, %v4634_v20  ;;  %v4770_v21 = vpop.f32.mrb[133].mxu0  ;;  %v6890_v48 = vpop.eup %6889  ;;  %6909 = vtanh.f32 %v4878_v40  ;;  %6020 = vmatpush1.bf16.msra.mxu0 %v6019_v10 }
 0xc6c   : > { %v4881_v44 = vpop.f32.mrb[132].mxu1  ;;  %v4771_v33 = vadd.f32 %v4770_v21, %v4634_v20  ;;  %v6892_v17 = vpop.eup %6891  ;;  %6034 = vmatprep.subr.bf16.mxu1 %v6033_v32  ;;  %v9172_v21 = vld [vmem:[#allocation7_spill] sm:$0xff] }
 0xc6d   : > { %6911 = vtanh.f32 %v4769_v9  ;;  %v4882_v63 = vadd.f32 %v4881_v44, %v4634_v20  ;;  %v4883_v1 = vpop.f32.mrb[133].mxu1  ;;  %v6894_v12 = vpop.eup %6893  ;;  %6036 = vmatpush1.bf16.msra.mxu1 %v6035_v6  ;;  %v9173_v44 = vld [vmem:[#allocation6_spill] sm:$0xff] }
 0xc6e   : > { %6913 = vtanh.f32 %v4771_v33  ;;  %v4884_v19 = vadd.f32 %v4883_v1, %v4634_v20  ;;  %v6896_v3 = vpop.eup %6895  ;;  %v4925_v46 = vpop.permute.xlu0 %4924  ;;  %v9174_v1 = vld [vmem:[#allocation8_spill] sm:$0xff] }
 0xc6f   : > { %6915 = vtanh.f32 %v4882_v63  ;;  %v6898_v41 = vpop.eup %6897  ;;  %v6023_v11 = vpack.c.bf16 %v6896_v3, %v6888_v0  ;;  %v9175_v3 = vld [vmem:[#allocation22_spill] sm:$0xff] }
 0xc70   : > { %6917 = vtanh.f32 %v4884_v19  ;;  %v6900_v27 = vpop.eup %6899  ;;  %v6021_v7 = vpack.c.bf16 %v6898_v41, %v6890_v48 }
 0xc71   : > { %v6902_v47 = vpop.eup %6901  ;;  %v6039_v54 = vpack.c.bf16 %v6900_v27, %v6892_v17 }
 0xc72   : > { %v6904_v58 = vpop.eup %6903  ;;  %6022 = vmatprep.subr.bf16.mxu0 %v6021_v7  ;;  %v6037_v31 = vpack.c.bf16 %v6902_v47, %v6894_v12 }
 0xc73   : > { %v6906_v26 = vpop.eup %6905  ;;  %6024 = vmatpush1.bf16.msra.mxu0 %v6023_v11  ;;  %v9176_v11 = vld [vmem:[#allocation10_spill] sm:$0xff] }
 0xc74   : > { %v6908_v45 = vpop.eup %6907  ;;  %6038 = vmatprep.subr.bf16.mxu1 %v6037_v31  ;;  %v5116_v27 = vmul.f32 %v9176_v11, %v9176_v11 }
 0xc75   : > { %v6910_v2 = vpop.eup %6909  ;;  %6040 = vmatpush1.bf16.msra.mxu1 %v6039_v54  ;;  %v9177_v54 = vld [vmem:[#allocation20_spill] sm:$0xff] }
 0xc77   : > { %v6912_v8 = vpop.eup %6911 }
 0xc78   : > { %v6914_v59 = vpop.eup %6913  ;;  %v6027_v43 = vpack.c.bf16 %v6912_v8, %v6904_v58  ;;  %v5117_v58 = vmul.f32 %v9177_v54, %v9177_v54 }
 0xc79   : > { %v6916_v35 = vpop.eup %6915  ;;  %v6025_v61 = vpack.c.bf16 %v6914_v59, %v6906_v26  ;;  %v9179_v59 = vld [vmem:[#allocation19_spill] sm:$0xff] }
 0xc7a   : > { %v6918_v36 = vpop.eup %6917  ;;  %v6043_v53 = vpack.c.bf16 %v6916_v35, %v6908_v45 }
 0xc7b   : > { %6026 = vmatprep.subr.bf16.mxu0 %v6025_v61  ;;  %v6041_v56 = vpack.c.bf16 %v6918_v36, %v6910_v2  ;;  %v9178_v2 = vld [vmem:[#allocation11_spill] sm:$0xff] }
 0xc7c   : > { %6028 = vmatpush1.bf16.msra.mxu0 %v6027_v43  ;;  %v5118_v8 = vmul.f32 %v9178_v2, %v9178_v2  ;;  %v5119_v43 = vmul.f32 %v9179_v59, %v9179_v59 }
 0xc7d   : > { %6042 = vmatprep.subr.bf16.mxu1 %v6041_v56 }
 0xc7e   : > { %6044 = vmatpush1.bf16.msra.mxu1 %v6043_v53 }
 0xc7f   : > { %5650 = vmatmul.mubr.msk.f32.vlgmr.msra.gmra.mrb[134].mxu0 %vm1211_vm0, %v5648_v50 }
 0xc81   : > { %5651 = vmatmul.mubr.msk.f32.vlgmr.msra.gmra.mrb[134].mxu1 %vm1211_vm0, %v5648_v50 }
 0xd52   : > { %v4996_v18 = vpop.f32.mrb[134].mxu0 }
 0xd53   : > { %v4997_v30 = vadd.f32 %v4996_v18, %v4925_v46  ;;  %v4998_v51 = vpop.f32.mrb[135].mxu0 }
 0xd54   : > { %v5067_v60 = vpop.f32.mrb[134].mxu1  ;;  %v4999_v16 = vadd.f32 %v4998_v51, %v4925_v46 }
 0xd55   : > { %v5072_v38 = vmul.f32 1.442695, %v4997_v30  ;;  %v8978_v4 = vadd.f32 %v8580_v29, %v4997_v30  ;;  %v5068_v14 = vadd.f32 %v5067_v60, %v4925_v46  ;;  %v5069_v52 = vpop.f32.mrb[135].mxu1 }
 0xd56   : > { %v5074_v42 = vmul.f32 1.442695, %v4999_v16  ;;  %v5109_v57 = vadd.f32 %v8588_v13, %v4999_v16  ;;  %v5070_v55 = vadd.f32 %v5069_v52, %v4925_v46 }
 0xd57   : > { %6919 = vpow2.f32 %v5072_v38  ;;  %v5076_v39 = vmul.f32 1.442695, %v5068_v14  ;;  %v8982_v62 = vadd.f32 %v9170_v24, %v5068_v14  ;;  %v5136_v38 = vrot.slane %v8978_v4, 1 }
 0xd58   : > { %6921 = vpow2.f32 %v5074_v42  ;;  %v5225_v28 = vcombine.low %v8978_v4, %v5109_v57  ;;  %v5078_v10 = vmul.f32 1.442695, %v5070_v55  ;;  %v5111_v29 = vadd.f32 %v9171_v22, %v5070_v55 }
 0xd59   : > { %6923 = vpow2.f32 %v5076_v39  ;;  %v5137_v42 = vrot.slane %v5109_v57, 1 }
 0xd5a   : > { %6925 = vpow2.f32 %v5078_v10  ;;  %v5233_v23 = vrot.slane %v5225_v28, %v9166_v15  ;;  %v5226_v25 = vcombine.low %v8982_v62, %v5111_v29  ;;  %v5138_v10 = vrot.slane %v8982_v62, 1 }
 0xd5c   : > { %v5240_v13 = vrot.slane %v5226_v25, %v9166_v15  ;;  %v5139_v25 = vrot.slane %v5111_v29, 1 }
 0xd5e   : > { %v5241_v5 = vcombine.high %v5233_v23, %v5240_v13 }
 0xd60   : > { %v5248_v20 = vrot.slane %v5241_v5, %v9166_v15 }
 0xd61   : > { %v6920_v49 = vpop.eup %6919 }
 0xd62   : > { %v6922_v40 = vpop.eup %6921  ;;  %v5084_v34 = vrot.slane %v6920_v49, 1  ;;  %5653 = vst.msk [vmem:[%s8782_s27 + $0x2] ss:$4 sm:$0xf] %vm8737_vm1, %v5248_v20 }
 0xd63   : > { %v6924_v6 = vpop.eup %6923  ;;  %v5085_v0 = vrot.slane %v6922_v40, 1 }
 0xd64   : > { %v6926_v9 = vpop.eup %6925  ;;  %v5092_v32 = vmul.f32 %v5084_v34, %v9172_v21  ;;  %v5086_v48 = vrot.slane %v6924_v6, 1 }
 0xd65   : > { %v5093_v33 = vmul.f32 %v5085_v0, %v9173_v44  ;;  %v5087_v17 = vrot.slane %v6926_v9, 1 }
 0xd66   : > { %v5096_v63 = vadd.f32 %v5092_v32, %v4997_v30  ;;  %v5094_v12 = vmul.f32 %v5086_v48, %v9174_v1 }
 0xd67   : > { %v5097_v19 = vadd.f32 %v5093_v33, %v4999_v16  ;;  %v5095_v41 = vmul.f32 %v5087_v17, %v9175_v3 }
 0xd68   : > { %v5112_v7 = vmul.f32 %v5096_v63, %v5096_v63  ;;  %v5098_v47 = vadd.f32 %v5094_v12, %v5068_v14 }
 0xd69   : > { %v5113_v31 = vmul.f32 %v5097_v19, %v5097_v19  ;;  %v5164_v26 = vcombine.low %v5096_v63, %v5097_v19  ;;  %v5099_v45 = vadd.f32 %v5095_v41, %v5070_v55 }
 0xd6a   : > { %v5120_v35 = vadd.f32 %v5116_v27, %v5112_v7  ;;  %v5114_v61 = vmul.f32 %v5098_v47, %v5098_v47 }
 0xd6b   : > { %v5121_v36 = vadd.f32 %v5117_v58, %v5113_v31  ;;  %v5172_v53 = vrot.slane %v5164_v26, %v9166_v15  ;;  %v5115_v56 = vmul.f32 %v5099_v45, %v5099_v45  ;;  %v5165_v50 = vcombine.low %v5098_v47, %v5099_v45 }
 0xd6c   : > { %v5124_v46 = vsub.f32 0.0, %v5120_v35  ;;  %v5122_v18 = vadd.f32 %v5118_v8, %v5114_v61 }
 0xd6d   : > { %v5125_v30 = vsub.f32 0.0, %v5121_v36  ;;  %v5123_v51 = vadd.f32 %v5119_v43, %v5115_v56  ;;  %v5179_v60 = vrot.slane %v5165_v50, %v9166_v15 }
 0xd6e   : > { %v5128_v16 = vmul.f32 0.5, %v5124_v46  ;;  %v5126_v14 = vsub.f32 0.0, %v5122_v18 }
 0xd6f   : > { %v5129_v52 = vmul.f32 0.5, %v5125_v30  ;;  %v5127_v55 = vsub.f32 0.0, %v5123_v51  ;;  %v5180_v39 = vcombine.low %v5172_v53, %v5179_v60 }
 0xd70   : > { %v5144_v24 = vadd.f32 %v5136_v38, %v5128_v16  ;;  %v5130_v28 = vmul.f32 0.5, %v5126_v14 }
 0xd71   : > { %v5145_v22 = vadd.f32 %v5137_v42, %v5129_v52  ;;  %v5131_v23 = vmul.f32 0.5, %v5127_v55  ;;  %v5187_v13 = vrot.slane %v5180_v39, %v9166_v15 }
 0xd72   : > { %v5148_v5 = vmul.f32 1.442695, %v5144_v24  ;;  %v5146_v49 = vadd.f32 %v5138_v10, %v5130_v28 }
 0xd73   : > { %v5150_v20 = vmul.f32 1.442695, %v5145_v22  ;;  %v5147_v40 = vadd.f32 %v5139_v25, %v5131_v23  ;;  %5193 = vst.msk [vmem:[%s8782_s27] ss:$4 sm:$0xf] %vm8737_vm1, %v5187_v13 }
 0xd74   : > { %6927 = vpow2.f32 %v5148_v5  ;;  %v5152_v4 = vmul.f32 1.442695, %v5146_v49 }
 0xd75   : > { %6929 = vpow2.f32 %v5150_v20  ;;  %v5154_v57 = vmul.f32 1.442695, %v5147_v40 }
 0xd76   : > { %6931 = vpow2.f32 %v5152_v4 }
 0xd77   : > { %6933 = vpow2.f32 %v5154_v57 }
 0xd7e   : > { %v6928_v62 = vpop.eup %6927 }
 0xd7f   : > { %v6930_v34 = vpop.eup %6929  ;;  %v5156_v29 = vmul.f32 0.15915494, %v6928_v62 }
 0xd80   : > { %v6932_v6 = vpop.eup %6931  ;;  %v5157_v0 = vmul.f32 0.15915494, %v6930_v34 }
 0xd81   : > { %v6934_v9 = vpop.eup %6933  ;;  %v5158_v21 = vmul.f32 0.15915494, %v6932_v6 }
 0xd82   : > { %v5256_v32 = vcombine.low %v5156_v29, %v5157_v0  ;;  %v5159_v48 = vmul.f32 0.15915494, %v6934_v9 }
 0xd84   : > { %v5264_v44 = vrot.slane %v5256_v32, %v9166_v15  ;;  %v5257_v33 = vcombine.low %v5158_v21, %v5159_v48 }
 0xd86   : > { %v5271_v17 = vrot.slane %v5257_v33, %v9166_v15 }
 0xd88   : > { %v5272_v63 = vcombine.low %v5264_v44, %v5271_v17 }
 0xd8a   : > { %v5279_v1 = vrot.slane %v5272_v63, %v9166_v15 }
 0xd8c   : > { %5654 = vst.msk [vmem:[%s8782_s27 + $0x3] ss:$4 sm:$0xf] %vm8737_vm1, %v5279_v1 }
 0xd8d   : > { %6949 = shalt.err (!%p6946_p3)
}
 0xd8e   : > { %s6950_s25 = scalar_lea.hbm %s9021_s24, 256  ;;  %s6954_s21 = scalar_lea.hbm %s9077_s9, 512 }
 0xd8f   : > { %p6951_p4 = scmp.ne.s32.totalorder %s9021_s24, %s6950_s25  ;;  %p6955_p9 = scmp.lt.u32.totalorder %s9021_s24, %s9077_s9 }
 0xd90   : > { %p6956_p10 = scmp.lt.u32.totalorder %s6954_s21, %s6950_s25  ;;  %p6958_p12 = scmp.lt.u32.totalorder %s6950_s25, %s9021_s24 }
 0xd91   : > { %p6952_p7 = pnand %p6951_p4, %p7093_p5 }
 0xd92   : > { %p6957_p11 = por %p6956_p10, %p6955_p9 }
 0xd93   : > { %p6953_p8 = pneg %p6952_p7 }
 0xd94   : > { %p6959_p13 = por %p6958_p12, %p6957_p11 }
 0xd96   : > { %p6960_p0 = pnand %p6959_p13, %p6953_p8 }
 0xd98   : > { %6963 = shalt.err (!%p6960_p0)
}
 0xd99   : > { %6045 = dma.vmem_to_hbm [thread:$0]  (%p7093_p5), %s9023_s16, 256, %s9021_s24, %s5284_s26  }
 0xd9a PF: > { %p6051_p1 = scmp.ge.s32.totalorder %s6998_s12, 2  ;;  %s5310_s13 = sand.u32 1, %s6986_s30  }
 0xd9b   : > { %s5311_s28 = scalar_lea.sflag [#allocation3], %s5310_s13 }
 0xd9c   : > { %p6048_p2 = pnand %p6051_p1, %p7097_p6 }
 0xd9e   : > { %6981 = dma.done.wait (!%p6048_p2), %s5311_s28, 256  }
 0xd9f   : > { %6983 = vsyncadd (!%p6048_p2), %s5311_s28, 4294967040  ;;  %p19_p3 = scmp.ge.s32.totalorder %s7080_s15, 4   ;;  %s9180_s30 = smov %s6990_s10 }
 0xda0   : > { %s9181_s10 = smov %s6994_s11  ;;  %s9182_s11 = smov %s7091_s18 }
 0xda1   : > { %s9183_s12 = smov %s7080_s15  ;;  %21 = sbr.rel (!%p19_p3) target bundleno = 3 (0x3), region = 120 }
 0xda8   :  { %5316 = vsyncpa [#allocation3], 1 }
 0xda9   :  { %5318 = vsyncpa [#allocation3 + $0x1], 1 }

</bundles_post_ra>
